<compile_context>
chip_gen: v6e
topology: v6e:2x2x1
jax: 0.10.0
libtpu: 0.0.40
codegen_flags: <defaults>
</compile_context>

<pallas_src>
import functools

import jax
import jax.numpy as jnp
from jax.experimental import pallas as pl
from jax.experimental.pallas import tpu as pltpu


def _round_up(n, m):
    return ((n + m - 1) // m) * m


# ----------------------------- Pallas kernels ------------------------------

def _stem_kernel(xph_ref, w_ref, bias_ref, out_ref, *, Cin, KH, KW,
                 Ho, Wo, Hp, Wp):
    """Fused conv7x7/s2 (49 tap matmuls) + BN bias + ReLU + maxpool3x3/s2/p1.

    xph_ref : (1, 4, Hh, Wh, Cin)   stride-2 phase-split padded image
    w_ref   : (KH*KW, Cin, Cpad)    per-tap conv weights, BN scale folded in
    bias_ref: (1, Cpad)             folded BN bias (zeros on padded channels)
    out_ref : (1, Hp*Wp, Cpad)      pooled output, lane-dense (Cpad = 128k)
    """
    Cpad = w_ref.shape[-1]

    # --- conv: accumulate over the 49 taps (VMEM/vreg resident only) ---
    acc = jnp.zeros((Ho * Wo, Cpad), jnp.float32)
    for kh in range(KH):
        for kw in range(KW):
            ph = (kh % 2) * 2 + (kw % 2)
            sl = xph_ref[0, ph, pl.ds(kh // 2, Ho), pl.ds(kw // 2, Wo), :]
            lhs = sl.reshape(Ho * Wo, Cin)                 # (Ho*Wo, Cin)
            acc = acc + jnp.dot(lhs, w_ref[kh * KW + kw],
                                preferred_element_type=jnp.float32)

    # --- folded-BN bias + ReLU ---
    conv = jnp.maximum(acc + bias_ref[...], 0.0)           # (Ho*Wo, Cpad)
    conv = conv.reshape(Ho, Wo, Cpad)

    # --- fused maxpool 3x3 / stride 2 / pad 1 (valid-tap max, fully static) ---
    # TODO(synk): at realistic spatial sizes this epilogue should be
    #             row-tiled/strided instead of fully unrolled.
    rows = []
    for p in range(Hp):
        iis = [i for i in (2 * p - 1, 2 * p, 2 * p + 1) if 0 <= i < Ho]
        hmax = conv[iis[0]]
        for i in iis[1:]:
            hmax = jnp.maximum(hmax, conv[i])              # (Wo, Cpad)
        for q in range(Wp):
            jjs = [j for j in (2 * q - 1, 2 * q, 2 * q + 1) if 0 <= j < Wo]
            v = hmax[jjs[0]:jjs[0] + 1, :]
            for j in jjs[1:]:
                v = jnp.maximum(v, hmax[j:j + 1, :])       # (1, Cpad)
            rows.append(v)
    out_ref[0] = jnp.concatenate(rows, axis=0)             # (Hp*Wp, Cpad)


def _pca_reg_kernel(x_ref, wpca_ref, wreg_ref, o_ref, acc_ref):
    """Flatten -> pca Linear -> reg Linear, K-tiled over the feature dim."""
    @pl.when(pl.program_id(0) == 0)
    def _init():
        acc_ref[...] = jnp.zeros_like(acc_ref)

    acc_ref[...] += jnp.dot(x_ref[...], wpca_ref[...],
                            preferred_element_type=jnp.float32)

    @pl.when(pl.program_id(0) == pl.num_programs(0) - 1)
    def _finalize():
        o_ref[...] = jnp.dot(acc_ref[...], wreg_ref[...],
                             preferred_element_type=jnp.float32)


# ------------------------------ Pallas wrappers ----------------------------

def stem_fused(xph, w_taps, bias, *, KH, KW, Ho, Wo, Hp, Wp):
    B, _, Hh, Wh, Cin = xph.shape
    Cpad = w_taps.shape[-1]
    kernel = functools.partial(_stem_kernel, Cin=Cin, KH=KH, KW=KW,
                               Ho=Ho, Wo=Wo, Hp=Hp, Wp=Wp)
    return pl.pallas_call(
        kernel,
        out_shape=jax.ShapeDtypeStruct((B, Hp * Wp, Cpad), jnp.float32),
        grid=(B,),
        in_specs=[
            pl.BlockSpec((1, 4, Hh, Wh, Cin), lambda b: (b, 0, 0, 0, 0)),
            pl.BlockSpec(w_taps.shape, lambda b: (0, 0, 0)),
            pl.BlockSpec(bias.shape, lambda b: (0, 0)),
        ],
        out_specs=pl.BlockSpec((1, Hp * Wp, Cpad), lambda b: (b, 0, 0)),
        compiler_params=pltpu.CompilerParams(
            dimension_semantics=("parallel",),
            vmem_limit_bytes=32 * 1024 * 1024),
    )(xph, w_taps, bias)


def pca_reg_fused(x_flat, wpca, wreg):
    B, D = x_flat.shape
    P = wpca.shape[1]
    N = wreg.shape[1]
    tk = D
    for cand in (512, 256, 128):
        if D % cand == 0:
            tk = cand
            break
    nk = D // tk
    return pl.pallas_call(
        _pca_reg_kernel,
        out_shape=jax.ShapeDtypeStruct((B, N), jnp.float32),
        grid=(nk,),
        in_specs=[
            pl.BlockSpec((B, tk), lambda k: (0, k)),
            pl.BlockSpec((tk, P), lambda k: (k, 0)),
            pl.BlockSpec((P, N), lambda k: (0, 0)),
        ],
        out_specs=pl.BlockSpec((B, N), lambda k: (0, 0)),
        scratch_shapes=[pltpu.VMEM((B, P), jnp.float32)],
        compiler_params=pltpu.CompilerParams(
            dimension_semantics=("arbitrary",),
            vmem_limit_bytes=32 * 1024 * 1024),
    )(x_flat, wpca, wreg)


# ------------------------------ forward (glue) ------------------------------

@jax.jit
def reg_mapper_forward(x_nchw, params):
    B, Cin, H, W = x_nchw.shape
    conv_w = params["conv_w"]                   # (Cout, Cin, 7, 7)
    Cout, _, KH, KW = conv_w.shape
    pad, stride = 3, 2
    assert (H + 2 * pad) % 2 == 0 and (W + 2 * pad) % 2 == 0
    Ho = (H + 2 * pad - KH) // stride + 1
    Wo = (W + 2 * pad - KW) // stride + 1
    Hp = (Ho + 2 * 1 - 3) // 2 + 1              # maxpool 3x3/s2/p1
    Wp = (Wo + 2 * 1 - 3) // 2 + 1
    Cpad = _round_up(Cout, 128)

    # NCHW -> NHWC, spatial pad, stride-2 phase split (pure layout; no
    # wrapper-side im2col / HBM amplification).
    x = jnp.transpose(x_nchw, (0, 2, 3, 1)).astype(jnp.float32)
    xp = jnp.pad(x, ((0, 0), (pad, pad), (pad, pad), (0, 0)))
    phases = [xp[:, pi::2, pj::2, :] for pi in (0, 1) for pj in (0, 1)]
    xph = jnp.stack(phases, axis=1)             # (B, 4, Hh, Wh, Cin)

    # Fold BN (eval statistics) into conv weights/bias; pad channels to 128.
    eps = 1e-5
    scale = params["bn_gamma"] / jnp.sqrt(params["bn_var"] + eps)
    bias = params["bn_beta"] - params["bn_mean"] * scale
    w = jnp.transpose(conv_w, (2, 3, 1, 0)).astype(jnp.float32)
    w = w * scale[None, None, None, :]
    w = w.reshape(KH * KW, Cin, Cout)
    w_taps = jnp.pad(w, ((0, 0), (0, 0), (0, Cpad - Cout)))
    bias_p = jnp.pad(bias.astype(jnp.float32), (0, Cpad - Cout))[None, :]

    pooled = stem_fused(xph, w_taps, bias_p, KH=KH, KW=KW,
                        Ho=Ho, Wo=Wo, Hp=Hp, Wp=Wp)      # (B, Hp*Wp, Cpad)

    # Flatten without transposing activations: permute/zero-pad the pca
    # weight rows to the (spatial, padded-channel) order instead, so the
    # product matches PyTorch's NCHW flatten semantics exactly.
    S = Hp * Wp
    pca_w = params["pca_w"].astype(jnp.float32)          # (P, Cout*S)
    reg_w = params["reg_w"].astype(jnp.float32)          # (N, P)
    P = pca_w.shape[0]
    N = reg_w.shape[0]
    Ppad = _round_up(P, 128)
    Npad = _round_up(N, 128)

    wpca = pca_w.T.reshape(Cout, S, P).transpose(1, 0, 2)        # (S, Cout, P)
    wpca = jnp.pad(wpca, ((0, 0), (0, Cpad - Cout), (0, 0)))     # (S, Cpad, P)
    wpca = wpca.reshape(S * Cpad, P)
    wpca = jnp.pad(wpca, ((0, 0), (0, Ppad - P)))                # (Dpad, Ppad)
    wreg = jnp.pad(reg_w.T, ((0, Ppad - P), (0, Npad - N)))      # (Ppad, Npad)

    x_flat = pooled.reshape(B, S * Cpad)
    out = pca_reg_fused(x_flat, wpca, wreg)                      # (B, Npad)
    return out[:, :N]


# ------------------------------ XLA reference --------------------------------

def reference_forward(x_nchw, params):
    x = x_nchw.astype(jnp.float32)
    conv = jax.lax.conv_general_dilated(
        x, params["conv_w"].astype(jnp.float32),
        window_strides=(2, 2), padding=((3, 3), (3, 3)),
        dimension_numbers=("NCHW", "OIHW", "NCHW"),
        precision=jax.lax.Precision.HIGHEST)
    eps = 1e-5
    scale = params["bn_gamma"] / jnp.sqrt(params["bn_var"] + eps)
    bias = params["bn_beta"] - params["bn_mean"] * scale
    conv = jnp.maximum(conv * scale[None, :, None, None]
                       + bias[None, :, None, None], 0.0)
    pooled = jax.lax.reduce_window(
        conv, -jnp.inf, jax.lax.max,
        window_dimensions=(1, 1, 3, 3), window_strides=(1, 1, 2, 2),
        padding=((0, 0), (0, 0), (1, 1), (1, 1)))
    flat = pooled.reshape(x.shape[0], -1)
    y = jnp.dot(flat, params["pca_w"].astype(jnp.float32).T,
                precision=jax.lax.Precision.HIGHEST)
    return jnp.dot(y, params["reg_w"].astype(jnp.float32).T,
                   precision=jax.lax.Precision.HIGHEST)


# --------------------------------- main --------------------------------------

if __name__ == "__main__":
    key = jax.random.PRNGKey(0)

    # Small shapes consistent with the forward (NCHW input images):
    B, Cin, H, W = 2, 3, 16, 16
    Cout = 8                      # conv1 output channels
    n_images = 8                  # dataset size -> pca out / reg in features
    n_neurons = 16                # neuron_target.shape[1]

    # spatial dims after stem: conv 16->8, maxpool 8->4
    Hp, Wp = H // 4, W // 4
    flat_dim = Cout * Hp * Wp     # 128

    keys = jax.random.split(key, 5)
    x = jax.random.normal(keys[0], (B, Cin, H, W), dtype=jnp.float32)
    params = {
        "conv_w":  0.1 * jax.random.normal(keys[1], (Cout, Cin, 7, 7), jnp.float32),
        "bn_gamma": jnp.ones((Cout,), jnp.float32),
        "bn_beta":  jnp.zeros((Cout,), jnp.float32),
        "bn_mean":  0.01 * jax.random.normal(keys[2], (Cout,), jnp.float32),
        "bn_var":   jnp.ones((Cout,), jnp.float32),
        # pca_layer.weight: (n_images, flat_dim)  [Linear(in=flat_dim, out=n_images)]
        "pca_w": 0.05 * jax.random.normal(keys[3], (n_images, flat_dim), jnp.float32),
        # reg layer weight: (n_neurons, n_images) [Linear(in=n_images, out=n_neurons)]
        "reg_w": 0.05 * jax.random.normal(keys[4], (n_neurons, n_images), jnp.float32),
    }

    out = reg_mapper_forward(x, params)
    out = jax.block_until_ready(out)
    assert out.shape == (B, n_neurons), out.shape
    assert bool(jnp.all(jnp.isfinite(out)))

    ref = reference_forward(x, params)
    max_err = float(jnp.max(jnp.abs(out - ref)))
    assert bool(jnp.allclose(out, ref, rtol=5e-2, atol=5e-3)), max_err

    print("KERNEL_OK")
</pallas_src>

<mosaic_0001>
module attributes {stable_mosaic.version = 11 : i64} {
  func.func @_stem_kernel(%arg0: i32, %arg1: memref<1x4x11x11x3xf32, #tpu.memory_space<vmem>>, %arg2: memref<49x3x128xf32, #tpu.memory_space<vmem>>, %arg3: memref<1x128xf32, #tpu.memory_space<vmem>>, %arg4: memref<1x16x128xf32, #tpu.memory_space<vmem>>) attributes {dimension_semantics = [#tpu.dimension_semantics<parallel>], iteration_bounds = array<i64: 2>, scalar_prefetch = 0 : i64, scratch_operands = 0 : i64, tpu.core_type = #tpu.core_type<tc>, window_params = [{transform_indices = @transform_0, window_bounds = array<i64: 1, 4, 11, 11, 3>}, {pipeline_mode = #tpu.pipeline_mode<synchronous>, transform_indices = @transform_1, window_bounds = array<i64: 49, 3, 128>}, {pipeline_mode = #tpu.pipeline_mode<synchronous>, transform_indices = @transform_2, window_bounds = array<i64: 1, 128>}, {transform_indices = @transform_3, window_bounds = array<i64: 1, 16, 128>}]} {
    %cst = arith.constant 0.000000e+00 : f32
    %0 = vector.broadcast %cst : f32 to vector<64x128xf32>
    %c0 = arith.constant 0 : index
    %c0_0 = arith.constant 0 : index
    %c0_1 = arith.constant 0 : index
    %c0_2 = arith.constant 0 : index
    %c0_3 = arith.constant 0 : index
    %1 = vector.load %arg1[%c0, %c0_0, %c0_1, %c0_2, %c0_3] : memref<1x4x11x11x3xf32, #tpu.memory_space<vmem>>, vector<1x1x8x8x3xf32>
    %2 = vector.shape_cast %1 : vector<1x1x8x8x3xf32> to vector<8x8x3xf32>
    %3 = vector.shape_cast %2 : vector<8x8x3xf32> to vector<64x3xf32>
    %c0_4 = arith.constant 0 : index
    %c0_5 = arith.constant 0 : index
    %c0_6 = arith.constant 0 : index
    %4 = vector.load %arg2[%c0_4, %c0_5, %c0_6] : memref<49x3x128xf32, #tpu.memory_space<vmem>>, vector<1x3x128xf32>
    %5 = vector.shape_cast %4 : vector<1x3x128xf32> to vector<3x128xf32>
    %cst_7 = arith.constant dense<0.000000e+00> : vector<64x128xf32>
    %6 = tpu.matmul %3, %5, %cst_7 {dimension_numbers = #tpu.dot_dimension_numbers<[1], [0], [0], [1], [0, 0, 1, 1], [], []>} : vector<64x3xf32>, vector<3x128xf32>, vector<64x128xf32> -> vector<64x128xf32>
    %7 = arith.addf %0, %6 : vector<64x128xf32>
    %c0_8 = arith.constant 0 : index
    %c1 = arith.constant 1 : index
    %c0_9 = arith.constant 0 : index
    %c0_10 = arith.constant 0 : index
    %c0_11 = arith.constant 0 : index
    %8 = vector.load %arg1[%c0_8, %c1, %c0_9, %c0_10, %c0_11] : memref<1x4x11x11x3xf32, #tpu.memory_space<vmem>>, vector<1x1x8x8x3xf32>
    %9 = vector.shape_cast %8 : vector<1x1x8x8x3xf32> to vector<8x8x3xf32>
    %10 = vector.shape_cast %9 : vector<8x8x3xf32> to vector<64x3xf32>
    %c1_12 = arith.constant 1 : index
    %c0_13 = arith.constant 0 : index
    %c0_14 = arith.constant 0 : index
    %11 = vector.load %arg2[%c1_12, %c0_13, %c0_14] : memref<49x3x128xf32, #tpu.memory_space<vmem>>, vector<1x3x128xf32>
    %12 = vector.shape_cast %11 : vector<1x3x128xf32> to vector<3x128xf32>
    %cst_15 = arith.constant dense<0.000000e+00> : vector<64x128xf32>
    %13 = tpu.matmul %10, %12, %cst_15 {dimension_numbers = #tpu.dot_dimension_numbers<[1], [0], [0], [1], [0, 0, 1, 1], [], []>} : vector<64x3xf32>, vector<3x128xf32>, vector<64x128xf32> -> vector<64x128xf32>
    %14 = arith.addf %7, %13 : vector<64x128xf32>
    %c0_16 = arith.constant 0 : index
    %c0_17 = arith.constant 0 : index
    %c0_18 = arith.constant 0 : index
    %c1_19 = arith.constant 1 : index
    %c0_20 = arith.constant 0 : index
    %15 = vector.load %arg1[%c0_16, %c0_17, %c0_18, %c1_19, %c0_20] : memref<1x4x11x11x3xf32, #tpu.memory_space<vmem>>, vector<1x1x8x8x3xf32>
    %16 = vector.shape_cast %15 : vector<1x1x8x8x3xf32> to vector<8x8x3xf32>
    %17 = vector.shape_cast %16 : vector<8x8x3xf32> to vector<64x3xf32>
    %c2 = arith.constant 2 : index
    %c0_21 = arith.constant 0 : index
    %c0_22 = arith.constant 0 : index
    %18 = vector.load %arg2[%c2, %c0_21, %c0_22] : memref<49x3x128xf32, #tpu.memory_space<vmem>>, vector<1x3x128xf32>
    %19 = vector.shape_cast %18 : vector<1x3x128xf32> to vector<3x128xf32>
    %cst_23 = arith.constant dense<0.000000e+00> : vector<64x128xf32>
    %20 = tpu.matmul %17, %19, %cst_23 {dimension_numbers = #tpu.dot_dimension_numbers<[1], [0], [0], [1], [0, 0, 1, 1], [], []>} : vector<64x3xf32>, vector<3x128xf32>, vector<64x128xf32> -> vector<64x128xf32>
    %21 = arith.addf %14, %20 : vector<64x128xf32>
    %c0_24 = arith.constant 0 : index
    %c1_25 = arith.constant 1 : index
    %c0_26 = arith.constant 0 : index
    %c1_27 = arith.constant 1 : index
    %c0_28 = arith.constant 0 : index
    %22 = vector.load %arg1[%c0_24, %c1_25, %c0_26, %c1_27, %c0_28] : memref<1x4x11x11x3xf32, #tpu.memory_space<vmem>>, vector<1x1x8x8x3xf32>
    %23 = vector.shape_cast %22 : vector<1x1x8x8x3xf32> to vector<8x8x3xf32>
    %24 = vector.shape_cast %23 : vector<8x8x3xf32> to vector<64x3xf32>
    %c3 = arith.constant 3 : index
    %c0_29 = arith.constant 0 : index
    %c0_30 = arith.constant 0 : index
    %25 = vector.load %arg2[%c3, %c0_29, %c0_30] : memref<49x3x128xf32, #tpu.memory_space<vmem>>, vector<1x3x128xf32>
    %26 = vector.shape_cast %25 : vector<1x3x128xf32> to vector<3x128xf32>
    %cst_31 = arith.constant dense<0.000000e+00> : vector<64x128xf32>
    %27 = tpu.matmul %24, %26, %cst_31 {dimension_numbers = #tpu.dot_dimension_numbers<[1], [0], [0], [1], [0, 0, 1, 1], [], []>} : vector<64x3xf32>, vector<3x128xf32>, vector<64x128xf32> -> vector<64x128xf32>
    %28 = arith.addf %21, %27 : vector<64x128xf32>
    %c0_32 = arith.constant 0 : index
    %c0_33 = arith.constant 0 : index
    %c0_34 = arith.constant 0 : index
    %c2_35 = arith.constant 2 : index
    %c0_36 = arith.constant 0 : index
    %29 = vector.load %arg1[%c0_32, %c0_33, %c0_34, %c2_35, %c0_36] : memref<1x4x11x11x3xf32, #tpu.memory_space<vmem>>, vector<1x1x8x8x3xf32>
    %30 = vector.shape_cast %29 : vector<1x1x8x8x3xf32> to vector<8x8x3xf32>
    %31 = vector.shape_cast %30 : vector<8x8x3xf32> to vector<64x3xf32>
    %c4 = arith.constant 4 : index
    %c0_37 = arith.constant 0 : index
    %c0_38 = arith.constant 0 : index
    %32 = vector.load %arg2[%c4, %c0_37, %c0_38] : memref<49x3x128xf32, #tpu.memory_space<vmem>>, vector<1x3x128xf32>
    %33 = vector.shape_cast %32 : vector<1x3x128xf32> to vector<3x128xf32>
    %cst_39 = arith.constant dense<0.000000e+00> : vector<64x128xf32>
    %34 = tpu.matmul %31, %33, %cst_39 {dimension_numbers = #tpu.dot_dimension_numbers<[1], [0], [0], [1], [0, 0, 1, 1], [], []>} : vector<64x3xf32>, vector<3x128xf32>, vector<64x128xf32> -> vector<64x128xf32>
    %35 = arith.addf %28, %34 : vector<64x128xf32>
    %c0_40 = arith.constant 0 : index
    %c1_41 = arith.constant 1 : index
    %c0_42 = arith.constant 0 : index
    %c2_43 = arith.constant 2 : index
    %c0_44 = arith.constant 0 : index
    %36 = vector.load %arg1[%c0_40, %c1_41, %c0_42, %c2_43, %c0_44] : memref<1x4x11x11x3xf32, #tpu.memory_space<vmem>>, vector<1x1x8x8x3xf32>
    %37 = vector.shape_cast %36 : vector<1x1x8x8x3xf32> to vector<8x8x3xf32>
    %38 = vector.shape_cast %37 : vector<8x8x3xf32> to vector<64x3xf32>
    %c5 = arith.constant 5 : index
    %c0_45 = arith.constant 0 : index
    %c0_46 = arith.constant 0 : index
    %39 = vector.load %arg2[%c5, %c0_45, %c0_46] : memref<49x3x128xf32, #tpu.memory_space<vmem>>, vector<1x3x128xf32>
    %40 = vector.shape_cast %39 : vector<1x3x128xf32> to vector<3x128xf32>
    %cst_47 = arith.constant dense<0.000000e+00> : vector<64x128xf32>
    %41 = tpu.matmul %38, %40, %cst_47 {dimension_numbers = #tpu.dot_dimension_numbers<[1], [0], [0], [1], [0, 0, 1, 1], [], []>} : vector<64x3xf32>, vector<3x128xf32>, vector<64x128xf32> -> vector<64x128xf32>
    %42 = arith.addf %35, %41 : vector<64x128xf32>
    %c0_48 = arith.constant 0 : index
    %c0_49 = arith.constant 0 : index
    %c0_50 = arith.constant 0 : index
    %c3_51 = arith.constant 3 : index
    %c0_52 = arith.constant 0 : index
    %43 = vector.load %arg1[%c0_48, %c0_49, %c0_50, %c3_51, %c0_52] : memref<1x4x11x11x3xf32, #tpu.memory_space<vmem>>, vector<1x1x8x8x3xf32>
    %44 = vector.shape_cast %43 : vector<1x1x8x8x3xf32> to vector<8x8x3xf32>
    %45 = vector.shape_cast %44 : vector<8x8x3xf32> to vector<64x3xf32>
    %c6 = arith.constant 6 : index
    %c0_53 = arith.constant 0 : index
    %c0_54 = arith.constant 0 : index
    %46 = vector.load %arg2[%c6, %c0_53, %c0_54] : memref<49x3x128xf32, #tpu.memory_space<vmem>>, vector<1x3x128xf32>
    %47 = vector.shape_cast %46 : vector<1x3x128xf32> to vector<3x128xf32>
    %cst_55 = arith.constant dense<0.000000e+00> : vector<64x128xf32>
    %48 = tpu.matmul %45, %47, %cst_55 {dimension_numbers = #tpu.dot_dimension_numbers<[1], [0], [0], [1], [0, 0, 1, 1], [], []>} : vector<64x3xf32>, vector<3x128xf32>, vector<64x128xf32> -> vector<64x128xf32>
    %49 = arith.addf %42, %48 : vector<64x128xf32>
    %c0_56 = arith.constant 0 : index
    %c2_57 = arith.constant 2 : index
    %c0_58 = arith.constant 0 : index
    %c0_59 = arith.constant 0 : index
    %c0_60 = arith.constant 0 : index
    %50 = vector.load %arg1[%c0_56, %c2_57, %c0_58, %c0_59, %c0_60] : memref<1x4x11x11x3xf32, #tpu.memory_space<vmem>>, vector<1x1x8x8x3xf32>
    %51 = vector.shape_cast %50 : vector<1x1x8x8x3xf32> to vector<8x8x3xf32>
    %52 = vector.shape_cast %51 : vector<8x8x3xf32> to vector<64x3xf32>
    %c7 = arith.constant 7 : index
    %c0_61 = arith.constant 0 : index
    %c0_62 = arith.constant 0 : index
    %53 = vector.load %arg2[%c7, %c0_61, %c0_62] : memref<49x3x128xf32, #tpu.memory_space<vmem>>, vector<1x3x128xf32>
    %54 = vector.shape_cast %53 : vector<1x3x128xf32> to vector<3x128xf32>
    %cst_63 = arith.constant dense<0.000000e+00> : vector<64x128xf32>
    %55 = tpu.matmul %52, %54, %cst_63 {dimension_numbers = #tpu.dot_dimension_numbers<[1], [0], [0], [1], [0, 0, 1, 1], [], []>} : vector<64x3xf32>, vector<3x128xf32>, vector<64x128xf32> -> vector<64x128xf32>
    %56 = arith.addf %49, %55 : vector<64x128xf32>
    %c0_64 = arith.constant 0 : index
    %c3_65 = arith.constant 3 : index
    %c0_66 = arith.constant 0 : index
    %c0_67 = arith.constant 0 : index
    %c0_68 = arith.constant 0 : index
    %57 = vector.load %arg1[%c0_64, %c3_65, %c0_66, %c0_67, %c0_68] : memref<1x4x11x11x3xf32, #tpu.memory_space<vmem>>, vector<1x1x8x8x3xf32>
    %58 = vector.shape_cast %57 : vector<1x1x8x8x3xf32> to vector<8x8x3xf32>
    %59 = vector.shape_cast %58 : vector<8x8x3xf32> to vector<64x3xf32>
    %c8 = arith.constant 8 : index
    %c0_69 = arith.constant 0 : index
    %c0_70 = arith.constant 0 : index
    %60 = vector.load %arg2[%c8, %c0_69, %c0_70] : memref<49x3x128xf32, #tpu.memory_space<vmem>>, vector<1x3x128xf32>
    %61 = vector.shape_cast %60 : vector<1x3x128xf32> to vector<3x128xf32>
    %cst_71 = arith.constant dense<0.000000e+00> : vector<64x128xf32>
    %62 = tpu.matmul %59, %61, %cst_71 {dimension_numbers = #tpu.dot_dimension_numbers<[1], [0], [0], [1], [0, 0, 1, 1], [], []>} : vector<64x3xf32>, vector<3x128xf32>, vector<64x128xf32> -> vector<64x128xf32>
    %63 = arith.addf %56, %62 : vector<64x128xf32>
    %c0_72 = arith.constant 0 : index
    %c2_73 = arith.constant 2 : index
    %c0_74 = arith.constant 0 : index
    %c1_75 = arith.constant 1 : index
    %c0_76 = arith.constant 0 : index
    %64 = vector.load %arg1[%c0_72, %c2_73, %c0_74, %c1_75, %c0_76] : memref<1x4x11x11x3xf32, #tpu.memory_space<vmem>>, vector<1x1x8x8x3xf32>
    %65 = vector.shape_cast %64 : vector<1x1x8x8x3xf32> to vector<8x8x3xf32>
    %66 = vector.shape_cast %65 : vector<8x8x3xf32> to vector<64x3xf32>
    %c9 = arith.constant 9 : index
    %c0_77 = arith.constant 0 : index
    %c0_78 = arith.constant 0 : index
    %67 = vector.load %arg2[%c9, %c0_77, %c0_78] : memref<49x3x128xf32, #tpu.memory_space<vmem>>, vector<1x3x128xf32>
    %68 = vector.shape_cast %67 : vector<1x3x128xf32> to vector<3x128xf32>
    %cst_79 = arith.constant dense<0.000000e+00> : vector<64x128xf32>
    %69 = tpu.matmul %66, %68, %cst_79 {dimension_numbers = #tpu.dot_dimension_numbers<[1], [0], [0], [1], [0, 0, 1, 1], [], []>} : vector<64x3xf32>, vector<3x128xf32>, vector<64x128xf32> -> vector<64x128xf32>
    %70 = arith.addf %63, %69 : vector<64x128xf32>
    %c0_80 = arith.constant 0 : index
    %c3_81 = arith.constant 3 : index
    %c0_82 = arith.constant 0 : index
    %c1_83 = arith.constant 1 : index
    %c0_84 = arith.constant 0 : index
    %71 = vector.load %arg1[%c0_80, %c3_81, %c0_82, %c1_83, %c0_84] : memref<1x4x11x11x3xf32, #tpu.memory_space<vmem>>, vector<1x1x8x8x3xf32>
    %72 = vector.shape_cast %71 : vector<1x1x8x8x3xf32> to vector<8x8x3xf32>
    %73 = vector.shape_cast %72 : vector<8x8x3xf32> to vector<64x3xf32>
    %c10 = arith.constant 10 : index
    %c0_85 = arith.constant 0 : index
    %c0_86 = arith.constant 0 : index
    %74 = vector.load %arg2[%c10, %c0_85, %c0_86] : memref<49x3x128xf32, #tpu.memory_space<vmem>>, vector<1x3x128xf32>
    %75 = vector.shape_cast %74 : vector<1x3x128xf32> to vector<3x128xf32>
    %cst_87 = arith.constant dense<0.000000e+00> : vector<64x128xf32>
    %76 = tpu.matmul %73, %75, %cst_87 {dimension_numbers = #tpu.dot_dimension_numbers<[1], [0], [0], [1], [0, 0, 1, 1], [], []>} : vector<64x3xf32>, vector<3x128xf32>, vector<64x128xf32> -> vector<64x128xf32>
    %77 = arith.addf %70, %76 : vector<64x128xf32>
    %c0_88 = arith.constant 0 : index
    %c2_89 = arith.constant 2 : index
    %c0_90 = arith.constant 0 : index
    %c2_91 = arith.constant 2 : index
    %c0_92 = arith.constant 0 : index
    %78 = vector.load %arg1[%c0_88, %c2_89, %c0_90, %c2_91, %c0_92] : memref<1x4x11x11x3xf32, #tpu.memory_space<vmem>>, vector<1x1x8x8x3xf32>
    %79 = vector.shape_cast %78 : vector<1x1x8x8x3xf32> to vector<8x8x3xf32>
    %80 = vector.shape_cast %79 : vector<8x8x3xf32> to vector<64x3xf32>
    %c11 = arith.constant 11 : index
    %c0_93 = arith.constant 0 : index
    %c0_94 = arith.constant 0 : index
    %81 = vector.load %arg2[%c11, %c0_93, %c0_94] : memref<49x3x128xf32, #tpu.memory_space<vmem>>, vector<1x3x128xf32>
    %82 = vector.shape_cast %81 : vector<1x3x128xf32> to vector<3x128xf32>
    %cst_95 = arith.constant dense<0.000000e+00> : vector<64x128xf32>
    %83 = tpu.matmul %80, %82, %cst_95 {dimension_numbers = #tpu.dot_dimension_numbers<[1], [0], [0], [1], [0, 0, 1, 1], [], []>} : vector<64x3xf32>, vector<3x128xf32>, vector<64x128xf32> -> vector<64x128xf32>
    %84 = arith.addf %77, %83 : vector<64x128xf32>
    %c0_96 = arith.constant 0 : index
    %c3_97 = arith.constant 3 : index
    %c0_98 = arith.constant 0 : index
    %c2_99 = arith.constant 2 : index
    %c0_100 = arith.constant 0 : index
    %85 = vector.load %arg1[%c0_96, %c3_97, %c0_98, %c2_99, %c0_100] : memref<1x4x11x11x3xf32, #tpu.memory_space<vmem>>, vector<1x1x8x8x3xf32>
    %86 = vector.shape_cast %85 : vector<1x1x8x8x3xf32> to vector<8x8x3xf32>
    %87 = vector.shape_cast %86 : vector<8x8x3xf32> to vector<64x3xf32>
    %c12 = arith.constant 12 : index
    %c0_101 = arith.constant 0 : index
    %c0_102 = arith.constant 0 : index
    %88 = vector.load %arg2[%c12, %c0_101, %c0_102] : memref<49x3x128xf32, #tpu.memory_space<vmem>>, vector<1x3x128xf32>
    %89 = vector.shape_cast %88 : vector<1x3x128xf32> to vector<3x128xf32>
    %cst_103 = arith.constant dense<0.000000e+00> : vector<64x128xf32>
    %90 = tpu.matmul %87, %89, %cst_103 {dimension_numbers = #tpu.dot_dimension_numbers<[1], [0], [0], [1], [0, 0, 1, 1], [], []>} : vector<64x3xf32>, vector<3x128xf32>, vector<64x128xf32> -> vector<64x128xf32>
    %91 = arith.addf %84, %90 : vector<64x128xf32>
    %c0_104 = arith.constant 0 : index
    %c2_105 = arith.constant 2 : index
    %c0_106 = arith.constant 0 : index
    %c3_107 = arith.constant 3 : index
    %c0_108 = arith.constant 0 : index
    %92 = vector.load %arg1[%c0_104, %c2_105, %c0_106, %c3_107, %c0_108] : memref<1x4x11x11x3xf32, #tpu.memory_space<vmem>>, vector<1x1x8x8x3xf32>
    %93 = vector.shape_cast %92 : vector<1x1x8x8x3xf32> to vector<8x8x3xf32>
    %94 = vector.shape_cast %93 : vector<8x8x3xf32> to vector<64x3xf32>
    %c13 = arith.constant 13 : index
    %c0_109 = arith.constant 0 : index
    %c0_110 = arith.constant 0 : index
    %95 = vector.load %arg2[%c13, %c0_109, %c0_110] : memref<49x3x128xf32, #tpu.memory_space<vmem>>, vector<1x3x128xf32>
    %96 = vector.shape_cast %95 : vector<1x3x128xf32> to vector<3x128xf32>
    %cst_111 = arith.constant dense<0.000000e+00> : vector<64x128xf32>
    %97 = tpu.matmul %94, %96, %cst_111 {dimension_numbers = #tpu.dot_dimension_numbers<[1], [0], [0], [1], [0, 0, 1, 1], [], []>} : vector<64x3xf32>, vector<3x128xf32>, vector<64x128xf32> -> vector<64x128xf32>
    %98 = arith.addf %91, %97 : vector<64x128xf32>
    %c0_112 = arith.constant 0 : index
    %c0_113 = arith.constant 0 : index
    %c1_114 = arith.constant 1 : index
    %c0_115 = arith.constant 0 : index
    %c0_116 = arith.constant 0 : index
    %99 = vector.load %arg1[%c0_112, %c0_113, %c1_114, %c0_115, %c0_116] : memref<1x4x11x11x3xf32, #tpu.memory_space<vmem>>, vector<1x1x8x8x3xf32>
    %100 = vector.shape_cast %99 : vector<1x1x8x8x3xf32> to vector<8x8x3xf32>
    %101 = vector.shape_cast %100 : vector<8x8x3xf32> to vector<64x3xf32>
    %c14 = arith.constant 14 : index
    %c0_117 = arith.constant 0 : index
    %c0_118 = arith.constant 0 : index
    %102 = vector.load %arg2[%c14, %c0_117, %c0_118] : memref<49x3x128xf32, #tpu.memory_space<vmem>>, vector<1x3x128xf32>
    %103 = vector.shape_cast %102 : vector<1x3x128xf32> to vector<3x128xf32>
    %cst_119 = arith.constant dense<0.000000e+00> : vector<64x128xf32>
    %104 = tpu.matmul %101, %103, %cst_119 {dimension_numbers = #tpu.dot_dimension_numbers<[1], [0], [0], [1], [0, 0, 1, 1], [], []>} : vector<64x3xf32>, vector<3x128xf32>, vector<64x128xf32> -> vector<64x128xf32>
    %105 = arith.addf %98, %104 : vector<64x128xf32>
    %c0_120 = arith.constant 0 : index
    %c1_121 = arith.constant 1 : index
    %c1_122 = arith.constant 1 : index
    %c0_123 = arith.constant 0 : index
    %c0_124 = arith.constant 0 : index
    %106 = vector.load %arg1[%c0_120, %c1_121, %c1_122, %c0_123, %c0_124] : memref<1x4x11x11x3xf32, #tpu.memory_space<vmem>>, vector<1x1x8x8x3xf32>
    %107 = vector.shape_cast %106 : vector<1x1x8x8x3xf32> to vector<8x8x3xf32>
    %108 = vector.shape_cast %107 : vector<8x8x3xf32> to vector<64x3xf32>
    %c15 = arith.constant 15 : index
    %c0_125 = arith.constant 0 : index
    %c0_126 = arith.constant 0 : index
    %109 = vector.load %arg2[%c15, %c0_125, %c0_126] : memref<49x3x128xf32, #tpu.memory_space<vmem>>, vector<1x3x128xf32>
    %110 = vector.shape_cast %109 : vector<1x3x128xf32> to vector<3x128xf32>
    %cst_127 = arith.constant dense<0.000000e+00> : vector<64x128xf32>
    %111 = tpu.matmul %108, %110, %cst_127 {dimension_numbers = #tpu.dot_dimension_numbers<[1], [0], [0], [1], [0, 0, 1, 1], [], []>} : vector<64x3xf32>, vector<3x128xf32>, vector<64x128xf32> -> vector<64x128xf32>
    %112 = arith.addf %105, %111 : vector<64x128xf32>
    %c0_128 = arith.constant 0 : index
    %c0_129 = arith.constant 0 : index
    %c1_130 = arith.constant 1 : index
    %c1_131 = arith.constant 1 : index
    %c0_132 = arith.constant 0 : index
    %113 = vector.load %arg1[%c0_128, %c0_129, %c1_130, %c1_131, %c0_132] : memref<1x4x11x11x3xf32, #tpu.memory_space<vmem>>, vector<1x1x8x8x3xf32>
    %114 = vector.shape_cast %113 : vector<1x1x8x8x3xf32> to vector<8x8x3xf32>
    %115 = vector.shape_cast %114 : vector<8x8x3xf32> to vector<64x3xf32>
    %c16 = arith.constant 16 : index
    %c0_133 = arith.constant 0 : index
    %c0_134 = arith.constant 0 : index
    %116 = vector.load %arg2[%c16, %c0_133, %c0_134] : memref<49x3x128xf32, #tpu.memory_space<vmem>>, vector<1x3x128xf32>
    %117 = vector.shape_cast %116 : vector<1x3x128xf32> to vector<3x128xf32>
    %cst_135 = arith.constant dense<0.000000e+00> : vector<64x128xf32>
    %118 = tpu.matmul %115, %117, %cst_135 {dimension_numbers = #tpu.dot_dimension_numbers<[1], [0], [0], [1], [0, 0, 1, 1], [], []>} : vector<64x3xf32>, vector<3x128xf32>, vector<64x128xf32> -> vector<64x128xf32>
    %119 = arith.addf %112, %118 : vector<64x128xf32>
    %c0_136 = arith.constant 0 : index
    %c1_137 = arith.constant 1 : index
    %c1_138 = arith.constant 1 : index
    %c1_139 = arith.constant 1 : index
    %c0_140 = arith.constant 0 : index
    %120 = vector.load %arg1[%c0_136, %c1_137, %c1_138, %c1_139, %c0_140] : memref<1x4x11x11x3xf32, #tpu.memory_space<vmem>>, vector<1x1x8x8x3xf32>
    %121 = vector.shape_cast %120 : vector<1x1x8x8x3xf32> to vector<8x8x3xf32>
    %122 = vector.shape_cast %121 : vector<8x8x3xf32> to vector<64x3xf32>
    %c17 = arith.constant 17 : index
    %c0_141 = arith.constant 0 : index
    %c0_142 = arith.constant 0 : index
    %123 = vector.load %arg2[%c17, %c0_141, %c0_142] : memref<49x3x128xf32, #tpu.memory_space<vmem>>, vector<1x3x128xf32>
    %124 = vector.shape_cast %123 : vector<1x3x128xf32> to vector<3x128xf32>
    %cst_143 = arith.constant dense<0.000000e+00> : vector<64x128xf32>
    %125 = tpu.matmul %122, %124, %cst_143 {dimension_numbers = #tpu.dot_dimension_numbers<[1], [0], [0], [1], [0, 0, 1, 1], [], []>} : vector<64x3xf32>, vector<3x128xf32>, vector<64x128xf32> -> vector<64x128xf32>
    %126 = arith.addf %119, %125 : vector<64x128xf32>
    %c0_144 = arith.constant 0 : index
    %c0_145 = arith.constant 0 : index
    %c1_146 = arith.constant 1 : index
    %c2_147 = arith.constant 2 : index
    %c0_148 = arith.constant 0 : index
    %127 = vector.load %arg1[%c0_144, %c0_145, %c1_146, %c2_147, %c0_148] : memref<1x4x11x11x3xf32, #tpu.memory_space<vmem>>, vector<1x1x8x8x3xf32>
    %128 = vector.shape_cast %127 : vector<1x1x8x8x3xf32> to vector<8x8x3xf32>
    %129 = vector.shape_cast %128 : vector<8x8x3xf32> to vector<64x3xf32>
    %c18 = arith.constant 18 : index
    %c0_149 = arith.constant 0 : index
    %c0_150 = arith.constant 0 : index
    %130 = vector.load %arg2[%c18, %c0_149, %c0_150] : memref<49x3x128xf32, #tpu.memory_space<vmem>>, vector<1x3x128xf32>
    %131 = vector.shape_cast %130 : vector<1x3x128xf32> to vector<3x128xf32>
    %cst_151 = arith.constant dense<0.000000e+00> : vector<64x128xf32>
    %132 = tpu.matmul %129, %131, %cst_151 {dimension_numbers = #tpu.dot_dimension_numbers<[1], [0], [0], [1], [0, 0, 1, 1], [], []>} : vector<64x3xf32>, vector<3x128xf32>, vector<64x128xf32> -> vector<64x128xf32>
    %133 = arith.addf %126, %132 : vector<64x128xf32>
    %c0_152 = arith.constant 0 : index
    %c1_153 = arith.constant 1 : index
    %c1_154 = arith.constant 1 : index
    %c2_155 = arith.constant 2 : index
    %c0_156 = arith.constant 0 : index
    %134 = vector.load %arg1[%c0_152, %c1_153, %c1_154, %c2_155, %c0_156] : memref<1x4x11x11x3xf32, #tpu.memory_space<vmem>>, vector<1x1x8x8x3xf32>
    %135 = vector.shape_cast %134 : vector<1x1x8x8x3xf32> to vector<8x8x3xf32>
    %136 = vector.shape_cast %135 : vector<8x8x3xf32> to vector<64x3xf32>
    %c19 = arith.constant 19 : index
    %c0_157 = arith.constant 0 : index
    %c0_158 = arith.constant 0 : index
    %137 = vector.load %arg2[%c19, %c0_157, %c0_158] : memref<49x3x128xf32, #tpu.memory_space<vmem>>, vector<1x3x128xf32>
    %138 = vector.shape_cast %137 : vector<1x3x128xf32> to vector<3x128xf32>
    %cst_159 = arith.constant dense<0.000000e+00> : vector<64x128xf32>
    %139 = tpu.matmul %136, %138, %cst_159 {dimension_numbers = #tpu.dot_dimension_numbers<[1], [0], [0], [1], [0, 0, 1, 1], [], []>} : vector<64x3xf32>, vector<3x128xf32>, vector<64x128xf32> -> vector<64x128xf32>
    %140 = arith.addf %133, %139 : vector<64x128xf32>
    %c0_160 = arith.constant 0 : index
    %c0_161 = arith.constant 0 : index
    %c1_162 = arith.constant 1 : index
    %c3_163 = arith.constant 3 : index
    %c0_164 = arith.constant 0 : index
    %141 = vector.load %arg1[%c0_160, %c0_161, %c1_162, %c3_163, %c0_164] : memref<1x4x11x11x3xf32, #tpu.memory_space<vmem>>, vector<1x1x8x8x3xf32>
    %142 = vector.shape_cast %141 : vector<1x1x8x8x3xf32> to vector<8x8x3xf32>
    %143 = vector.shape_cast %142 : vector<8x8x3xf32> to vector<64x3xf32>
    %c20 = arith.constant 20 : index
    %c0_165 = arith.constant 0 : index
    %c0_166 = arith.constant 0 : index
    %144 = vector.load %arg2[%c20, %c0_165, %c0_166] : memref<49x3x128xf32, #tpu.memory_space<vmem>>, vector<1x3x128xf32>
    %145 = vector.shape_cast %144 : vector<1x3x128xf32> to vector<3x128xf32>
    %cst_167 = arith.constant dense<0.000000e+00> : vector<64x128xf32>
    %146 = tpu.matmul %143, %145, %cst_167 {dimension_numbers = #tpu.dot_dimension_numbers<[1], [0], [0], [1], [0, 0, 1, 1], [], []>} : vector<64x3xf32>, vector<3x128xf32>, vector<64x128xf32> -> vector<64x128xf32>
    %147 = arith.addf %140, %146 : vector<64x128xf32>
    %c0_168 = arith.constant 0 : index
    %c2_169 = arith.constant 2 : index
    %c1_170 = arith.constant 1 : index
    %c0_171 = arith.constant 0 : index
    %c0_172 = arith.constant 0 : index
    %148 = vector.load %arg1[%c0_168, %c2_169, %c1_170, %c0_171, %c0_172] : memref<1x4x11x11x3xf32, #tpu.memory_space<vmem>>, vector<1x1x8x8x3xf32>
    %149 = vector.shape_cast %148 : vector<1x1x8x8x3xf32> to vector<8x8x3xf32>
    %150 = vector.shape_cast %149 : vector<8x8x3xf32> to vector<64x3xf32>
    %c21 = arith.constant 21 : index
    %c0_173 = arith.constant 0 : index
    %c0_174 = arith.constant 0 : index
    %151 = vector.load %arg2[%c21, %c0_173, %c0_174] : memref<49x3x128xf32, #tpu.memory_space<vmem>>, vector<1x3x128xf32>
    %152 = vector.shape_cast %151 : vector<1x3x128xf32> to vector<3x128xf32>
    %cst_175 = arith.constant dense<0.000000e+00> : vector<64x128xf32>
    %153 = tpu.matmul %150, %152, %cst_175 {dimension_numbers = #tpu.dot_dimension_numbers<[1], [0], [0], [1], [0, 0, 1, 1], [], []>} : vector<64x3xf32>, vector<3x128xf32>, vector<64x128xf32> -> vector<64x128xf32>
    %154 = arith.addf %147, %153 : vector<64x128xf32>
    %c0_176 = arith.constant 0 : index
    %c3_177 = arith.constant 3 : index
    %c1_178 = arith.constant 1 : index
    %c0_179 = arith.constant 0 : index
    %c0_180 = arith.constant 0 : index
    %155 = vector.load %arg1[%c0_176, %c3_177, %c1_178, %c0_179, %c0_180] : memref<1x4x11x11x3xf32, #tpu.memory_space<vmem>>, vector<1x1x8x8x3xf32>
    %156 = vector.shape_cast %155 : vector<1x1x8x8x3xf32> to vector<8x8x3xf32>
    %157 = vector.shape_cast %156 : vector<8x8x3xf32> to vector<64x3xf32>
    %c22 = arith.constant 22 : index
    %c0_181 = arith.constant 0 : index
    %c0_182 = arith.constant 0 : index
    %158 = vector.load %arg2[%c22, %c0_181, %c0_182] : memref<49x3x128xf32, #tpu.memory_space<vmem>>, vector<1x3x128xf32>
    %159 = vector.shape_cast %158 : vector<1x3x128xf32> to vector<3x128xf32>
    %cst_183 = arith.constant dense<0.000000e+00> : vector<64x128xf32>
    %160 = tpu.matmul %157, %159, %cst_183 {dimension_numbers = #tpu.dot_dimension_numbers<[1], [0], [0], [1], [0, 0, 1, 1], [], []>} : vector<64x3xf32>, vector<3x128xf32>, vector<64x128xf32> -> vector<64x128xf32>
    %161 = arith.addf %154, %160 : vector<64x128xf32>
    %c0_184 = arith.constant 0 : index
    %c2_185 = arith.constant 2 : index
    %c1_186 = arith.constant 1 : index
    %c1_187 = arith.constant 1 : index
    %c0_188 = arith.constant 0 : index
    %162 = vector.load %arg1[%c0_184, %c2_185, %c1_186, %c1_187, %c0_188] : memref<1x4x11x11x3xf32, #tpu.memory_space<vmem>>, vector<1x1x8x8x3xf32>
    %163 = vector.shape_cast %162 : vector<1x1x8x8x3xf32> to vector<8x8x3xf32>
    %164 = vector.shape_cast %163 : vector<8x8x3xf32> to vector<64x3xf32>
    %c23 = arith.constant 23 : index
    %c0_189 = arith.constant 0 : index
    %c0_190 = arith.constant 0 : index
    %165 = vector.load %arg2[%c23, %c0_189, %c0_190] : memref<49x3x128xf32, #tpu.memory_space<vmem>>, vector<1x3x128xf32>
    %166 = vector.shape_cast %165 : vector<1x3x128xf32> to vector<3x128xf32>
    %cst_191 = arith.constant dense<0.000000e+00> : vector<64x128xf32>
    %167 = tpu.matmul %164, %166, %cst_191 {dimension_numbers = #tpu.dot_dimension_numbers<[1], [0], [0], [1], [0, 0, 1, 1], [], []>} : vector<64x3xf32>, vector<3x128xf32>, vector<64x128xf32> -> vector<64x128xf32>
    %168 = arith.addf %161, %167 : vector<64x128xf32>
    %c0_192 = arith.constant 0 : index
    %c3_193 = arith.constant 3 : index
    %c1_194 = arith.constant 1 : index
    %c1_195 = arith.constant 1 : index
    %c0_196 = arith.constant 0 : index
    %169 = vector.load %arg1[%c0_192, %c3_193, %c1_194, %c1_195, %c0_196] : memref<1x4x11x11x3xf32, #tpu.memory_space<vmem>>, vector<1x1x8x8x3xf32>
    %170 = vector.shape_cast %169 : vector<1x1x8x8x3xf32> to vector<8x8x3xf32>
    %171 = vector.shape_cast %170 : vector<8x8x3xf32> to vector<64x3xf32>
    %c24 = arith.constant 24 : index
    %c0_197 = arith.constant 0 : index
    %c0_198 = arith.constant 0 : index
    %172 = vector.load %arg2[%c24, %c0_197, %c0_198] : memref<49x3x128xf32, #tpu.memory_space<vmem>>, vector<1x3x128xf32>
    %173 = vector.shape_cast %172 : vector<1x3x128xf32> to vector<3x128xf32>
    %cst_199 = arith.constant dense<0.000000e+00> : vector<64x128xf32>
    %174 = tpu.matmul %171, %173, %cst_199 {dimension_numbers = #tpu.dot_dimension_numbers<[1], [0], [0], [1], [0, 0, 1, 1], [], []>} : vector<64x3xf32>, vector<3x128xf32>, vector<64x128xf32> -> vector<64x128xf32>
    %175 = arith.addf %168, %174 : vector<64x128xf32>
    %c0_200 = arith.constant 0 : index
    %c2_201 = arith.constant 2 : index
    %c1_202 = arith.constant 1 : index
    %c2_203 = arith.constant 2 : index
    %c0_204 = arith.constant 0 : index
    %176 = vector.load %arg1[%c0_200, %c2_201, %c1_202, %c2_203, %c0_204] : memref<1x4x11x11x3xf32, #tpu.memory_space<vmem>>, vector<1x1x8x8x3xf32>
    %177 = vector.shape_cast %176 : vector<1x1x8x8x3xf32> to vector<8x8x3xf32>
    %178 = vector.shape_cast %177 : vector<8x8x3xf32> to vector<64x3xf32>
    %c25 = arith.constant 25 : index
    %c0_205 = arith.constant 0 : index
    %c0_206 = arith.constant 0 : index
    %179 = vector.load %arg2[%c25, %c0_205, %c0_206] : memref<49x3x128xf32, #tpu.memory_space<vmem>>, vector<1x3x128xf32>
    %180 = vector.shape_cast %179 : vector<1x3x128xf32> to vector<3x128xf32>
    %cst_207 = arith.constant dense<0.000000e+00> : vector<64x128xf32>
    %181 = tpu.matmul %178, %180, %cst_207 {dimension_numbers = #tpu.dot_dimension_numbers<[1], [0], [0], [1], [0, 0, 1, 1], [], []>} : vector<64x3xf32>, vector<3x128xf32>, vector<64x128xf32> -> vector<64x128xf32>
    %182 = arith.addf %175, %181 : vector<64x128xf32>
    %c0_208 = arith.constant 0 : index
    %c3_209 = arith.constant 3 : index
    %c1_210 = arith.constant 1 : index
    %c2_211 = arith.constant 2 : index
    %c0_212 = arith.constant 0 : index
    %183 = vector.load %arg1[%c0_208, %c3_209, %c1_210, %c2_211, %c0_212] : memref<1x4x11x11x3xf32, #tpu.memory_space<vmem>>, vector<1x1x8x8x3xf32>
    %184 = vector.shape_cast %183 : vector<1x1x8x8x3xf32> to vector<8x8x3xf32>
    %185 = vector.shape_cast %184 : vector<8x8x3xf32> to vector<64x3xf32>
    %c26 = arith.constant 26 : index
    %c0_213 = arith.constant 0 : index
    %c0_214 = arith.constant 0 : index
    %186 = vector.load %arg2[%c26, %c0_213, %c0_214] : memref<49x3x128xf32, #tpu.memory_space<vmem>>, vector<1x3x128xf32>
    %187 = vector.shape_cast %186 : vector<1x3x128xf32> to vector<3x128xf32>
    %cst_215 = arith.constant dense<0.000000e+00> : vector<64x128xf32>
    %188 = tpu.matmul %185, %187, %cst_215 {dimension_numbers = #tpu.dot_dimension_numbers<[1], [0], [0], [1], [0, 0, 1, 1], [], []>} : vector<64x3xf32>, vector<3x128xf32>, vector<64x128xf32> -> vector<64x128xf32>
    %189 = arith.addf %182, %188 : vector<64x128xf32>
    %c0_216 = arith.constant 0 : index
    %c2_217 = arith.constant 2 : index
    %c1_218 = arith.constant 1 : index
    %c3_219 = arith.constant 3 : index
    %c0_220 = arith.constant 0 : index
    %190 = vector.load %arg1[%c0_216, %c2_217, %c1_218, %c3_219, %c0_220] : memref<1x4x11x11x3xf32, #tpu.memory_space<vmem>>, vector<1x1x8x8x3xf32>
    %191 = vector.shape_cast %190 : vector<1x1x8x8x3xf32> to vector<8x8x3xf32>
    %192 = vector.shape_cast %191 : vector<8x8x3xf32> to vector<64x3xf32>
    %c27 = arith.constant 27 : index
    %c0_221 = arith.constant 0 : index
    %c0_222 = arith.constant 0 : index
    %193 = vector.load %arg2[%c27, %c0_221, %c0_222] : memref<49x3x128xf32, #tpu.memory_space<vmem>>, vector<1x3x128xf32>
    %194 = vector.shape_cast %193 : vector<1x3x128xf32> to vector<3x128xf32>
    %cst_223 = arith.constant dense<0.000000e+00> : vector<64x128xf32>
    %195 = tpu.matmul %192, %194, %cst_223 {dimension_numbers = #tpu.dot_dimension_numbers<[1], [0], [0], [1], [0, 0, 1, 1], [], []>} : vector<64x3xf32>, vector<3x128xf32>, vector<64x128xf32> -> vector<64x128xf32>
    %196 = arith.addf %189, %195 : vector<64x128xf32>
    %c0_224 = arith.constant 0 : index
    %c0_225 = arith.constant 0 : index
    %c2_226 = arith.constant 2 : index
    %c0_227 = arith.constant 0 : index
    %c0_228 = arith.constant 0 : index
    %197 = vector.load %arg1[%c0_224, %c0_225, %c2_226, %c0_227, %c0_228] : memref<1x4x11x11x3xf32, #tpu.memory_space<vmem>>, vector<1x1x8x8x3xf32>
    %198 = vector.shape_cast %197 : vector<1x1x8x8x3xf32> to vector<8x8x3xf32>
    %199 = vector.shape_cast %198 : vector<8x8x3xf32> to vector<64x3xf32>
    %c28 = arith.constant 28 : index
    %c0_229 = arith.constant 0 : index
    %c0_230 = arith.constant 0 : index
    %200 = vector.load %arg2[%c28, %c0_229, %c0_230] : memref<49x3x128xf32, #tpu.memory_space<vmem>>, vector<1x3x128xf32>
    %201 = vector.shape_cast %200 : vector<1x3x128xf32> to vector<3x128xf32>
    %cst_231 = arith.constant dense<0.000000e+00> : vector<64x128xf32>
    %202 = tpu.matmul %199, %201, %cst_231 {dimension_numbers = #tpu.dot_dimension_numbers<[1], [0], [0], [1], [0, 0, 1, 1], [], []>} : vector<64x3xf32>, vector<3x128xf32>, vector<64x128xf32> -> vector<64x128xf32>
    %203 = arith.addf %196, %202 : vector<64x128xf32>
    %c0_232 = arith.constant 0 : index
    %c1_233 = arith.constant 1 : index
    %c2_234 = arith.constant 2 : index
    %c0_235 = arith.constant 0 : index
    %c0_236 = arith.constant 0 : index
    %204 = vector.load %arg1[%c0_232, %c1_233, %c2_234, %c0_235, %c0_236] : memref<1x4x11x11x3xf32, #tpu.memory_space<vmem>>, vector<1x1x8x8x3xf32>
    %205 = vector.shape_cast %204 : vector<1x1x8x8x3xf32> to vector<8x8x3xf32>
    %206 = vector.shape_cast %205 : vector<8x8x3xf32> to vector<64x3xf32>
    %c29 = arith.constant 29 : index
    %c0_237 = arith.constant 0 : index
    %c0_238 = arith.constant 0 : index
    %207 = vector.load %arg2[%c29, %c0_237, %c0_238] : memref<49x3x128xf32, #tpu.memory_space<vmem>>, vector<1x3x128xf32>
    %208 = vector.shape_cast %207 : vector<1x3x128xf32> to vector<3x128xf32>
    %cst_239 = arith.constant dense<0.000000e+00> : vector<64x128xf32>
    %209 = tpu.matmul %206, %208, %cst_239 {dimension_numbers = #tpu.dot_dimension_numbers<[1], [0], [0], [1], [0, 0, 1, 1], [], []>} : vector<64x3xf32>, vector<3x128xf32>, vector<64x128xf32> -> vector<64x128xf32>
    %210 = arith.addf %203, %209 : vector<64x128xf32>
    %c0_240 = arith.constant 0 : index
    %c0_241 = arith.constant 0 : index
    %c2_242 = arith.constant 2 : index
    %c1_243 = arith.constant 1 : index
    %c0_244 = arith.constant 0 : index
    %211 = vector.load %arg1[%c0_240, %c0_241, %c2_242, %c1_243, %c0_244] : memref<1x4x11x11x3xf32, #tpu.memory_space<vmem>>, vector<1x1x8x8x3xf32>
    %212 = vector.shape_cast %211 : vector<1x1x8x8x3xf32> to vector<8x8x3xf32>
    %213 = vector.shape_cast %212 : vector<8x8x3xf32> to vector<64x3xf32>
    %c30 = arith.constant 30 : index
    %c0_245 = arith.constant 0 : index
    %c0_246 = arith.constant 0 : index
    %214 = vector.load %arg2[%c30, %c0_245, %c0_246] : memref<49x3x128xf32, #tpu.memory_space<vmem>>, vector<1x3x128xf32>
    %215 = vector.shape_cast %214 : vector<1x3x128xf32> to vector<3x128xf32>
    %cst_247 = arith.constant dense<0.000000e+00> : vector<64x128xf32>
    %216 = tpu.matmul %213, %215, %cst_247 {dimension_numbers = #tpu.dot_dimension_numbers<[1], [0], [0], [1], [0, 0, 1, 1], [], []>} : vector<64x3xf32>, vector<3x128xf32>, vector<64x128xf32> -> vector<64x128xf32>
    %217 = arith.addf %210, %216 : vector<64x128xf32>
    %c0_248 = arith.constant 0 : index
    %c1_249 = arith.constant 1 : index
    %c2_250 = arith.constant 2 : index
    %c1_251 = arith.constant 1 : index
    %c0_252 = arith.constant 0 : index
    %218 = vector.load %arg1[%c0_248, %c1_249, %c2_250, %c1_251, %c0_252] : memref<1x4x11x11x3xf32, #tpu.memory_space<vmem>>, vector<1x1x8x8x3xf32>
    %219 = vector.shape_cast %218 : vector<1x1x8x8x3xf32> to vector<8x8x3xf32>
    %220 = vector.shape_cast %219 : vector<8x8x3xf32> to vector<64x3xf32>
    %c31 = arith.constant 31 : index
    %c0_253 = arith.constant 0 : index
    %c0_254 = arith.constant 0 : index
    %221 = vector.load %arg2[%c31, %c0_253, %c0_254] : memref<49x3x128xf32, #tpu.memory_space<vmem>>, vector<1x3x128xf32>
    %222 = vector.shape_cast %221 : vector<1x3x128xf32> to vector<3x128xf32>
    %cst_255 = arith.constant dense<0.000000e+00> : vector<64x128xf32>
    %223 = tpu.matmul %220, %222, %cst_255 {dimension_numbers = #tpu.dot_dimension_numbers<[1], [0], [0], [1], [0, 0, 1, 1], [], []>} : vector<64x3xf32>, vector<3x128xf32>, vector<64x128xf32> -> vector<64x128xf32>
    %224 = arith.addf %217, %223 : vector<64x128xf32>
    %c0_256 = arith.constant 0 : index
    %c0_257 = arith.constant 0 : index
    %c2_258 = arith.constant 2 : index
    %c2_259 = arith.constant 2 : index
    %c0_260 = arith.constant 0 : index
    %225 = vector.load %arg1[%c0_256, %c0_257, %c2_258, %c2_259, %c0_260] : memref<1x4x11x11x3xf32, #tpu.memory_space<vmem>>, vector<1x1x8x8x3xf32>
    %226 = vector.shape_cast %225 : vector<1x1x8x8x3xf32> to vector<8x8x3xf32>
    %227 = vector.shape_cast %226 : vector<8x8x3xf32> to vector<64x3xf32>
    %c32 = arith.constant 32 : index
    %c0_261 = arith.constant 0 : index
    %c0_262 = arith.constant 0 : index
    %228 = vector.load %arg2[%c32, %c0_261, %c0_262] : memref<49x3x128xf32, #tpu.memory_space<vmem>>, vector<1x3x128xf32>
    %229 = vector.shape_cast %228 : vector<1x3x128xf32> to vector<3x128xf32>
    %cst_263 = arith.constant dense<0.000000e+00> : vector<64x128xf32>
    %230 = tpu.matmul %227, %229, %cst_263 {dimension_numbers = #tpu.dot_dimension_numbers<[1], [0], [0], [1], [0, 0, 1, 1], [], []>} : vector<64x3xf32>, vector<3x128xf32>, vector<64x128xf32> -> vector<64x128xf32>
    %231 = arith.addf %224, %230 : vector<64x128xf32>
    %c0_264 = arith.constant 0 : index
    %c1_265 = arith.constant 1 : index
    %c2_266 = arith.constant 2 : index
    %c2_267 = arith.constant 2 : index
    %c0_268 = arith.constant 0 : index
    %232 = vector.load %arg1[%c0_264, %c1_265, %c2_266, %c2_267, %c0_268] : memref<1x4x11x11x3xf32, #tpu.memory_space<vmem>>, vector<1x1x8x8x3xf32>
    %233 = vector.shape_cast %232 : vector<1x1x8x8x3xf32> to vector<8x8x3xf32>
    %234 = vector.shape_cast %233 : vector<8x8x3xf32> to vector<64x3xf32>
    %c33 = arith.constant 33 : index
    %c0_269 = arith.constant 0 : index
    %c0_270 = arith.constant 0 : index
    %235 = vector.load %arg2[%c33, %c0_269, %c0_270] : memref<49x3x128xf32, #tpu.memory_space<vmem>>, vector<1x3x128xf32>
    %236 = vector.shape_cast %235 : vector<1x3x128xf32> to vector<3x128xf32>
    %cst_271 = arith.constant dense<0.000000e+00> : vector<64x128xf32>
    %237 = tpu.matmul %234, %236, %cst_271 {dimension_numbers = #tpu.dot_dimension_numbers<[1], [0], [0], [1], [0, 0, 1, 1], [], []>} : vector<64x3xf32>, vector<3x128xf32>, vector<64x128xf32> -> vector<64x128xf32>
    %238 = arith.addf %231, %237 : vector<64x128xf32>
    %c0_272 = arith.constant 0 : index
    %c0_273 = arith.constant 0 : index
    %c2_274 = arith.constant 2 : index
    %c3_275 = arith.constant 3 : index
    %c0_276 = arith.constant 0 : index
    %239 = vector.load %arg1[%c0_272, %c0_273, %c2_274, %c3_275, %c0_276] : memref<1x4x11x11x3xf32, #tpu.memory_space<vmem>>, vector<1x1x8x8x3xf32>
    %240 = vector.shape_cast %239 : vector<1x1x8x8x3xf32> to vector<8x8x3xf32>
    %241 = vector.shape_cast %240 : vector<8x8x3xf32> to vector<64x3xf32>
    %c34 = arith.constant 34 : index
    %c0_277 = arith.constant 0 : index
    %c0_278 = arith.constant 0 : index
    %242 = vector.load %arg2[%c34, %c0_277, %c0_278] : memref<49x3x128xf32, #tpu.memory_space<vmem>>, vector<1x3x128xf32>
    %243 = vector.shape_cast %242 : vector<1x3x128xf32> to vector<3x128xf32>
    %cst_279 = arith.constant dense<0.000000e+00> : vector<64x128xf32>
    %244 = tpu.matmul %241, %243, %cst_279 {dimension_numbers = #tpu.dot_dimension_numbers<[1], [0], [0], [1], [0, 0, 1, 1], [], []>} : vector<64x3xf32>, vector<3x128xf32>, vector<64x128xf32> -> vector<64x128xf32>
    %245 = arith.addf %238, %244 : vector<64x128xf32>
    %c0_280 = arith.constant 0 : index
    %c2_281 = arith.constant 2 : index
    %c2_282 = arith.constant 2 : index
    %c0_283 = arith.constant 0 : index
    %c0_284 = arith.constant 0 : index
    %246 = vector.load %arg1[%c0_280, %c2_281, %c2_282, %c0_283, %c0_284] : memref<1x4x11x11x3xf32, #tpu.memory_space<vmem>>, vector<1x1x8x8x3xf32>
    %247 = vector.shape_cast %246 : vector<1x1x8x8x3xf32> to vector<8x8x3xf32>
    %248 = vector.shape_cast %247 : vector<8x8x3xf32> to vector<64x3xf32>
    %c35 = arith.constant 35 : index
    %c0_285 = arith.constant 0 : index
    %c0_286 = arith.constant 0 : index
    %249 = vector.load %arg2[%c35, %c0_285, %c0_286] : memref<49x3x128xf32, #tpu.memory_space<vmem>>, vector<1x3x128xf32>
    %250 = vector.shape_cast %249 : vector<1x3x128xf32> to vector<3x128xf32>
    %cst_287 = arith.constant dense<0.000000e+00> : vector<64x128xf32>
    %251 = tpu.matmul %248, %250, %cst_287 {dimension_numbers = #tpu.dot_dimension_numbers<[1], [0], [0], [1], [0, 0, 1, 1], [], []>} : vector<64x3xf32>, vector<3x128xf32>, vector<64x128xf32> -> vector<64x128xf32>
    %252 = arith.addf %245, %251 : vector<64x128xf32>
    %c0_288 = arith.constant 0 : index
    %c3_289 = arith.constant 3 : index
    %c2_290 = arith.constant 2 : index
    %c0_291 = arith.constant 0 : index
    %c0_292 = arith.constant 0 : index
    %253 = vector.load %arg1[%c0_288, %c3_289, %c2_290, %c0_291, %c0_292] : memref<1x4x11x11x3xf32, #tpu.memory_space<vmem>>, vector<1x1x8x8x3xf32>
    %254 = vector.shape_cast %253 : vector<1x1x8x8x3xf32> to vector<8x8x3xf32>
    %255 = vector.shape_cast %254 : vector<8x8x3xf32> to vector<64x3xf32>
    %c36 = arith.constant 36 : index
    %c0_293 = arith.constant 0 : index
    %c0_294 = arith.constant 0 : index
    %256 = vector.load %arg2[%c36, %c0_293, %c0_294] : memref<49x3x128xf32, #tpu.memory_space<vmem>>, vector<1x3x128xf32>
    %257 = vector.shape_cast %256 : vector<1x3x128xf32> to vector<3x128xf32>
    %cst_295 = arith.constant dense<0.000000e+00> : vector<64x128xf32>
    %258 = tpu.matmul %255, %257, %cst_295 {dimension_numbers = #tpu.dot_dimension_numbers<[1], [0], [0], [1], [0, 0, 1, 1], [], []>} : vector<64x3xf32>, vector<3x128xf32>, vector<64x128xf32> -> vector<64x128xf32>
    %259 = arith.addf %252, %258 : vector<64x128xf32>
    %c0_296 = arith.constant 0 : index
    %c2_297 = arith.constant 2 : index
    %c2_298 = arith.constant 2 : index
    %c1_299 = arith.constant 1 : index
    %c0_300 = arith.constant 0 : index
    %260 = vector.load %arg1[%c0_296, %c2_297, %c2_298, %c1_299, %c0_300] : memref<1x4x11x11x3xf32, #tpu.memory_space<vmem>>, vector<1x1x8x8x3xf32>
    %261 = vector.shape_cast %260 : vector<1x1x8x8x3xf32> to vector<8x8x3xf32>
    %262 = vector.shape_cast %261 : vector<8x8x3xf32> to vector<64x3xf32>
    %c37 = arith.constant 37 : index
    %c0_301 = arith.constant 0 : index
    %c0_302 = arith.constant 0 : index
    %263 = vector.load %arg2[%c37, %c0_301, %c0_302] : memref<49x3x128xf32, #tpu.memory_space<vmem>>, vector<1x3x128xf32>
    %264 = vector.shape_cast %263 : vector<1x3x128xf32> to vector<3x128xf32>
    %cst_303 = arith.constant dense<0.000000e+00> : vector<64x128xf32>
    %265 = tpu.matmul %262, %264, %cst_303 {dimension_numbers = #tpu.dot_dimension_numbers<[1], [0], [0], [1], [0, 0, 1, 1], [], []>} : vector<64x3xf32>, vector<3x128xf32>, vector<64x128xf32> -> vector<64x128xf32>
    %266 = arith.addf %259, %265 : vector<64x128xf32>
    %c0_304 = arith.constant 0 : index
    %c3_305 = arith.constant 3 : index
    %c2_306 = arith.constant 2 : index
    %c1_307 = arith.constant 1 : index
    %c0_308 = arith.constant 0 : index
    %267 = vector.load %arg1[%c0_304, %c3_305, %c2_306, %c1_307, %c0_308] : memref<1x4x11x11x3xf32, #tpu.memory_space<vmem>>, vector<1x1x8x8x3xf32>
    %268 = vector.shape_cast %267 : vector<1x1x8x8x3xf32> to vector<8x8x3xf32>
    %269 = vector.shape_cast %268 : vector<8x8x3xf32> to vector<64x3xf32>
    %c38 = arith.constant 38 : index
    %c0_309 = arith.constant 0 : index
    %c0_310 = arith.constant 0 : index
    %270 = vector.load %arg2[%c38, %c0_309, %c0_310] : memref<49x3x128xf32, #tpu.memory_space<vmem>>, vector<1x3x128xf32>
    %271 = vector.shape_cast %270 : vector<1x3x128xf32> to vector<3x128xf32>
    %cst_311 = arith.constant dense<0.000000e+00> : vector<64x128xf32>
    %272 = tpu.matmul %269, %271, %cst_311 {dimension_numbers = #tpu.dot_dimension_numbers<[1], [0], [0], [1], [0, 0, 1, 1], [], []>} : vector<64x3xf32>, vector<3x128xf32>, vector<64x128xf32> -> vector<64x128xf32>
    %273 = arith.addf %266, %272 : vector<64x128xf32>
    %c0_312 = arith.constant 0 : index
    %c2_313 = arith.constant 2 : index
    %c2_314 = arith.constant 2 : index
    %c2_315 = arith.constant 2 : index
    %c0_316 = arith.constant 0 : index
    %274 = vector.load %arg1[%c0_312, %c2_313, %c2_314, %c2_315, %c0_316] : memref<1x4x11x11x3xf32, #tpu.memory_space<vmem>>, vector<1x1x8x8x3xf32>
    %275 = vector.shape_cast %274 : vector<1x1x8x8x3xf32> to vector<8x8x3xf32>
    %276 = vector.shape_cast %275 : vector<8x8x3xf32> to vector<64x3xf32>
    %c39 = arith.constant 39 : index
    %c0_317 = arith.constant 0 : index
    %c0_318 = arith.constant 0 : index
    %277 = vector.load %arg2[%c39, %c0_317, %c0_318] : memref<49x3x128xf32, #tpu.memory_space<vmem>>, vector<1x3x128xf32>
    %278 = vector.shape_cast %277 : vector<1x3x128xf32> to vector<3x128xf32>
    %cst_319 = arith.constant dense<0.000000e+00> : vector<64x128xf32>
    %279 = tpu.matmul %276, %278, %cst_319 {dimension_numbers = #tpu.dot_dimension_numbers<[1], [0], [0], [1], [0, 0, 1, 1], [], []>} : vector<64x3xf32>, vector<3x128xf32>, vector<64x128xf32> -> vector<64x128xf32>
    %280 = arith.addf %273, %279 : vector<64x128xf32>
    %c0_320 = arith.constant 0 : index
    %c3_321 = arith.constant 3 : index
    %c2_322 = arith.constant 2 : index
    %c2_323 = arith.constant 2 : index
    %c0_324 = arith.constant 0 : index
    %281 = vector.load %arg1[%c0_320, %c3_321, %c2_322, %c2_323, %c0_324] : memref<1x4x11x11x3xf32, #tpu.memory_space<vmem>>, vector<1x1x8x8x3xf32>
    %282 = vector.shape_cast %281 : vector<1x1x8x8x3xf32> to vector<8x8x3xf32>
    %283 = vector.shape_cast %282 : vector<8x8x3xf32> to vector<64x3xf32>
    %c40 = arith.constant 40 : index
    %c0_325 = arith.constant 0 : index
    %c0_326 = arith.constant 0 : index
    %284 = vector.load %arg2[%c40, %c0_325, %c0_326] : memref<49x3x128xf32, #tpu.memory_space<vmem>>, vector<1x3x128xf32>
    %285 = vector.shape_cast %284 : vector<1x3x128xf32> to vector<3x128xf32>
    %cst_327 = arith.constant dense<0.000000e+00> : vector<64x128xf32>
    %286 = tpu.matmul %283, %285, %cst_327 {dimension_numbers = #tpu.dot_dimension_numbers<[1], [0], [0], [1], [0, 0, 1, 1], [], []>} : vector<64x3xf32>, vector<3x128xf32>, vector<64x128xf32> -> vector<64x128xf32>
    %287 = arith.addf %280, %286 : vector<64x128xf32>
    %c0_328 = arith.constant 0 : index
    %c2_329 = arith.constant 2 : index
    %c2_330 = arith.constant 2 : index
    %c3_331 = arith.constant 3 : index
    %c0_332 = arith.constant 0 : index
    %288 = vector.load %arg1[%c0_328, %c2_329, %c2_330, %c3_331, %c0_332] : memref<1x4x11x11x3xf32, #tpu.memory_space<vmem>>, vector<1x1x8x8x3xf32>
    %289 = vector.shape_cast %288 : vector<1x1x8x8x3xf32> to vector<8x8x3xf32>
    %290 = vector.shape_cast %289 : vector<8x8x3xf32> to vector<64x3xf32>
    %c41 = arith.constant 41 : index
    %c0_333 = arith.constant 0 : index
    %c0_334 = arith.constant 0 : index
    %291 = vector.load %arg2[%c41, %c0_333, %c0_334] : memref<49x3x128xf32, #tpu.memory_space<vmem>>, vector<1x3x128xf32>
    %292 = vector.shape_cast %291 : vector<1x3x128xf32> to vector<3x128xf32>
    %cst_335 = arith.constant dense<0.000000e+00> : vector<64x128xf32>
    %293 = tpu.matmul %290, %292, %cst_335 {dimension_numbers = #tpu.dot_dimension_numbers<[1], [0], [0], [1], [0, 0, 1, 1], [], []>} : vector<64x3xf32>, vector<3x128xf32>, vector<64x128xf32> -> vector<64x128xf32>
    %294 = arith.addf %287, %293 : vector<64x128xf32>
    %c0_336 = arith.constant 0 : index
    %c0_337 = arith.constant 0 : index
    %c3_338 = arith.constant 3 : index
    %c0_339 = arith.constant 0 : index
    %c0_340 = arith.constant 0 : index
    %295 = vector.load %arg1[%c0_336, %c0_337, %c3_338, %c0_339, %c0_340] : memref<1x4x11x11x3xf32, #tpu.memory_space<vmem>>, vector<1x1x8x8x3xf32>
    %296 = vector.shape_cast %295 : vector<1x1x8x8x3xf32> to vector<8x8x3xf32>
    %297 = vector.shape_cast %296 : vector<8x8x3xf32> to vector<64x3xf32>
    %c42 = arith.constant 42 : index
    %c0_341 = arith.constant 0 : index
    %c0_342 = arith.constant 0 : index
    %298 = vector.load %arg2[%c42, %c0_341, %c0_342] : memref<49x3x128xf32, #tpu.memory_space<vmem>>, vector<1x3x128xf32>
    %299 = vector.shape_cast %298 : vector<1x3x128xf32> to vector<3x128xf32>
    %cst_343 = arith.constant dense<0.000000e+00> : vector<64x128xf32>
    %300 = tpu.matmul %297, %299, %cst_343 {dimension_numbers = #tpu.dot_dimension_numbers<[1], [0], [0], [1], [0, 0, 1, 1], [], []>} : vector<64x3xf32>, vector<3x128xf32>, vector<64x128xf32> -> vector<64x128xf32>
    %301 = arith.addf %294, %300 : vector<64x128xf32>
    %c0_344 = arith.constant 0 : index
    %c1_345 = arith.constant 1 : index
    %c3_346 = arith.constant 3 : index
    %c0_347 = arith.constant 0 : index
    %c0_348 = arith.constant 0 : index
    %302 = vector.load %arg1[%c0_344, %c1_345, %c3_346, %c0_347, %c0_348] : memref<1x4x11x11x3xf32, #tpu.memory_space<vmem>>, vector<1x1x8x8x3xf32>
    %303 = vector.shape_cast %302 : vector<1x1x8x8x3xf32> to vector<8x8x3xf32>
    %304 = vector.shape_cast %303 : vector<8x8x3xf32> to vector<64x3xf32>
    %c43 = arith.constant 43 : index
    %c0_349 = arith.constant 0 : index
    %c0_350 = arith.constant 0 : index
    %305 = vector.load %arg2[%c43, %c0_349, %c0_350] : memref<49x3x128xf32, #tpu.memory_space<vmem>>, vector<1x3x128xf32>
    %306 = vector.shape_cast %305 : vector<1x3x128xf32> to vector<3x128xf32>
    %cst_351 = arith.constant dense<0.000000e+00> : vector<64x128xf32>
    %307 = tpu.matmul %304, %306, %cst_351 {dimension_numbers = #tpu.dot_dimension_numbers<[1], [0], [0], [1], [0, 0, 1, 1], [], []>} : vector<64x3xf32>, vector<3x128xf32>, vector<64x128xf32> -> vector<64x128xf32>
    %308 = arith.addf %301, %307 : vector<64x128xf32>
    %c0_352 = arith.constant 0 : index
    %c0_353 = arith.constant 0 : index
    %c3_354 = arith.constant 3 : index
    %c1_355 = arith.constant 1 : index
    %c0_356 = arith.constant 0 : index
    %309 = vector.load %arg1[%c0_352, %c0_353, %c3_354, %c1_355, %c0_356] : memref<1x4x11x11x3xf32, #tpu.memory_space<vmem>>, vector<1x1x8x8x3xf32>
    %310 = vector.shape_cast %309 : vector<1x1x8x8x3xf32> to vector<8x8x3xf32>
    %311 = vector.shape_cast %310 : vector<8x8x3xf32> to vector<64x3xf32>
    %c44 = arith.constant 44 : index
    %c0_357 = arith.constant 0 : index
    %c0_358 = arith.constant 0 : index
    %312 = vector.load %arg2[%c44, %c0_357, %c0_358] : memref<49x3x128xf32, #tpu.memory_space<vmem>>, vector<1x3x128xf32>
    %313 = vector.shape_cast %312 : vector<1x3x128xf32> to vector<3x128xf32>
    %cst_359 = arith.constant dense<0.000000e+00> : vector<64x128xf32>
    %314 = tpu.matmul %311, %313, %cst_359 {dimension_numbers = #tpu.dot_dimension_numbers<[1], [0], [0], [1], [0, 0, 1, 1], [], []>} : vector<64x3xf32>, vector<3x128xf32>, vector<64x128xf32> -> vector<64x128xf32>
    %315 = arith.addf %308, %314 : vector<64x128xf32>
    %c0_360 = arith.constant 0 : index
    %c1_361 = arith.constant 1 : index
    %c3_362 = arith.constant 3 : index
    %c1_363 = arith.constant 1 : index
    %c0_364 = arith.constant 0 : index
    %316 = vector.load %arg1[%c0_360, %c1_361, %c3_362, %c1_363, %c0_364] : memref<1x4x11x11x3xf32, #tpu.memory_space<vmem>>, vector<1x1x8x8x3xf32>
    %317 = vector.shape_cast %316 : vector<1x1x8x8x3xf32> to vector<8x8x3xf32>
    %318 = vector.shape_cast %317 : vector<8x8x3xf32> to vector<64x3xf32>
    %c45 = arith.constant 45 : index
    %c0_365 = arith.constant 0 : index
    %c0_366 = arith.constant 0 : index
    %319 = vector.load %arg2[%c45, %c0_365, %c0_366] : memref<49x3x128xf32, #tpu.memory_space<vmem>>, vector<1x3x128xf32>
    %320 = vector.shape_cast %319 : vector<1x3x128xf32> to vector<3x128xf32>
    %cst_367 = arith.constant dense<0.000000e+00> : vector<64x128xf32>
    %321 = tpu.matmul %318, %320, %cst_367 {dimension_numbers = #tpu.dot_dimension_numbers<[1], [0], [0], [1], [0, 0, 1, 1], [], []>} : vector<64x3xf32>, vector<3x128xf32>, vector<64x128xf32> -> vector<64x128xf32>
    %322 = arith.addf %315, %321 : vector<64x128xf32>
    %c0_368 = arith.constant 0 : index
    %c0_369 = arith.constant 0 : index
    %c3_370 = arith.constant 3 : index
    %c2_371 = arith.constant 2 : index
    %c0_372 = arith.constant 0 : index
    %323 = vector.load %arg1[%c0_368, %c0_369, %c3_370, %c2_371, %c0_372] : memref<1x4x11x11x3xf32, #tpu.memory_space<vmem>>, vector<1x1x8x8x3xf32>
    %324 = vector.shape_cast %323 : vector<1x1x8x8x3xf32> to vector<8x8x3xf32>
    %325 = vector.shape_cast %324 : vector<8x8x3xf32> to vector<64x3xf32>
    %c46 = arith.constant 46 : index
    %c0_373 = arith.constant 0 : index
    %c0_374 = arith.constant 0 : index
    %326 = vector.load %arg2[%c46, %c0_373, %c0_374] : memref<49x3x128xf32, #tpu.memory_space<vmem>>, vector<1x3x128xf32>
    %327 = vector.shape_cast %326 : vector<1x3x128xf32> to vector<3x128xf32>
    %cst_375 = arith.constant dense<0.000000e+00> : vector<64x128xf32>
    %328 = tpu.matmul %325, %327, %cst_375 {dimension_numbers = #tpu.dot_dimension_numbers<[1], [0], [0], [1], [0, 0, 1, 1], [], []>} : vector<64x3xf32>, vector<3x128xf32>, vector<64x128xf32> -> vector<64x128xf32>
    %329 = arith.addf %322, %328 : vector<64x128xf32>
    %c0_376 = arith.constant 0 : index
    %c1_377 = arith.constant 1 : index
    %c3_378 = arith.constant 3 : index
    %c2_379 = arith.constant 2 : index
    %c0_380 = arith.constant 0 : index
    %330 = vector.load %arg1[%c0_376, %c1_377, %c3_378, %c2_379, %c0_380] : memref<1x4x11x11x3xf32, #tpu.memory_space<vmem>>, vector<1x1x8x8x3xf32>
    %331 = vector.shape_cast %330 : vector<1x1x8x8x3xf32> to vector<8x8x3xf32>
    %332 = vector.shape_cast %331 : vector<8x8x3xf32> to vector<64x3xf32>
    %c47 = arith.constant 47 : index
    %c0_381 = arith.constant 0 : index
    %c0_382 = arith.constant 0 : index
    %333 = vector.load %arg2[%c47, %c0_381, %c0_382] : memref<49x3x128xf32, #tpu.memory_space<vmem>>, vector<1x3x128xf32>
    %334 = vector.shape_cast %333 : vector<1x3x128xf32> to vector<3x128xf32>
    %cst_383 = arith.constant dense<0.000000e+00> : vector<64x128xf32>
    %335 = tpu.matmul %332, %334, %cst_383 {dimension_numbers = #tpu.dot_dimension_numbers<[1], [0], [0], [1], [0, 0, 1, 1], [], []>} : vector<64x3xf32>, vector<3x128xf32>, vector<64x128xf32> -> vector<64x128xf32>
    %336 = arith.addf %329, %335 : vector<64x128xf32>
    %c0_384 = arith.constant 0 : index
    %c0_385 = arith.constant 0 : index
    %c3_386 = arith.constant 3 : index
    %c3_387 = arith.constant 3 : index
    %c0_388 = arith.constant 0 : index
    %337 = vector.load %arg1[%c0_384, %c0_385, %c3_386, %c3_387, %c0_388] : memref<1x4x11x11x3xf32, #tpu.memory_space<vmem>>, vector<1x1x8x8x3xf32>
    %338 = vector.shape_cast %337 : vector<1x1x8x8x3xf32> to vector<8x8x3xf32>
    %339 = vector.shape_cast %338 : vector<8x8x3xf32> to vector<64x3xf32>
    %c48 = arith.constant 48 : index
    %c0_389 = arith.constant 0 : index
    %c0_390 = arith.constant 0 : index
    %340 = vector.load %arg2[%c48, %c0_389, %c0_390] : memref<49x3x128xf32, #tpu.memory_space<vmem>>, vector<1x3x128xf32>
    %341 = vector.shape_cast %340 : vector<1x3x128xf32> to vector<3x128xf32>
    %cst_391 = arith.constant dense<0.000000e+00> : vector<64x128xf32>
    %342 = tpu.matmul %339, %341, %cst_391 {dimension_numbers = #tpu.dot_dimension_numbers<[1], [0], [0], [1], [0, 0, 1, 1], [], []>} : vector<64x3xf32>, vector<3x128xf32>, vector<64x128xf32> -> vector<64x128xf32>
    %343 = arith.addf %336, %342 : vector<64x128xf32>
    %c0_392 = arith.constant 0 : index
    %c0_393 = arith.constant 0 : index
    %344 = vector.load %arg3[%c0_392, %c0_393] : memref<1x128xf32, #tpu.memory_space<vmem>>, vector<1x128xf32>
    %345 = vector.broadcast %344 : vector<1x128xf32> to vector<64x128xf32>
    %346 = arith.addf %343, %345 : vector<64x128xf32>
    %cst_394 = arith.constant 0.000000e+00 : f32
    %347 = vector.broadcast %cst_394 : f32 to vector<64x128xf32>
    %348 = arith.maximumf %346, %347 : vector<64x128xf32>
    %349 = vector.shape_cast %348 : vector<64x128xf32> to vector<8x8x128xf32>
    %350 = vector.extract_strided_slice %349 {offsets = [0, 0, 0], sizes = [1, 8, 128], strides = [1, 1, 1]} : vector<8x8x128xf32> to vector<1x8x128xf32>
    %351 = vector.shape_cast %350 : vector<1x8x128xf32> to vector<8x128xf32>
    %352 = vector.extract_strided_slice %349 {offsets = [1, 0, 0], sizes = [1, 8, 128], strides = [1, 1, 1]} : vector<8x8x128xf32> to vector<1x8x128xf32>
    %353 = vector.shape_cast %352 : vector<1x8x128xf32> to vector<8x128xf32>
    %354 = arith.maximumf %351, %353 : vector<8x128xf32>
    %355 = vector.extract_strided_slice %354 {offsets = [0, 0], sizes = [1, 128], strides = [1, 1]} : vector<8x128xf32> to vector<1x128xf32>
    %356 = vector.extract_strided_slice %354 {offsets = [1, 0], sizes = [1, 128], strides = [1, 1]} : vector<8x128xf32> to vector<1x128xf32>
    %357 = arith.maximumf %355, %356 : vector<1x128xf32>
    %358 = vector.extract_strided_slice %354 {offsets = [1, 0], sizes = [1, 128], strides = [1, 1]} : vector<8x128xf32> to vector<1x128xf32>
    %359 = vector.extract_strided_slice %354 {offsets = [2, 0], sizes = [1, 128], strides = [1, 1]} : vector<8x128xf32> to vector<1x128xf32>
    %360 = arith.maximumf %358, %359 : vector<1x128xf32>
    %361 = vector.extract_strided_slice %354 {offsets = [3, 0], sizes = [1, 128], strides = [1, 1]} : vector<8x128xf32> to vector<1x128xf32>
    %362 = arith.maximumf %360, %361 : vector<1x128xf32>
    %363 = vector.extract_strided_slice %354 {offsets = [3, 0], sizes = [1, 128], strides = [1, 1]} : vector<8x128xf32> to vector<1x128xf32>
    %364 = vector.extract_strided_slice %354 {offsets = [4, 0], sizes = [1, 128], strides = [1, 1]} : vector<8x128xf32> to vector<1x128xf32>
    %365 = arith.maximumf %363, %364 : vector<1x128xf32>
    %366 = vector.extract_strided_slice %354 {offsets = [5, 0], sizes = [1, 128], strides = [1, 1]} : vector<8x128xf32> to vector<1x128xf32>
    %367 = arith.maximumf %365, %366 : vector<1x128xf32>
    %368 = vector.extract_strided_slice %354 {offsets = [5, 0], sizes = [1, 128], strides = [1, 1]} : vector<8x128xf32> to vector<1x128xf32>
    %369 = vector.extract_strided_slice %354 {offsets = [6, 0], sizes = [1, 128], strides = [1, 1]} : vector<8x128xf32> to vector<1x128xf32>
    %370 = arith.maximumf %368, %369 : vector<1x128xf32>
    %371 = vector.extract_strided_slice %354 {offsets = [7, 0], sizes = [1, 128], strides = [1, 1]} : vector<8x128xf32> to vector<1x128xf32>
    %372 = arith.maximumf %370, %371 : vector<1x128xf32>
    %373 = vector.extract_strided_slice %349 {offsets = [1, 0, 0], sizes = [1, 8, 128], strides = [1, 1, 1]} : vector<8x8x128xf32> to vector<1x8x128xf32>
    %374 = vector.shape_cast %373 : vector<1x8x128xf32> to vector<8x128xf32>
    %375 = vector.extract_strided_slice %349 {offsets = [2, 0, 0], sizes = [1, 8, 128], strides = [1, 1, 1]} : vector<8x8x128xf32> to vector<1x8x128xf32>
    %376 = vector.shape_cast %375 : vector<1x8x128xf32> to vector<8x128xf32>
    %377 = arith.maximumf %374, %376 : vector<8x128xf32>
    %378 = vector.extract_strided_slice %349 {offsets = [3, 0, 0], sizes = [1, 8, 128], strides = [1, 1, 1]} : vector<8x8x128xf32> to vector<1x8x128xf32>
    %379 = vector.shape_cast %378 : vector<1x8x128xf32> to vector<8x128xf32>
    %380 = arith.maximumf %377, %379 : vector<8x128xf32>
    %381 = vector.extract_strided_slice %380 {offsets = [0, 0], sizes = [1, 128], strides = [1, 1]} : vector<8x128xf32> to vector<1x128xf32>
    %382 = vector.extract_strided_slice %380 {offsets = [1, 0], sizes = [1, 128], strides = [1, 1]} : vector<8x128xf32> to vector<1x128xf32>
    %383 = arith.maximumf %381, %382 : vector<1x128xf32>
    %384 = vector.extract_strided_slice %380 {offsets = [1, 0], sizes = [1, 128], strides = [1, 1]} : vector<8x128xf32> to vector<1x128xf32>
    %385 = vector.extract_strided_slice %380 {offsets = [2, 0], sizes = [1, 128], strides = [1, 1]} : vector<8x128xf32> to vector<1x128xf32>
    %386 = arith.maximumf %384, %385 : vector<1x128xf32>
    %387 = vector.extract_strided_slice %380 {offsets = [3, 0], sizes = [1, 128], strides = [1, 1]} : vector<8x128xf32> to vector<1x128xf32>
    %388 = arith.maximumf %386, %387 : vector<1x128xf32>
    %389 = vector.extract_strided_slice %380 {offsets = [3, 0], sizes = [1, 128], strides = [1, 1]} : vector<8x128xf32> to vector<1x128xf32>
    %390 = vector.extract_strided_slice %380 {offsets = [4, 0], sizes = [1, 128], strides = [1, 1]} : vector<8x128xf32> to vector<1x128xf32>
    %391 = arith.maximumf %389, %390 : vector<1x128xf32>
    %392 = vector.extract_strided_slice %380 {offsets = [5, 0], sizes = [1, 128], strides = [1, 1]} : vector<8x128xf32> to vector<1x128xf32>
    %393 = arith.maximumf %391, %392 : vector<1x128xf32>
    %394 = vector.extract_strided_slice %380 {offsets = [5, 0], sizes = [1, 128], strides = [1, 1]} : vector<8x128xf32> to vector<1x128xf32>
    %395 = vector.extract_strided_slice %380 {offsets = [6, 0], sizes = [1, 128], strides = [1, 1]} : vector<8x128xf32> to vector<1x128xf32>
    %396 = arith.maximumf %394, %395 : vector<1x128xf32>
    %397 = vector.extract_strided_slice %380 {offsets = [7, 0], sizes = [1, 128], strides = [1, 1]} : vector<8x128xf32> to vector<1x128xf32>
    %398 = arith.maximumf %396, %397 : vector<1x128xf32>
    %399 = vector.extract_strided_slice %349 {offsets = [3, 0, 0], sizes = [1, 8, 128], strides = [1, 1, 1]} : vector<8x8x128xf32> to vector<1x8x128xf32>
    %400 = vector.shape_cast %399 : vector<1x8x128xf32> to vector<8x128xf32>
    %401 = vector.extract_strided_slice %349 {offsets = [4, 0, 0], sizes = [1, 8, 128], strides = [1, 1, 1]} : vector<8x8x128xf32> to vector<1x8x128xf32>
    %402 = vector.shape_cast %401 : vector<1x8x128xf32> to vector<8x128xf32>
    %403 = arith.maximumf %400, %402 : vector<8x128xf32>
    %404 = vector.extract_strided_slice %349 {offsets = [5, 0, 0], sizes = [1, 8, 128], strides = [1, 1, 1]} : vector<8x8x128xf32> to vector<1x8x128xf32>
    %405 = vector.shape_cast %404 : vector<1x8x128xf32> to vector<8x128xf32>
    %406 = arith.maximumf %403, %405 : vector<8x128xf32>
    %407 = vector.extract_strided_slice %406 {offsets = [0, 0], sizes = [1, 128], strides = [1, 1]} : vector<8x128xf32> to vector<1x128xf32>
    %408 = vector.extract_strided_slice %406 {offsets = [1, 0], sizes = [1, 128], strides = [1, 1]} : vector<8x128xf32> to vector<1x128xf32>
    %409 = arith.maximumf %407, %408 : vector<1x128xf32>
    %410 = vector.extract_strided_slice %406 {offsets = [1, 0], sizes = [1, 128], strides = [1, 1]} : vector<8x128xf32> to vector<1x128xf32>
    %411 = vector.extract_strided_slice %406 {offsets = [2, 0], sizes = [1, 128], strides = [1, 1]} : vector<8x128xf32> to vector<1x128xf32>
    %412 = arith.maximumf %410, %411 : vector<1x128xf32>
    %413 = vector.extract_strided_slice %406 {offsets = [3, 0], sizes = [1, 128], strides = [1, 1]} : vector<8x128xf32> to vector<1x128xf32>
    %414 = arith.maximumf %412, %413 : vector<1x128xf32>
    %415 = vector.extract_strided_slice %406 {offsets = [3, 0], sizes = [1, 128], strides = [1, 1]} : vector<8x128xf32> to vector<1x128xf32>
    %416 = vector.extract_strided_slice %406 {offsets = [4, 0], sizes = [1, 128], strides = [1, 1]} : vector<8x128xf32> to vector<1x128xf32>
    %417 = arith.maximumf %415, %416 : vector<1x128xf32>
    %418 = vector.extract_strided_slice %406 {offsets = [5, 0], sizes = [1, 128], strides = [1, 1]} : vector<8x128xf32> to vector<1x128xf32>
    %419 = arith.maximumf %417, %418 : vector<1x128xf32>
    %420 = vector.extract_strided_slice %406 {offsets = [5, 0], sizes = [1, 128], strides = [1, 1]} : vector<8x128xf32> to vector<1x128xf32>
    %421 = vector.extract_strided_slice %406 {offsets = [6, 0], sizes = [1, 128], strides = [1, 1]} : vector<8x128xf32> to vector<1x128xf32>
    %422 = arith.maximumf %420, %421 : vector<1x128xf32>
    %423 = vector.extract_strided_slice %406 {offsets = [7, 0], sizes = [1, 128], strides = [1, 1]} : vector<8x128xf32> to vector<1x128xf32>
    %424 = arith.maximumf %422, %423 : vector<1x128xf32>
    %425 = vector.extract_strided_slice %349 {offsets = [5, 0, 0], sizes = [1, 8, 128], strides = [1, 1, 1]} : vector<8x8x128xf32> to vector<1x8x128xf32>
    %426 = vector.shape_cast %425 : vector<1x8x128xf32> to vector<8x128xf32>
    %427 = vector.extract_strided_slice %349 {offsets = [6, 0, 0], sizes = [1, 8, 128], strides = [1, 1, 1]} : vector<8x8x128xf32> to vector<1x8x128xf32>
    %428 = vector.shape_cast %427 : vector<1x8x128xf32> to vector<8x128xf32>
    %429 = arith.maximumf %426, %428 : vector<8x128xf32>
    %430 = vector.extract_strided_slice %349 {offsets = [7, 0, 0], sizes = [1, 8, 128], strides = [1, 1, 1]} : vector<8x8x128xf32> to vector<1x8x128xf32>
    %431 = vector.shape_cast %430 : vector<1x8x128xf32> to vector<8x128xf32>
    %432 = arith.maximumf %429, %431 : vector<8x128xf32>
    %433 = vector.extract_strided_slice %432 {offsets = [0, 0], sizes = [1, 128], strides = [1, 1]} : vector<8x128xf32> to vector<1x128xf32>
    %434 = vector.extract_strided_slice %432 {offsets = [1, 0], sizes = [1, 128], strides = [1, 1]} : vector<8x128xf32> to vector<1x128xf32>
    %435 = arith.maximumf %433, %434 : vector<1x128xf32>
    %436 = vector.extract_strided_slice %432 {offsets = [1, 0], sizes = [1, 128], strides = [1, 1]} : vector<8x128xf32> to vector<1x128xf32>
    %437 = vector.extract_strided_slice %432 {offsets = [2, 0], sizes = [1, 128], strides = [1, 1]} : vector<8x128xf32> to vector<1x128xf32>
    %438 = arith.maximumf %436, %437 : vector<1x128xf32>
    %439 = vector.extract_strided_slice %432 {offsets = [3, 0], sizes = [1, 128], strides = [1, 1]} : vector<8x128xf32> to vector<1x128xf32>
    %440 = arith.maximumf %438, %439 : vector<1x128xf32>
    %441 = vector.extract_strided_slice %432 {offsets = [3, 0], sizes = [1, 128], strides = [1, 1]} : vector<8x128xf32> to vector<1x128xf32>
    %442 = vector.extract_strided_slice %432 {offsets = [4, 0], sizes = [1, 128], strides = [1, 1]} : vector<8x128xf32> to vector<1x128xf32>
    %443 = arith.maximumf %441, %442 : vector<1x128xf32>
    %444 = vector.extract_strided_slice %432 {offsets = [5, 0], sizes = [1, 128], strides = [1, 1]} : vector<8x128xf32> to vector<1x128xf32>
    %445 = arith.maximumf %443, %444 : vector<1x128xf32>
    %446 = vector.extract_strided_slice %432 {offsets = [5, 0], sizes = [1, 128], strides = [1, 1]} : vector<8x128xf32> to vector<1x128xf32>
    %447 = vector.extract_strided_slice %432 {offsets = [6, 0], sizes = [1, 128], strides = [1, 1]} : vector<8x128xf32> to vector<1x128xf32>
    %448 = arith.maximumf %446, %447 : vector<1x128xf32>
    %449 = vector.extract_strided_slice %432 {offsets = [7, 0], sizes = [1, 128], strides = [1, 1]} : vector<8x128xf32> to vector<1x128xf32>
    %450 = arith.maximumf %448, %449 : vector<1x128xf32>
    %451 = tpu.concatenate %357, %362, %367, %372, %383, %388, %393, %398, %409, %414, %419, %424, %435, %440, %445, %450 in 0 : vector<1x128xf32>, vector<1x128xf32>, vector<1x128xf32>, vector<1x128xf32>, vector<1x128xf32>, vector<1x128xf32>, vector<1x128xf32>, vector<1x128xf32>, vector<1x128xf32>, vector<1x128xf32>, vector<1x128xf32>, vector<1x128xf32>, vector<1x128xf32>, vector<1x128xf32>, vector<1x128xf32>, vector<1x128xf32> -> vector<16x128xf32>
    %c0_395 = arith.constant 0 : index
    %c0_396 = arith.constant 0 : index
    %c0_397 = arith.constant 0 : index
    %452 = vector.load %arg4[%c0_395, %c0_396, %c0_397] : memref<1x16x128xf32, #tpu.memory_space<vmem>>, vector<1x16x128xf32>
    %453 = vector.shape_cast %452 : vector<1x16x128xf32> to vector<16x128xf32>
    %454 = vector.shape_cast %451 : vector<16x128xf32> to vector<1x16x128xf32>
    tpu.vector_store %arg4[%c0_395, %c0_396, %c0_397], %454 {strides = array<i32>} : memref<1x16x128xf32, #tpu.memory_space<vmem>>, vector<1x16x128xf32>,
    return
  }
  func.func @transform_0(%arg0: i32) -> (i32, i32, i32, i32, i32) {
    %c0_i32 = arith.constant 0 : i32
    %c0_i32_0 = arith.constant 0 : i32
    %c0_i32_1 = arith.constant 0 : i32
    %c0_i32_2 = arith.constant 0 : i32
    %c0_i32_3 = arith.constant 0 : i32
    return %arg0, %c0_i32, %c0_i32_0, %c0_i32_1, %c0_i32_2 : i32, i32, i32, i32, i32
  }
  func.func @transform_1(%arg0: i32) -> (i32, i32, i32) {
    %c0_i32 = arith.constant 0 : i32
    %c0_i32_0 = arith.constant 0 : i32
    %c0_i32_1 = arith.constant 0 : i32
    %c0_i32_2 = arith.constant 0 : i32
    return %c0_i32, %c0_i32_0, %c0_i32_1 : i32, i32, i32
  }
  func.func @transform_2(%arg0: i32) -> (i32, i32) {
    %c0_i32 = arith.constant 0 : i32
    %c0_i32_0 = arith.constant 0 : i32
    %c0_i32_1 = arith.constant 0 : i32
    return %c0_i32, %c0_i32_0 : i32, i32
  }
  func.func @transform_3(%arg0: i32) -> (i32, i32, i32) {
    %c0_i32 = arith.constant 0 : i32
    %c0_i32_0 = arith.constant 0 : i32
    %c0_i32_1 = arith.constant 0 : i32
    return %arg0, %c0_i32, %c0_i32_0 : i32, i32, i32
  }
}

module attributes {stable_mosaic.version = 11 : i64} {
  func.func @_pca_reg_kernel(%arg0: i32, %arg1: memref<2x512xf32, #tpu.memory_space<vmem>>, %arg2: memref<512x128xf32, #tpu.memory_space<vmem>>, %arg3: memref<128x128xf32, #tpu.memory_space<vmem>>, %arg4: memref<2x128xf32, #tpu.memory_space<vmem>>, %arg5: memref<2x128xf32, #tpu.memory_space<vmem>>) attributes {dimension_semantics = [#tpu.dimension_semantics<arbitrary>], iteration_bounds = array<i64: 4>, scalar_prefetch = 0 : i64, scratch_operands = 1 : i64, tpu.core_type = #tpu.core_type<tc>, window_params = [{transform_indices = @transform_0, window_bounds = array<i64: 2, 512>}, {transform_indices = @transform_1, window_bounds = array<i64: 512, 128>}, {pipeline_mode = #tpu.pipeline_mode<synchronous>, transform_indices = @transform_2, window_bounds = array<i64: 128, 128>}, {pipeline_mode = #tpu.pipeline_mode<synchronous>, transform_indices = @transform_3, window_bounds = array<i64: 2, 128>}]} {
    %c0_i32 = arith.constant 0 : i32
    %0 = arith.cmpi eq, %arg0, %c0_i32 : i32
    %1 = arith.extui %0 : i1 to i32
    %c0_i32_0 = arith.constant 0 : i32
    %2 = arith.cmpi ne, %1, %c0_i32_0 : i32
    scf.if %2 {
      %cst_9 = arith.constant 0.000000e+00 : f32
      %12 = vector.broadcast %cst_9 : f32 to vector<2x128xf32>
      %c0_10 = arith.constant 0 : index
      %c0_11 = arith.constant 0 : index
      %13 = vector.load %arg5[%c0_10, %c0_11] : memref<2x128xf32, #tpu.memory_space<vmem>>, vector<2x128xf32>
      tpu.vector_store %arg5[%c0_10, %c0_11], %12 {strides = array<i32>} : memref<2x128xf32, #tpu.memory_space<vmem>>, vector<2x128xf32>,
    } else {
    }
    %c0 = arith.constant 0 : index
    %c0_1 = arith.constant 0 : index
    %3 = vector.load %arg5[%c0, %c0_1] : memref<2x128xf32, #tpu.memory_space<vmem>>, vector<2x128xf32>
    %c0_2 = arith.constant 0 : index
    %c0_3 = arith.constant 0 : index
    %4 = vector.load %arg1[%c0_2, %c0_3] : memref<2x512xf32, #tpu.memory_space<vmem>>, vector<2x512xf32>
    %c0_4 = arith.constant 0 : index
    %c0_5 = arith.constant 0 : index
    %5 = vector.load %arg2[%c0_4, %c0_5] : memref<512x128xf32, #tpu.memory_space<vmem>>, vector<512x128xf32>
    %cst = arith.constant dense<0.000000e+00> : vector<2x128xf32>
    %6 = tpu.matmul %4, %5, %cst {dimension_numbers = #tpu.dot_dimension_numbers<[1], [0], [0], [1], [0, 0, 1, 1], [], []>} : vector<2x512xf32>, vector<512x128xf32>, vector<2x128xf32> -> vector<2x128xf32>
    %7 = arith.addf %3, %6 : vector<2x128xf32>
    %c0_6 = arith.constant 0 : index
    %c0_7 = arith.constant 0 : index
    %8 = vector.load %arg5[%c0_6, %c0_7] : memref<2x128xf32, #tpu.memory_space<vmem>>, vector<2x128xf32>
    tpu.vector_store %arg5[%c0_6, %c0_7], %7 {strides = array<i32>} : memref<2x128xf32, #tpu.memory_space<vmem>>, vector<2x128xf32>,
    %c3_i32 = arith.constant 3 : i32
    %9 = arith.cmpi eq, %arg0, %c3_i32 : i32
    %10 = arith.extui %9 : i1 to i32
    %c0_i32_8 = arith.constant 0 : i32
    %11 = arith.cmpi ne, %10, %c0_i32_8 : i32
    scf.if %11 {
      %c0_9 = arith.constant 0 : index
      %c0_10 = arith.constant 0 : index
      %12 = vector.load %arg5[%c0_9, %c0_10] : memref<2x128xf32, #tpu.memory_space<vmem>>, vector<2x128xf32>
      %c0_11 = arith.constant 0 : index
      %c0_12 = arith.constant 0 : index
      %13 = vector.load %arg3[%c0_11, %c0_12] : memref<128x128xf32, #tpu.memory_space<vmem>>, vector<128x128xf32>
      %cst_13 = arith.constant dense<0.000000e+00> : vector<2x128xf32>
      %14 = tpu.matmul %12, %13, %cst_13 {dimension_numbers = #tpu.dot_dimension_numbers<[1], [0], [0], [1], [0, 0, 1, 1], [], []>} : vector<2x128xf32>, vector<128x128xf32>, vector<2x128xf32> -> vector<2x128xf32>
      %c0_14 = arith.constant 0 : index
      %c0_15 = arith.constant 0 : index
      %15 = vector.load %arg4[%c0_14, %c0_15] : memref<2x128xf32, #tpu.memory_space<vmem>>, vector<2x128xf32>
      tpu.vector_store %arg4[%c0_14, %c0_15], %14 {strides = array<i32>} : memref<2x128xf32, #tpu.memory_space<vmem>>, vector<2x128xf32>,
    } else {
    }
    return
  }
  func.func @transform_0(%arg0: i32) -> (i32, i32) {
    %c0_i32 = arith.constant 0 : i32
    %c0_i32_0 = arith.constant 0 : i32
    return %c0_i32, %arg0 : i32, i32
  }
  func.func @transform_1(%arg0: i32) -> (i32, i32) {
    %c0_i32 = arith.constant 0 : i32
    %c0_i32_0 = arith.constant 0 : i32
    return %arg0, %c0_i32 : i32, i32
  }
  func.func @transform_2(%arg0: i32) -> (i32, i32) {
    %c0_i32 = arith.constant 0 : i32
    %c0_i32_0 = arith.constant 0 : i32
    %c0_i32_1 = arith.constant 0 : i32
    return %c0_i32, %c0_i32_0 : i32, i32
  }
  func.func @transform_3(%arg0: i32) -> (i32, i32) {
    %c0_i32 = arith.constant 0 : i32
    %c0_i32_0 = arith.constant 0 : i32
    %c0_i32_1 = arith.constant 0 : i32
    return %c0_i32, %c0_i32_0 : i32, i32
  }
}

</mosaic_0001>

<bundles_post_ra>
// kernel: reg_mapper_forward.3
= control target key start
LH: loop header
LB: loop body
LE: loop exit
PB: predicated region body
PF: predicated region fallthrough
CT: control target
= control target key end

     0   :  { %8 = vsyncpa [#allocation4], 0  ;;  %s783_s12 = smov 0   ;;  %s935_s0 = inlined_call_operand.vmem [shape: f32[2,2048], index: 0, kind: input, shape index: {}]   ;;  %s936_s1 = inlined_call_operand.vmem [shape: f32[2048,128], index: 1, kind: input, shape index: {}]   ;;  %s937_s2 = inlined_call_operand.vmem [shape: f32[128,128], index: 2, kind: input, shape index: {}]   ;;  %s938_s3 = inlined_call_operand.hbm [shape: f32[2,128], index: 3, kind: output, shape index: {}]  }
   0x1 LB: > { %s789_s13 = sadd.s32 4294967295, %s756_s12   ;;  %p569_p0 = scmp.ge.s32.totalorder %s756_s12, 1  ;;  %s756_s12 = sphi %s783_s12, %s14_s12  }
   0x2   : > { %p145_p1 = scmp.lt.s32.totalorder %s756_s12, 5 }
   0x4   : > { %p146_p2 = pnand %p569_p0, %p145_p1 }
   0x5   : > { %s570_s14 = sshll.u32 (!%p146_p2), %s789_s13, 2  ;;  %s572_s15 = sshll.u32 (!%p146_p2), %s789_s13, 6 }
   0x6   : > { %149 = sbr.rel (%p146_p2) target bundleno = 502 (0x1f6), region = 32  ;;  %p170_p3 = scmp.lt.s32.totalorder (!%p146_p2), %s570_s14, 15 }
   0x7   : > { %p176_p4 = scmp.lt.s32.totalorder (!%p146_p2), %s572_s15, 255  ;;  %p574_p5 = scmp.ne.s32.totalorder (!%p146_p2), %s789_s13, 0 }
   0xb   : > { %s940_s14 = smov (!%p170_p3, %s570_s14), 15  ;;  %s942_s15 = smov (!%p176_p4, %s572_s15), 255 }
   0xc   : > { %s571_s16 = sshll.u32 %s940_s14, 1  ;;  %s573_s20 = sshll.u32 %s942_s15, 3 }
   0xd   : > { %s798_s19 = scalar_lea.vmem %s935_s0, %s571_s16  ;;  %s803_s23 = scalar_lea.vmem %s936_s1, %s573_s20 }
   0xe   : > { %184 = sbr.rel (%p574_p5) target bundleno = 21 (0x15), region = 36 }
  0x13   : > { %v758_v0 = vmov 0.0  }
  0x14   : > { %185 = vst [vmem:[#allocation2] sm:$0x3] %v758_v0 }
  0x15 PF: > { %v219_v1 = vld [vmem:[%s803_s23 + $0xf8] sm:$0xff]  ;;  %v218_v5 = vld [vmem:[%s803_s23 + $0xf0] sm:$0xff]  ;;  %v217_v9 = vld [vmem:[%s803_s23 + $0xe8] sm:$0xff]  ;;  %v759_v31 = vmov 1983009808   ;;  %v257_v33 = vlaneseq  ;;  %p575_p6 = scmp.ne.s32.totalorder %s789_s13, 3 }
  0x16   : > { %v251_v2 = vld [vmem:[%s803_s23 + $0x1f8] sm:$0xff]  ;;  %580 = vmatprep.subr.mxu0 %v219_v1  ;;  %v250_v6 = vld [vmem:[%s803_s23 + $0x1f0] sm:$0xff]  ;;  %v249_v10 = vld [vmem:[%s803_s23 + $0x1e8] sm:$0xff]  ;;  %v255_v32 = vunpack.c.l.s4 %v759_v31 }
  0x17   : > { %v203_v3 = vld [vmem:[%s803_s23 + $0x78] sm:$0xff]  ;;  %615 = vmatprep.subr.mxu1 %v251_v2  ;;  %v202_v7 = vld [vmem:[%s803_s23 + $0x70] sm:$0xff]  ;;  %v201_v11 = vld [vmem:[%s803_s23 + $0x68] sm:$0xff]  ;;  %v258_v43 = vshrl.u32 %v257_v33, 7 }
  0x18   : > { %v235_v4 = vld [vmem:[%s803_s23 + $0x178] sm:$0xff]  ;;  %581 = vmatpush3.msra.mxu0 %v203_v3  ;;  %v234_v8 = vld [vmem:[%s803_s23 + $0x170] sm:$0xff]  ;;  %v233_v12 = vld [vmem:[%s803_s23 + $0x168] sm:$0xff]  ;;  %v256_v42 = vunpack.c.0.s8 %v255_v32 }
  0x19   : > { %616 = vmatpush3.msra.mxu1 %v235_v4  ;;  %582 = vmatprep.subr.mxu0 %v218_v5  ;;  %v216_v13 = vld [vmem:[%s803_s23 + $0xe0] sm:$0xff]  ;;  %v215_v17 = vld [vmem:[%s803_s23 + $0xd8] sm:$0xff]  ;;  %v214_v21 = vld [vmem:[%s803_s23 + $0xd0] sm:$0xff] }
  0x1a   : > { %617 = vmatprep.subr.mxu1 %v250_v6  ;;  %583 = vmatpush3.msra.mxu0 %v202_v7  ;;  %v248_v14 = vld [vmem:[%s803_s23 + $0x1e0] sm:$0xff]  ;;  %v247_v18 = vld [vmem:[%s803_s23 + $0x1d8] sm:$0xff]  ;;  %v246_v22 = vld [vmem:[%s803_s23 + $0x1d0] sm:$0xff]  ;;  %v259_v52 = vsub.s32 %v256_v42, %v258_v43 }
  0x1b   : > { %618 = vmatpush3.msra.mxu1 %v234_v8  ;;  %584 = vmatprep.subr.mxu0 %v217_v9  ;;  %v200_v15 = vld [vmem:[%s803_s23 + $0x60] sm:$0xff]  ;;  %v199_v19 = vld [vmem:[%s803_s23 + $0x58] sm:$0xff]  ;;  %v198_v23 = vld [vmem:[%s803_s23 + $0x50] sm:$0xff] }
  0x1c   : > { %619 = vmatprep.subr.mxu1 %v249_v10  ;;  %v232_v16 = vld [vmem:[%s803_s23 + $0x160] sm:$0xff]  ;;  %585 = vmatpush3.msra.mxu0 %v201_v11  ;;  %v231_v20 = vld [vmem:[%s803_s23 + $0x158] sm:$0xff]  ;;  %v230_v24 = vld [vmem:[%s803_s23 + $0x150] sm:$0xff] }
  0x1d   : > { %620 = vmatpush3.msra.mxu1 %v233_v12  ;;  %586 = vmatprep.subr.mxu0 %v216_v13  ;;  %v213_v25 = vld [vmem:[%s803_s23 + $0xc8] sm:$0xff]  ;;  %v212_v29 = vld [vmem:[%s803_s23 + $0xc0] sm:$0xff]  ;;  %v211_v36 = vld [vmem:[%s803_s23 + $0xb8] sm:$0xff] }
  0x1e   : > { %621 = vmatprep.subr.mxu1 %v248_v14  ;;  %587 = vmatpush3.msra.mxu0 %v200_v15  ;;  %v245_v26 = vld [vmem:[%s803_s23 + $0x1c8] sm:$0xff]  ;;  %v244_v30 = vld [vmem:[%s803_s23 + $0x1c0] sm:$0xff]  ;;  %v243_v37 = vld [vmem:[%s803_s23 + $0x1b8] sm:$0xff] }
  0x1f   : > { %622 = vmatpush3.msra.mxu1 %v232_v16  ;;  %588 = vmatprep.subr.mxu0 %v215_v17  ;;  %v197_v27 = vld [vmem:[%s803_s23 + $0x48] sm:$0xff]  ;;  %v196_v34 = vld [vmem:[%s803_s23 + $0x40] sm:$0xff]  ;;  %v195_v38 = vld [vmem:[%s803_s23 + $0x38] sm:$0xff] }
  0x20   : > { %623 = vmatprep.subr.mxu1 %v247_v18  ;;  %589 = vmatpush3.msra.mxu0 %v199_v19  ;;  %v229_v28 = vld [vmem:[%s803_s23 + $0x148] sm:$0xff]  ;;  %v228_v35 = vld [vmem:[%s803_s23 + $0x140] sm:$0xff]  ;;  %v227_v39 = vld [vmem:[%s803_s23 + $0x138] sm:$0xff] }
  0x21   : > { %624 = vmatpush3.msra.mxu1 %v231_v20  ;;  %590 = vmatprep.subr.mxu0 %v214_v21  ;;  %v210_v40 = vld [vmem:[%s803_s23 + $0xb0] sm:$0xff]  ;;  %v209_v46 = vld [vmem:[%s803_s23 + $0xa8] sm:$0xff]  ;;  %v208_v50 = vld [vmem:[%s803_s23 + $0xa0] sm:$0xff] }
  0x22   : > { %625 = vmatprep.subr.mxu1 %v246_v22  ;;  %591 = vmatpush3.msra.mxu0 %v198_v23  ;;  %v242_v41 = vld [vmem:[%s803_s23 + $0x1b0] sm:$0xff]  ;;  %v241_v47 = vld [vmem:[%s803_s23 + $0x1a8] sm:$0xff]  ;;  %v240_v51 = vld [vmem:[%s803_s23 + $0x1a0] sm:$0xff] }
  0x23   : > { %626 = vmatpush3.msra.mxu1 %v230_v24  ;;  %592 = vmatprep.subr.mxu0 %v213_v25  ;;  %v194_v44 = vld [vmem:[%s803_s23 + $0x30] sm:$0xff]  ;;  %v193_v48 = vld [vmem:[%s803_s23 + $0x28] sm:$0xff]  ;;  %v192_v53 = vld [vmem:[%s803_s23 + $0x20] sm:$0xff] }
  0x24   : > { %627 = vmatprep.subr.mxu1 %v245_v26  ;;  %593 = vmatpush3.msra.mxu0 %v197_v27  ;;  %v226_v45 = vld [vmem:[%s803_s23 + $0x130] sm:$0xff]  ;;  %v225_v49 = vld [vmem:[%s803_s23 + $0x128] sm:$0xff]  ;;  %v224_v54 = vld [vmem:[%s803_s23 + $0x120] sm:$0xff] }
  0x25   : > { %628 = vmatpush3.msra.mxu1 %v229_v28  ;;  %594 = vmatprep.subr.mxu0 %v212_v29  ;;  %v187_v55 = vld [vmem:[%s798_s19] sm:$0xff]  ;;  %v207_v56 = vld [vmem:[%s803_s23 + $0x98] sm:$0xff]  ;;  %v206_v61 = vld [vmem:[%s803_s23 + $0x90] sm:$0xff] }
  0x26   : > { %629 = vmatprep.subr.mxu1 %v244_v30  ;;  %595 = vmatpush3.msra.mxu0 %v196_v34  ;;  %v239_v57 = vld [vmem:[%s803_s23 + $0x198] sm:$0xff]  ;;  %v253_v58 = vcombine.high %v187_v55, %v187_v55  ;;  %v238_v62 = vld [vmem:[%s803_s23 + $0x190] sm:$0xff]  ;;  %v260_v63 = vrot.slane %v187_v55, %v259_v52  ;;  %v205_v3 = vld [vmem:[%s803_s23 + $0x88] sm:$0xff] }
  0x27   : > { %630 = vmatpush3.msra.mxu1 %v228_v35  ;;  %596 = vmatprep.subr.mxu0 %v211_v36  ;;  %v191_v59 = vld [vmem:[%s803_s23 + $0x18] sm:$0xff]  ;;  %v190_v0 = vld [vmem:[%s803_s23 + $0x10] sm:$0xff]  ;;  %v237_v4 = vld [vmem:[%s803_s23 + $0x188] sm:$0xff] }
  0x28   : > { %631 = vmatprep.subr.mxu1 %v243_v37  ;;  %597 = vmatpush3.msra.mxu0 %v195_v38  ;;  %v223_v60 = vld [vmem:[%s803_s23 + $0x118] sm:$0xff]  ;;  %v222_v1 = vld [vmem:[%s803_s23 + $0x110] sm:$0xff]  ;;  %v267_v2 = vrot.slane %v253_v58, %v259_v52  ;;  %v189_v5 = vld [vmem:[%s803_s23 + $0x8] sm:$0xff]  ;;  %v268_v9 = vcombine.high %v260_v63, %v260_v63 }
  0x29   : > { %632 = vmatpush3.msra.mxu1 %v227_v39  ;;  %598 = vmatprep.subr.mxu0 %v210_v40  ;;  %v221_v6 = vld [vmem:[%s803_s23 + $0x108] sm:$0xff]  ;;  %v204_v7 = vld [vmem:[%s803_s23 + $0x80] sm:$0xff] }
  0x2a   : > { %633 = vmatprep.subr.mxu1 %v242_v41  ;;  %599 = vmatpush3.msra.mxu0 %v194_v44  ;;  %v236_v8 = vld [vmem:[%s803_s23 + $0x180] sm:$0xff]  ;;  %v269_v11 = vcombine.high %v267_v2, %v267_v2 }
  0x2b   : > { %634 = vmatpush3.msra.mxu1 %v226_v45  ;;  %600 = vmatprep.subr.mxu0 %v209_v46  ;;  %v188_v10 = vld [vmem:[%s803_s23] sm:$0xff] }
  0x2c   : > { %635 = vmatprep.subr.mxu1 %v241_v47  ;;  %601 = vmatpush3.msra.mxu0 %v193_v48  ;;  %v220_v12 = vld [vmem:[%s803_s23 + $0x100] sm:$0xff] }
  0x2d   : > { %636 = vmatpush3.msra.mxu1 %v225_v49  ;;  %602 = vmatprep.subr.mxu0 %v208_v50  ;;  %v186_v19 = vld [vmem:[#allocation2] sm:$0x3] }
  0x2e   : > { %637 = vmatprep.subr.mxu1 %v240_v51  ;;  %603 = vmatpush3.msra.mxu0 %v192_v53 }
  0x2f   : > { %638 = vmatpush3.msra.mxu1 %v224_v54  ;;  %604 = vmatprep.subr.mxu0 %v207_v56 }
  0x30   : > { %639 = vmatprep.subr.mxu1 %v239_v57  ;;  %605 = vmatpush3.msra.mxu0 %v191_v59 }
  0x31   : > { %640 = vmatpush3.msra.mxu1 %v223_v60  ;;  %606 = vmatprep.subr.mxu0 %v206_v61 }
  0x32   : > { %641 = vmatprep.subr.mxu1 %v238_v62  ;;  %607 = vmatpush3.msra.mxu0 %v190_v0 }
  0x33   : > { %642 = vmatpush3.msra.mxu1 %v222_v1  ;;  %608 = vmatprep.subr.mxu0 %v205_v3 }
  0x34   : > { %643 = vmatprep.subr.mxu1 %v237_v4  ;;  %609 = vmatpush3.msra.mxu0 %v189_v5 }
  0x35   : > { %644 = vmatpush3.msra.mxu1 %v221_v6  ;;  %610 = vmatprep.subr.mxu0 %v204_v7 }
  0x36   : > { %645 = vmatprep.subr.mxu1 %v236_v8  ;;  %611 = vmatpush3.msra.mxu0 %v188_v10 }
  0x37   : > { %338 = vmatprep.mubr.f32.mxu0 %v268_v9  ;;  %646 = vmatpush3.msra.mxu1 %v220_v12 }
  0x38   : > { %408 = vmatprep.mubr.f32.mxu1 %v269_v11  ;;  %339 = vmatmul.mubr.f32.vlgmr.msra.gmra.mxu0 %v260_v63 }
  0x39   : > { %409 = vmatmul.mubr.f32.vlgmr.msra.gmra.mxu1 %v267_v2 }
  0xf8   : > { %v612_v13 = vpop.f32.mrf.mxu0 }
  0xf9   : > { %v647_v14 = vpop.f32.mrf.mxu1 }
  0xfa   : > { %v613_v15 = vpop.f32.mrf.mxu0 }
  0xfb   : > { %v648_v16 = vpop.f32.mrf.mxu1  ;;  %v614_v17 = vadd.f32 %v613_v15, %v612_v13 }
  0xfc   : > { %v649_v18 = vadd.f32 %v648_v16, %v647_v14 }
  0xfe   : > { %v411_v20 = vadd.f32 %v649_v18, %v614_v17  ;;  %419 = sbr.rel (%p575_p6) target bundleno = 487 (0x1e7), region = 40 }
 0x100   : > { %v414_v21 = vadd.f32 %v411_v20, %v186_v19 }
 0x102   : > { %415 = vst [vmem:[#allocation2] sm:$0x3] %v414_v21 }
 0x103   : > { %v436_v22 = vld [vmem:[%s937_s2 + $0x78] sm:$0xff]  ;;  %v760_v23 = vmov 0.0   ;;  %v435_v24 = vld [vmem:[%s937_s2 + $0x70] sm:$0xff]  ;;  %vm761_vm0 = vmmov 0   ;;  %v434_v25 = vld [vmem:[%s937_s2 + $0x68] sm:$0xff] }
 0x104   : > { %667 = vmatprep.subr.mxu0 %v760_v23  ;;  %699 = vmatprep.mubr.msk.f32.mxu0 %vm761_vm0, %v760_v23  ;;  %v433_v26 = vld [vmem:[%s937_s2 + $0x60] sm:$0xff]  ;;  %v432_v27 = vld [vmem:[%s937_s2 + $0x58] sm:$0xff]  ;;  %v431_v28 = vld [vmem:[%s937_s2 + $0x50] sm:$0xff] }
 0x105   : > { %668 = vmatpush3.msra.mxu0 %v436_v22  ;;  %v430_v29 = vld [vmem:[%s937_s2 + $0x48] sm:$0xff]  ;;  %v429_v30 = vld [vmem:[%s937_s2 + $0x40] sm:$0xff]  ;;  %v428_v31 = vld [vmem:[%s937_s2 + $0x38] sm:$0xff] }
 0x106   : > { %669 = vmatprep.subr.mxu0 %v760_v23  ;;  %v427_v32 = vld [vmem:[%s937_s2 + $0x30] sm:$0xff]  ;;  %v426_v33 = vld [vmem:[%s937_s2 + $0x28] sm:$0xff]  ;;  %v425_v34 = vld [vmem:[%s937_s2 + $0x20] sm:$0xff] }
 0x107   : > { %670 = vmatpush3.msra.mxu0 %v435_v24  ;;  %v424_v35 = vld [vmem:[%s937_s2 + $0x18] sm:$0xff]  ;;  %v423_v36 = vld [vmem:[%s937_s2 + $0x10] sm:$0xff]  ;;  %v422_v37 = vld [vmem:[%s937_s2 + $0x8] sm:$0xff] }
 0x108   : > { %671 = vmatprep.subr.mxu0 %v760_v23  ;;  %v421_v38 = vld [vmem:[%s937_s2] sm:$0xff] }
 0x109   : > { %672 = vmatpush3.msra.mxu0 %v434_v25  ;;  %v420_v39 = vld [vmem:[#allocation2] sm:$0x3] }
 0x10a   : > { %673 = vmatprep.subr.mxu0 %v760_v23 }
 0x10b   : > { %674 = vmatpush3.msra.mxu0 %v433_v26 }
 0x10c   : > { %675 = vmatprep.subr.mxu0 %v760_v23 }
 0x10d   : > { %676 = vmatpush3.msra.mxu0 %v432_v27 }
 0x10e   : > { %677 = vmatprep.subr.mxu0 %v760_v23 }
 0x10f   : > { %678 = vmatpush3.msra.mxu0 %v431_v28 }
 0x110   : > { %679 = vmatprep.subr.mxu0 %v760_v23 }
 0x111   : > { %680 = vmatpush3.msra.mxu0 %v430_v29 }
 0x112   : > { %681 = vmatprep.subr.mxu0 %v760_v23 }
 0x113   : > { %682 = vmatpush3.msra.mxu0 %v429_v30 }
 0x114   : > { %683 = vmatprep.subr.mxu0 %v760_v23 }
 0x115   : > { %684 = vmatpush3.msra.mxu0 %v428_v31 }
 0x116   : > { %685 = vmatprep.subr.mxu0 %v760_v23 }
 0x117   : > { %686 = vmatpush3.msra.mxu0 %v427_v32 }
 0x118   : > { %687 = vmatprep.subr.mxu0 %v760_v23 }
 0x119   : > { %688 = vmatpush3.msra.mxu0 %v426_v33 }
 0x11a   : > { %689 = vmatprep.subr.mxu0 %v760_v23 }
 0x11b   : > { %690 = vmatpush3.msra.mxu0 %v425_v34 }
 0x11c   : > { %691 = vmatprep.subr.mxu0 %v760_v23 }
 0x11d   : > { %692 = vmatpush3.msra.mxu0 %v424_v35 }
 0x11e   : > { %693 = vmatprep.subr.mxu0 %v760_v23 }
 0x11f   : > { %694 = vmatpush3.msra.mxu0 %v423_v36 }
 0x120   : > { %695 = vmatprep.subr.mxu0 %v760_v23 }
 0x121   : > { %696 = vmatpush3.msra.mxu0 %v422_v37 }
 0x122   : > { %697 = vmatprep.subr.mxu0 %v760_v23 }
 0x123   : > { %698 = vmatpush3.msra.mxu0 %v421_v38 }
 0x124   : > { %700 = vmatmul.mubr.f32.vlgmr.msra.gmra.mxu0 %v420_v39 }
 0x1e4   : > { %v503_v40 = vpop.f32.mrf.mxu0 }
 0x1e5   : > { %507 = vst [vmem:[#allocation3] sm:$0x3] %v503_v40 }
 0x1e6   : > { %v701_v41 = vpop.f32.mrf.mxu0 }
 0x1e7 PF: > { %p706_p7 = scmp.eq.s32.totalorder %s789_s13, 3  ;;  %s762_s4 = smov [#allocation3]  }
 0x1e8   : > { %s515_s5 = sshll.u32 %s762_s4, 4  ;;  %s516_s5 = int_to_ptr.vmem [resolvable:$true] %s515_s5 }
 0x1e9   : > { %s722_s6 = scalar_lea.vmem %s516_s5, 32  ;;  %p729_p11 = scmp.lt.s32.totalorder %s516_s5, %s516_s5 }
 0x1ea   : > { %p723_p8 = scmp.ne.s32.totalorder %s516_s5, %s722_s6  ;;  %p730_p12 = scmp.lt.s32.totalorder %s722_s6, %s722_s6 }
 0x1ec   : > { %p724_p9 = pnand %p723_p8, %p706_p7  ;;  %p731_p13 = por %p730_p12, %p729_p11 }
 0x1ee   : > { %p725_p10 = pneg %p724_p9 }
 0x1f0   : > { %p732_p0 = pnand %p731_p13, %p725_p10 }
 0x1f2   : > { %735 = shalt.err (!%p732_p0)
}
 0x1f3   : > { %703 = dma.vmem_to_hbm [thread:$0]  (%p706_p7), %s516_s5, 32, %s938_s3, [#allocation4]  }
 0x1f4   : > { %751 = dma.done.wait (%p706_p7), [#allocation4], 32  }
 0x1f5   : > { %753 = vsyncadd (%p706_p7), [#allocation4], 4294967264 }
 0x1f6 PF: > { %s14_s12 = sadd.s32 1, %s756_s12  }
 0x1f7   : > { %p11_p1 = scmp.ge.s32.totalorder %s14_s12, 6  }
 0x1f9   :  { %13 = sbr.rel (!%p11_p1) target bundleno = 1 (0x1), region = 70 }
 0x1fe   :  { %528 = vsyncpa [#allocation4], 1 }
 0x1ff   :  { %530 = vsyncpa [#allocation4 + $0x1], 1 }

// kernel: reg_mapper_forward.2
= control target key start
LH: loop header
LB: loop body
LE: loop exit
PB: predicated region body
PF: predicated region fallthrough
CT: control target
= control target key end

     0   :  { %s9711_s12 = smov 0   ;;  %s11474_s0 = inlined_call_operand.vmem [shape: f32[2,4,11,11,3], index: 0, kind: input, shape index: {}]   ;;  %s11475_s1 = inlined_call_operand.vmem [shape: f32[49,3,128], index: 1, kind: input, shape index: {}]   ;;  %s11476_s2 = inlined_call_operand.vmem [shape: f32[1,128], index: 2, kind: input, shape index: {}]   ;;  %s11477_s3 = inlined_call_operand.vmem [shape: f32[2,16,128], index: 3, kind: output, shape index: {}]  }
   0x1 LB: > { %s7684_s13 = sadd.s32 4294967295, %s9689_s12   ;;  %p7688_p0 = scmp.ge.s32.totalorder %s9689_s12, 1  ;;  %s9689_s12 = sphi %s9711_s12, %s13_s12  }
   0x2   : > { %p137_p1 = scmp.lt.s32.totalorder %s9689_s12, 3 }
   0x4   : > { %p138_p2 = pnand %p7688_p0, %p137_p1 }
   0x6   : > { %141 = sbr.rel (%p138_p2) target bundleno = 628 (0x274), region = 32 }
   0xb   : > { %v7700_v0 = vld [vmem:[%s11475_s1 + $0x4] sm:$0x7]  ;;  %vm216_vm0 = vcmask 1042432   ;;  %p161_p3 = scmp.lt.s32.totalorder %s7684_s13, 1  ;;  %v179_v1 = vld [vmem:[%s11475_s1] sm:$0x7] }
   0xc   : > { %9672 = vmatprep.subr.msk.mxu1 %vm216_vm0, %v7700_v0  ;;  %8986 = vmatprep.subr.msk.mxu0 %vm216_vm0, %v7700_v0  ;;  %v7719_v2 = vld [vmem:[%s11475_s1 + $0x8] sm:$0x7]  ;;  %vm191_vm1 = vcmask 23552   ;;  %v7737_v9 = vld [vmem:[%s11475_s1 + $0xc] sm:$0x7]  ;;  %vm7607_vm2 = vcmask 1040384  }
   0xd   : > { %9673 = vmatpush3.msk.msra.mxu1 %vm216_vm0, %v7700_v0  ;;  %8987 = vmatpush3.msk.msra.mxu0 %vm216_vm0, %v7700_v0  ;;  %s11626_s13 = smov (!%p161_p3, %s7684_s13), 1  ;;  %v7747_v10 = vld [vmem:[%s11475_s1 + $0x10] sm:$0x7]  ;;  %v7765_v19 = vld [vmem:[%s11475_s1 + $0x14] sm:$0x7]  ;;  %vm7609_vm3 = vcmask 1041408  }
   0xe   : > { %9000 = vmatprep.subr.msk.mxu1 %vm216_vm0, %v179_v1  ;;  %9014 = vmatprep.subr.msk.mxu0 %vm216_vm0, %v7719_v2  ;;  %s9674_s20 = smul.u32 704, %s11626_s13  ;;  %v7775_v20 = vld [vmem:[%s11475_s1 + $0x18] sm:$0x7]  ;;  %v7793_v37 = vld [vmem:[%s11475_s1 + $0x1c] sm:$0x7]  ;;  %vm7612_vm4 = vcmask 1043456  }
   0xf   : > { %v7811_v38 = vld [vmem:[%s11475_s1 + $0x20] sm:$0x7]  ;;  %v7829_v55 = vld [vmem:[%s11475_s1 + $0x24] sm:$0x7]  ;;  %v7847_v56 = vld [vmem:[%s11475_s1 + $0x28] sm:$0x7] }
  0x10   : > { %s9740_s23 = scalar_lea.vmem %s11474_s0, %s9674_s20  ;;  %vm7614_vm5 = vcmask 1044480   ;;  %s8544_s20 = sshll.u32 %s11626_s13, 4  ;;  %vm7616_vm6 = vcmask 1045504   ;;  %vm7618_vm7 = vcmask 1046528  }
  0x11   : > { %v7692_v3 = vld [vmem:[%s9740_s23 + $0xb0] sm:$0xff]  ;;  %v9747_v5 = vld [vmem:[%s9740_s23 + $0xc0] sm:$0xff]  ;;  %s170_s24 = scalar_lea.vmem %s11477_s3, %s8544_s20 }
  0x12   : > { %v9744_v4 = vld [vmem:[%s9740_s23 + $0xf0] sm:$0xff]  ;;  %8988 = vmatprep.mubr.msk.f32.mxu0 %vm191_vm1, %v7692_v3  ;;  %v9753_v6 = vld [vmem:[%s9740_s23 + $0x100] sm:$0xff] }
  0x13   : > { %8994 = vmatprep.mubr.msk.f32.mxu1 %vm191_vm1, %v9744_v4  ;;  %v9756_v7 = vld [vmem:[%s9740_s23 + $0xd0] sm:$0xff]  ;;  %8989 = vmatmul.mubr.msk.f32.vlgmr.msra.gmra.mxu0 %vm191_vm1, %v9747_v5  ;;  %v9774_v11 = vld [vmem:[%s9740_s23 + $0xe0] sm:$0xff] }
  0x14   : > { %v9759_v8 = vld [vmem:[%s9740_s23 + $0x110] sm:$0xff]  ;;  %8995 = vmatmul.mubr.msk.f32.vlgmr.msra.gmra.mxu1 %vm191_vm1, %v9753_v6  ;;  %9015 = vmatpush3.msk.msra.mxu0 %vm216_vm0, %v7719_v2  ;;  %v9777_v12 = vld [vmem:[%s9740_s23 + $0x120] sm:$0xff] }
  0x15   : > { %9001 = vmatpush3.msk.msra.mxu1 %vm216_vm0, %v179_v1  ;;  %8991 = vmatprep.mubr.msk.f32.mxu0 %vm191_vm1, %v9756_v7  ;;  %v171_v13 = vld [vmem:[%s9740_s23] sm:$0xff]  ;;  %v9794_v15 = vld [vmem:[%s9740_s23 + $0x10] sm:$0xff] }
  0x16   : > { %8997 = vmatprep.mubr.msk.f32.mxu1 %vm191_vm1, %v9759_v8  ;;  %v457_v14 = vld [vmem:[%s9740_s23 + $0x1] sm:$0xff]  ;;  %9028 = vmatprep.subr.msk.mxu1 %vm216_vm0, %v7737_v9  ;;  %v9797_v16 = vld [vmem:[%s9740_s23 + $0x11] sm:$0xff] }
  0x17   : > { %9042 = vmatprep.subr.msk.mxu0 %vm216_vm0, %v7747_v10  ;;  %8992 = vmatmul.mubr.msk.f32.gmra.mxu0 %vm191_vm1, %v9774_v11  ;;  %v9800_v17 = vld [vmem:[%s9740_s23 + $0x20] sm:$0xff]  ;;  %v9818_v21 = vld [vmem:[%s9740_s23 + $0x30] sm:$0xff] }
  0x18   : > { %8998 = vmatmul.mubr.msk.f32.gmra.mxu1 %vm191_vm1, %v9777_v12  ;;  %9016 = vmatprep.mubr.msk.f32.mxu0 %vm191_vm1, %v457_v14  ;;  %v9803_v18 = vld [vmem:[%s9740_s23 + $0x21] sm:$0xff]  ;;  %v9821_v22 = vld [vmem:[%s9740_s23 + $0x31] sm:$0xff] }
  0x19   : > { %9002 = vmatprep.mubr.msk.f32.mxu1 %vm191_vm1, %v171_v13  ;;  %v9828_v23 = vld [vmem:[%s9740_s23 + $0x40] sm:$0xff]  ;;  %v9844_v25 = vld [vmem:[%s9740_s23 + $0x50] sm:$0xff] }
  0x1a   : > { %v9831_v24 = vld [vmem:[%s9740_s23 + $0x41] sm:$0xff]  ;;  %v9847_v26 = vld [vmem:[%s9740_s23 + $0x51] sm:$0xff] }
  0x1b   : > { %9017 = vmatmul.mubr.msk.f32.vlgmr.msra.gmra.mxu0 %vm191_vm1, %v9797_v16  ;;  %v9850_v27 = vld [vmem:[%s9740_s23 + $0x60] sm:$0xff]  ;;  %v9864_v29 = vld [vmem:[%s9740_s23 + $0x70] sm:$0xff] }
  0x1c   : > { %9003 = vmatmul.mubr.msk.f32.vlgmr.msra.gmra.mxu1 %vm191_vm1, %v9794_v15  ;;  %9043 = vmatpush3.msk.msra.mxu0 %vm216_vm0, %v7747_v10  ;;  %v9853_v28 = vld [vmem:[%s9740_s23 + $0x61] sm:$0xff]  ;;  %v9867_v30 = vld [vmem:[%s9740_s23 + $0x71] sm:$0xff] }
  0x1d   : > { %9029 = vmatpush3.msk.msra.mxu1 %vm216_vm0, %v7737_v9  ;;  %9005 = vmatprep.mubr.msk.f32.mxu1 %vm191_vm1, %v9800_v17  ;;  %v7729_v31 = vld [vmem:[%s9740_s23 + $0xb1] sm:$0xff]  ;;  %v757_v32 = vld [vmem:[%s9740_s23 + $0x2] sm:$0xff] }
  0x1e   : > { %9019 = vmatprep.mubr.msk.f32.mxu0 %vm191_vm1, %v9803_v18  ;;  %9056 = vmatprep.subr.msk.mxu1 %vm216_vm0, %v7765_v19  ;;  %v9878_v33 = vld [vmem:[%s9740_s23 + $0xc1] sm:$0xff]  ;;  %v9881_v34 = vld [vmem:[%s9740_s23 + $0x12] sm:$0xff] }
  0x1f   : > { %9070 = vmatprep.subr.msk.mxu0 %vm216_vm0, %v7775_v20  ;;  %9020 = vmatmul.mubr.msk.f32.gmra.mxu0 %vm191_vm1, %v9821_v22  ;;  %v9884_v35 = vld [vmem:[%s9740_s23 + $0xd1] sm:$0xff]  ;;  %v9887_v36 = vld [vmem:[%s9740_s23 + $0x22] sm:$0xff] }
  0x20   : > { %9006 = vmatmul.mubr.msk.f32.gmra.mxu1 %vm191_vm1, %v9818_v21  ;;  %9022 = vmatprep.mubr.msk.f32.mxu0 %vm191_vm1, %v9831_v24  ;;  %v9902_v39 = vld [vmem:[%s9740_s23 + $0xe1] sm:$0xff]  ;;  %v9905_v40 = vld [vmem:[%s9740_s23 + $0x32] sm:$0xff] }
  0x21   : > { %9008 = vmatprep.mubr.msk.f32.mxu1 %vm191_vm1, %v9828_v23  ;;  %v9912_v41 = vld [vmem:[%s9740_s23 + $0xf1] sm:$0xff]  ;;  %v9915_v42 = vld [vmem:[%s9740_s23 + $0x42] sm:$0xff] }
  0x22   : > { %v9928_v43 = vld [vmem:[%s9740_s23 + $0x101] sm:$0xff]  ;;  %v9931_v44 = vld [vmem:[%s9740_s23 + $0x52] sm:$0xff] }
  0x23   : > { %9023 = vmatmul.mubr.msk.f32.gmra.mxu0 %vm191_vm1, %v9847_v26  ;;  %v9934_v45 = vld [vmem:[%s9740_s23 + $0x111] sm:$0xff]  ;;  %v9937_v46 = vld [vmem:[%s9740_s23 + $0x62] sm:$0xff] }
  0x24   : > { %9009 = vmatmul.mubr.msk.f32.gmra.mxu1 %vm191_vm1, %v9844_v25  ;;  %9025 = vmatprep.mubr.msk.f32.mxu0 %vm191_vm1, %v9853_v28  ;;  %v9948_v47 = vld [vmem:[%s9740_s23 + $0x121] sm:$0xff]  ;;  %v9951_v48 = vld [vmem:[%s9740_s23 + $0x72] sm:$0xff] }
  0x25   : > { %9011 = vmatprep.mubr.msk.f32.mxu1 %vm191_vm1, %v9850_v27  ;;  %v7757_v49 = vld [vmem:[%s9740_s23 + $0xb2] sm:$0xff]  ;;  %v1057_v50 = vld [vmem:[%s9740_s23 + $0x3] sm:$0xff] }
  0x26   : > { %v9962_v51 = vld [vmem:[%s9740_s23 + $0xc2] sm:$0xff]  ;;  %v9965_v52 = vld [vmem:[%s9740_s23 + $0x13] sm:$0xff] }
  0x27   : > { %9026 = vmatmul.mubr.msk.f32.gmra.mxu0 %vm191_vm1, %v9867_v30  ;;  %v9968_v53 = vld [vmem:[%s9740_s23 + $0xd2] sm:$0xff]  ;;  %v9971_v54 = vld [vmem:[%s9740_s23 + $0x23] sm:$0xff] }
  0x28   : > { %9012 = vmatmul.mubr.msk.f32.gmra.mxu1 %vm191_vm1, %v9864_v29  ;;  %9044 = vmatprep.mubr.msk.f32.mxu0 %vm191_vm1, %v757_v32  ;;  %v9986_v57 = vld [vmem:[%s9740_s23 + $0xe2] sm:$0xff]  ;;  %v9989_v58 = vld [vmem:[%s9740_s23 + $0x33] sm:$0xff] }
  0x29   : > { %9030 = vmatprep.mubr.msk.f32.mxu1 %vm191_vm1, %v7729_v31  ;;  %v9996_v59 = vld [vmem:[%s9740_s23 + $0xf2] sm:$0xff]  ;;  %v9999_v60 = vld [vmem:[%s9740_s23 + $0x43] sm:$0xff] }
  0x2a   : > { %v10012_v61 = vld [vmem:[%s9740_s23 + $0x102] sm:$0xff]  ;;  %v10015_v62 = vld [vmem:[%s9740_s23 + $0x53] sm:$0xff]  ;;  %v7883_v31 = vld [vmem:[%s11475_s1 + $0x30] sm:$0x7] }
  0x2b   : > { %9045 = vmatmul.mubr.msk.f32.vlgmr.msra.gmra.mxu0 %vm191_vm1, %v9881_v34  ;;  %v10018_v63 = vld [vmem:[%s9740_s23 + $0x112] sm:$0xff]  ;;  %v10021_v0 = vld [vmem:[%s9740_s23 + $0x63] sm:$0xff] }
  0x2c   : > { %9031 = vmatmul.mubr.msk.f32.vlgmr.msra.gmra.mxu1 %vm191_vm1, %v9878_v33  ;;  %9071 = vmatpush3.msk.msra.mxu0 %vm216_vm0, %v7775_v20  ;;  %v10032_v1 = vld [vmem:[%s9740_s23 + $0x122] sm:$0xff]  ;;  %v10035_v2 = vld [vmem:[%s9740_s23 + $0x73] sm:$0xff]  ;;  %v7865_v20 = vld [vmem:[%s11475_s1 + $0x2c] sm:$0x7] }
  0x2d   : > { %9057 = vmatpush3.msk.msra.mxu1 %vm216_vm0, %v7765_v19  ;;  %9033 = vmatprep.mubr.msk.f32.mxu1 %vm191_vm1, %v9884_v35  ;;  %v7785_v3 = vld [vmem:[%s9740_s23 + $0x160] sm:$0xff]  ;;  %v7803_v9 = vld [vmem:[%s9740_s23 + $0x210] sm:$0xff] }
  0x2e   : > { %9047 = vmatprep.mubr.msk.f32.mxu0 %vm191_vm1, %v9887_v36  ;;  %9084 = vmatprep.subr.msk.mxu1 %vm216_vm0, %v7793_v37  ;;  %v10046_v10 = vld [vmem:[%s9740_s23 + $0x170] sm:$0xff]  ;;  %v10049_v13 = vld [vmem:[%s9740_s23 + $0x220] sm:$0xff] }
  0x2f   : > { %9098 = vmatprep.subr.msk.mxu0 %vm216_vm0, %v7811_v38  ;;  %9048 = vmatmul.mubr.msk.f32.gmra.mxu0 %vm191_vm1, %v9905_v40  ;;  %v10052_v14 = vld [vmem:[%s9740_s23 + $0x180] sm:$0xff]  ;;  %v10055_v19 = vld [vmem:[%s9740_s23 + $0x230] sm:$0xff] }
  0x30   : > { %9034 = vmatmul.mubr.msk.f32.gmra.mxu1 %vm191_vm1, %v9902_v39  ;;  %9050 = vmatprep.mubr.msk.f32.mxu0 %vm191_vm1, %v9915_v42  ;;  %v10070_v32 = vld [vmem:[%s9740_s23 + $0x190] sm:$0xff] }
  0x31   : > { %9036 = vmatprep.mubr.msk.f32.mxu1 %vm191_vm1, %v9912_v41 }
  0x33   : > { %9051 = vmatmul.mubr.msk.f32.gmra.mxu0 %vm191_vm1, %v9931_v44 }
  0x34   : > { %9037 = vmatmul.mubr.msk.f32.gmra.mxu1 %vm191_vm1, %v9928_v43  ;;  %9053 = vmatprep.mubr.msk.f32.mxu0 %vm191_vm1, %v9937_v46 }
  0x35   : > { %9039 = vmatprep.mubr.msk.f32.mxu1 %vm191_vm1, %v9934_v45 }
  0x37   : > { %9054 = vmatmul.mubr.msk.f32.gmra.mxu0 %vm191_vm1, %v9951_v48 }
  0x38   : > { %9040 = vmatmul.mubr.msk.f32.gmra.mxu1 %vm191_vm1, %v9948_v47  ;;  %9072 = vmatprep.mubr.msk.f32.mxu0 %vm191_vm1, %v1057_v50  ;;  %v10096_v50 = vld [vmem:[%s9740_s23 + $0x1b0] sm:$0xff] }
  0x39   : > { %9058 = vmatprep.mubr.msk.f32.mxu1 %vm191_vm1, %v7757_v49  ;;  %v10083_v49 = vld [vmem:[%s9740_s23 + $0x250] sm:$0xff]  ;;  %11526 = vst [vmem:[#allocation5_spill] sm:$0xff] %v10096_v50 }
  0x3a   : > { %11525 = vst [vmem:[#allocation4_spill] sm:$0xff] %v10083_v49 }
  0x3b   : > { %9073 = vmatmul.mubr.msk.f32.vlgmr.msra.gmra.mxu0 %vm191_vm1, %v9965_v52 }
  0x3c   : > { %9059 = vmatmul.mubr.msk.f32.vlgmr.msra.gmra.mxu1 %vm191_vm1, %v9962_v51  ;;  %9099 = vmatpush3.msk.msra.mxu0 %vm216_vm0, %v7811_v38  ;;  %v10080_v38 = vld [vmem:[%s9740_s23 + $0x1a0] sm:$0xff] }
  0x3d   : > { %9085 = vmatpush3.msk.msra.mxu1 %vm216_vm0, %v7793_v37  ;;  %9061 = vmatprep.mubr.msk.f32.mxu1 %vm191_vm1, %v9968_v53  ;;  %v10073_v37 = vld [vmem:[%s9740_s23 + $0x240] sm:$0xff]  ;;  %11524 = vst [vmem:[#allocation3_spill] sm:$0xff] %v10080_v38 }
  0x3e   : > { %9075 = vmatprep.mubr.msk.f32.mxu0 %vm191_vm1, %v9971_v54  ;;  %9112 = vmatprep.subr.msk.mxu1 %vm216_vm0, %v7829_v55  ;;  %11523 = vst [vmem:[#allocation2_spill] sm:$0xff] %v10073_v37 }
  0x3f   : > { %9126 = vmatprep.subr.msk.mxu0 %vm216_vm0, %v7847_v56  ;;  %9076 = vmatmul.mubr.msk.f32.gmra.mxu0 %vm191_vm1, %v9989_v58 }
  0x40   : > { %9062 = vmatmul.mubr.msk.f32.gmra.mxu1 %vm191_vm1, %v9986_v57  ;;  %9078 = vmatprep.mubr.msk.f32.mxu0 %vm191_vm1, %v9999_v60 }
  0x41   : > { %9064 = vmatprep.mubr.msk.f32.mxu1 %vm191_vm1, %v9996_v59 }
  0x43   : > { %9079 = vmatmul.mubr.msk.f32.gmra.mxu0 %vm191_vm1, %v10015_v62 }
  0x44   : > { %9065 = vmatmul.mubr.msk.f32.gmra.mxu1 %vm191_vm1, %v10012_v61  ;;  %9081 = vmatprep.mubr.msk.f32.mxu0 %vm191_vm1, %v10021_v0 }
  0x45   : > { %9067 = vmatprep.mubr.msk.f32.mxu1 %vm191_vm1, %v10018_v63 }
  0x47   : > { %9082 = vmatmul.mubr.msk.f32.gmra.mxu0 %vm191_vm1, %v10035_v2 }
  0x48   : > { %9068 = vmatmul.mubr.msk.f32.gmra.mxu1 %vm191_vm1, %v10032_v1  ;;  %9100 = vmatprep.mubr.msk.f32.mxu0 %vm191_vm1, %v7803_v9  ;;  %v10116_v9 = vld [vmem:[%s9740_s23 + $0x1d0] sm:$0xff] }
  0x49   : > { %9086 = vmatprep.mubr.msk.f32.mxu1 %vm191_vm1, %v7785_v3  ;;  %v10105_v3 = vld [vmem:[%s9740_s23 + $0x270] sm:$0xff]  ;;  %11530 = vst [vmem:[#allocation9_spill] sm:$0xff] %v10116_v9 }
  0x4a   : > { %11529 = vst [vmem:[#allocation8_spill] sm:$0xff] %v10105_v3 }
  0x4b   : > { %9101 = vmatmul.mubr.msk.f32.vlgmr.msra.gmra.mxu0 %vm191_vm1, %v10049_v13 }
  0x4c   : > { %9087 = vmatmul.mubr.msk.f32.vlgmr.msra.gmra.mxu1 %vm191_vm1, %v10046_v10  ;;  %9127 = vmatpush3.msk.msra.mxu0 %vm216_vm0, %v7847_v56  ;;  %v10102_v56 = vld [vmem:[%s9740_s23 + $0x1c0] sm:$0xff] }
  0x4d   : > { %9113 = vmatpush3.msk.msra.mxu1 %vm216_vm0, %v7829_v55  ;;  %9089 = vmatprep.mubr.msk.f32.mxu1 %vm191_vm1, %v10052_v14  ;;  %v10099_v55 = vld [vmem:[%s9740_s23 + $0x260] sm:$0xff]  ;;  %11528 = vst [vmem:[#allocation7_spill] sm:$0xff] %v10102_v56 }
  0x4e   : > { %9103 = vmatprep.mubr.msk.f32.mxu0 %vm191_vm1, %v10055_v19  ;;  %9140 = vmatprep.subr.msk.mxu1 %vm216_vm0, %v7865_v20  ;;  %11527 = vst [vmem:[#allocation6_spill] sm:$0xff] %v10099_v55 }
  0x4f   : > { %9154 = vmatprep.subr.msk.mxu0 %vm216_vm0, %v7883_v31  ;;  %9104 = vmatmul.mubr.msk.f32.gmra.mxu0 %vm191_vm1, %v10073_v37  ;;  %v7839_v37 = vld [vmem:[%s9740_s23 + $0x211] sm:$0xff] }
  0x50   : > { %9090 = vmatmul.mubr.msk.f32.gmra.mxu1 %vm191_vm1, %v10070_v32  ;;  %9106 = vmatprep.mubr.msk.f32.mxu0 %vm191_vm1, %v10083_v49  ;;  %v10119_v49 = vld [vmem:[%s9740_s23 + $0x280] sm:$0xff] }
  0x51   : > { %9092 = vmatprep.mubr.msk.f32.mxu1 %vm191_vm1, %v10080_v38  ;;  %11531 = vst [vmem:[#allocation10_spill] sm:$0xff] %v10119_v49  ;;  %v7821_v38 = vld [vmem:[%s9740_s23 + $0x161] sm:$0xff] }
  0x53   : > { %9107 = vmatmul.mubr.msk.f32.gmra.mxu0 %vm191_vm1, %v10099_v55  ;;  %v10136_v55 = vld [vmem:[%s9740_s23 + $0x181] sm:$0xff] }
  0x54   : > { %9093 = vmatmul.mubr.msk.f32.gmra.mxu1 %vm191_vm1, %v10096_v50  ;;  %9109 = vmatprep.mubr.msk.f32.mxu0 %vm191_vm1, %v10105_v3  ;;  %v10130_v3 = vld [vmem:[%s9740_s23 + $0x171] sm:$0xff]  ;;  %11534 = vst [vmem:[#allocation13_spill] sm:$0xff] %v10136_v55 }
  0x55   : > { %9095 = vmatprep.mubr.msk.f32.mxu1 %vm191_vm1, %v10102_v56  ;;  %11532 = vst [vmem:[#allocation11_spill] sm:$0xff] %v10130_v3  ;;  %v10133_v56 = vld [vmem:[%s9740_s23 + $0x221] sm:$0xff]  ;;  %v10139_v50 = vld [vmem:[%s9740_s23 + $0x231] sm:$0xff] }
  0x56   : > { %11533 = vst [vmem:[#allocation12_spill] sm:$0xff] %v10133_v56  ;;  %11535 = vst [vmem:[#allocation14_spill] sm:$0xff] %v10139_v50 }
  0x57   : > { %9110 = vmatmul.mubr.msk.f32.gmra.mxu0 %vm191_vm1, %v10119_v49  ;;  %v10157_v49 = vld [vmem:[%s9740_s23 + $0x241] sm:$0xff] }
  0x58   : > { %9096 = vmatmul.mubr.msk.f32.gmra.mxu1 %vm191_vm1, %v10116_v9  ;;  %9128 = vmatprep.mubr.msk.f32.mxu0 %vm191_vm1, %v7839_v37  ;;  %v7919_v37 = vld [vmem:[%s11475_s1 + $0x38] sm:$0x7]  ;;  %11537 = vst [vmem:[#allocation16_spill] sm:$0xff] %v10157_v49 }
  0x59   : > { %9114 = vmatprep.mubr.msk.f32.mxu1 %vm191_vm1, %v7821_v38  ;;  %v7901_v38 = vld [vmem:[%s11475_s1 + $0x34] sm:$0x7] }
  0x5a   : > { %v10167_v9 = vld [vmem:[%s9740_s23 + $0x251] sm:$0xff] }
  0x5b   : > { %9129 = vmatmul.mubr.msk.f32.vlgmr.msra.gmra.mxu0 %vm191_vm1, %v10133_v56  ;;  %v10164_v56 = vld [vmem:[%s9740_s23 + $0x1a1] sm:$0xff]  ;;  %11539 = vst [vmem:[#allocation18_spill] sm:$0xff] %v10167_v9 }
  0x5c   : > { %9115 = vmatmul.mubr.msk.f32.vlgmr.msra.gmra.mxu1 %vm191_vm1, %v10130_v3  ;;  %9155 = vmatpush3.msk.msra.mxu0 %vm216_vm0, %v7883_v31  ;;  %v10154_v3 = vld [vmem:[%s9740_s23 + $0x191] sm:$0xff]  ;;  %11538 = vst [vmem:[#allocation17_spill] sm:$0xff] %v10164_v56  ;;  %v10183_v31 = vld [vmem:[%s9740_s23 + $0x261] sm:$0xff] }
  0x5d   : > { %9141 = vmatpush3.msk.msra.mxu1 %vm216_vm0, %v7865_v20  ;;  %11536 = vst [vmem:[#allocation15_spill] sm:$0xff] %v10154_v3  ;;  %9117 = vmatprep.mubr.msk.f32.mxu1 %vm191_vm1, %v10136_v55  ;;  %v10180_v20 = vld [vmem:[%s9740_s23 + $0x1b1] sm:$0xff]  ;;  %11541 = vst [vmem:[#allocation20_spill] sm:$0xff] %v10183_v31 }
  0x5e   : > { %9131 = vmatprep.mubr.msk.f32.mxu0 %vm191_vm1, %v10139_v50  ;;  %9168 = vmatprep.subr.msk.mxu1 %vm216_vm0, %v7901_v38  ;;  %11540 = vst [vmem:[#allocation19_spill] sm:$0xff] %v10180_v20  ;;  %v10186_v50 = vld [vmem:[%s9740_s23 + $0x1c1] sm:$0xff]  ;;  %v10189_v55 = vld [vmem:[%s9740_s23 + $0x271] sm:$0xff] }
  0x5f   : > { %9182 = vmatprep.subr.msk.mxu0 %vm216_vm0, %v7919_v37  ;;  %9132 = vmatmul.mubr.msk.f32.gmra.mxu0 %vm191_vm1, %v10157_v49  ;;  %11542 = vst [vmem:[#allocation21_spill] sm:$0xff] %v10186_v50  ;;  %11543 = vst [vmem:[#allocation22_spill] sm:$0xff] %v10189_v55  ;;  %v7857_v49 = vld [vmem:[%s9740_s23 + $0x162] sm:$0xff] }
  0x60   : > { %9118 = vmatmul.mubr.msk.f32.gmra.mxu1 %vm191_vm1, %v10154_v3  ;;  %9134 = vmatprep.mubr.msk.f32.mxu0 %vm191_vm1, %v10167_v9  ;;  %v10200_v9 = vld [vmem:[%s9740_s23 + $0x1d1] sm:$0xff] }
  0x61   : > { %9120 = vmatprep.mubr.msk.f32.mxu1 %vm191_vm1, %v10164_v56  ;;  %11544 = vst [vmem:[#allocation23_spill] sm:$0xff] %v10200_v9  ;;  %v10203_v56 = vld [vmem:[%s9740_s23 + $0x281] sm:$0xff]  ;;  %v7875_v3 = vld [vmem:[%s9740_s23 + $0x212] sm:$0xff] }
  0x62   : > { %11545 = vst [vmem:[#allocation24_spill] sm:$0xff] %v10203_v56 }
  0x63   : > { %9135 = vmatmul.mubr.msk.f32.gmra.mxu0 %vm191_vm1, %v10183_v31  ;;  %v10220_v31 = vld [vmem:[%s9740_s23 + $0x182] sm:$0xff] }
  0x64   : > { %9121 = vmatmul.mubr.msk.f32.gmra.mxu1 %vm191_vm1, %v10180_v20  ;;  %9137 = vmatprep.mubr.msk.f32.mxu0 %vm191_vm1, %v10189_v55  ;;  %v10214_v55 = vld [vmem:[%s9740_s23 + $0x172] sm:$0xff]  ;;  %11548 = vst [vmem:[#allocation27_spill] sm:$0xff] %v10220_v31 }
  0x65   : > { %9123 = vmatprep.mubr.msk.f32.mxu1 %vm191_vm1, %v10186_v50  ;;  %11546 = vst [vmem:[#allocation25_spill] sm:$0xff] %v10214_v55  ;;  %v10217_v50 = vld [vmem:[%s9740_s23 + $0x222] sm:$0xff]  ;;  %v10223_v20 = vld [vmem:[%s9740_s23 + $0x232] sm:$0xff] }
  0x66   : > { %11547 = vst [vmem:[#allocation26_spill] sm:$0xff] %v10217_v50  ;;  %11549 = vst [vmem:[#allocation28_spill] sm:$0xff] %v10223_v20 }
  0x67   : > { %9138 = vmatmul.mubr.msk.f32.gmra.mxu0 %vm191_vm1, %v10203_v56  ;;  %v10241_v56 = vld [vmem:[%s9740_s23 + $0x242] sm:$0xff] }
  0x68   : > { %9124 = vmatmul.mubr.msk.f32.gmra.mxu1 %vm191_vm1, %v10200_v9  ;;  %9156 = vmatprep.mubr.msk.f32.mxu0 %vm191_vm1, %v7875_v3  ;;  %v7955_v3 = vld [vmem:[%s11475_s1 + $0x40] sm:$0x7]  ;;  %11550 = vst [vmem:[#allocation29_spill] sm:$0xff] %v10241_v56  ;;  %v10251_v9 = vld [vmem:[%s9740_s23 + $0x252] sm:$0xff] }
  0x69   : > { %9142 = vmatprep.mubr.msk.f32.mxu1 %vm191_vm1, %v7857_v49  ;;  %v7937_v49 = vld [vmem:[%s11475_s1 + $0x3c] sm:$0x7]  ;;  %11552 = vst [vmem:[#allocation31_spill] sm:$0xff] %v10251_v9 }
  0x6b   : > { %9157 = vmatmul.mubr.msk.f32.vlgmr.msra.gmra.mxu0 %vm191_vm1, %v10217_v50  ;;  %v10248_v50 = vld [vmem:[%s9740_s23 + $0x1a2] sm:$0xff] }
  0x6c   : > { %9143 = vmatmul.mubr.msk.f32.vlgmr.msra.gmra.mxu1 %vm191_vm1, %v10214_v55  ;;  %9183 = vmatpush3.msk.msra.mxu0 %vm216_vm0, %v7919_v37  ;;  %v10238_v55 = vld [vmem:[%s9740_s23 + $0x192] sm:$0xff]  ;;  %11551 = vst [vmem:[#allocation30_spill] sm:$0xff] %v10248_v50  ;;  %v10267_v37 = vld [vmem:[%s9740_s23 + $0x262] sm:$0xff] }
  0x6d   : > { %9169 = vmatpush3.msk.msra.mxu1 %vm216_vm0, %v7901_v38  ;;  %9145 = vmatprep.mubr.msk.f32.mxu1 %vm191_vm1, %v10220_v31  ;;  %v10264_v38 = vld [vmem:[%s9740_s23 + $0x1b2] sm:$0xff] }
  0x6e   : > { %9159 = vmatprep.mubr.msk.f32.mxu0 %vm191_vm1, %v10223_v20  ;;  %9196 = vmatprep.subr.msk.mxu1 %vm216_vm0, %v7937_v49  ;;  %v10270_v20 = vld [vmem:[%s9740_s23 + $0x1c2] sm:$0xff]  ;;  %v10273_v31 = vld [vmem:[%s9740_s23 + $0x272] sm:$0xff] }
  0x6f   : > { %9210 = vmatprep.subr.msk.mxu0 %vm216_vm0, %v7955_v3  ;;  %9160 = vmatmul.mubr.msk.f32.gmra.mxu0 %vm191_vm1, %v10241_v56  ;;  %11553 = vst [vmem:[#allocation32_spill] sm:$0xff] %v10270_v20  ;;  %11554 = vst [vmem:[#allocation33_spill] sm:$0xff] %v10273_v31  ;;  %v7893_v56 = vld [vmem:[%s9740_s23 + $0x163] sm:$0xff] }
  0x70   : > { %9146 = vmatmul.mubr.msk.f32.gmra.mxu1 %vm191_vm1, %v10238_v55  ;;  %9162 = vmatprep.mubr.msk.f32.mxu0 %vm191_vm1, %v10251_v9  ;;  %v10284_v9 = vld [vmem:[%s9740_s23 + $0x1d2] sm:$0xff] }
  0x71   : > { %9148 = vmatprep.mubr.msk.f32.mxu1 %vm191_vm1, %v10248_v50  ;;  %v10287_v50 = vld [vmem:[%s9740_s23 + $0x282] sm:$0xff] }
  0x72   : > { %11555 = vst [vmem:[#allocation34_spill] sm:$0xff] %v10287_v50 }
  0x73   : > { %9163 = vmatmul.mubr.msk.f32.gmra.mxu0 %vm191_vm1, %v10267_v37 }
  0x74   : > { %9149 = vmatmul.mubr.msk.f32.gmra.mxu1 %vm191_vm1, %v10264_v38  ;;  %9165 = vmatprep.mubr.msk.f32.mxu0 %vm191_vm1, %v10273_v31  ;;  %v10301_v31 = vld [vmem:[%s9740_s23 + $0x183] sm:$0xff] }
  0x75   : > { %9151 = vmatprep.mubr.msk.f32.mxu1 %vm191_vm1, %v10270_v20  ;;  %v10298_v20 = vld [vmem:[%s9740_s23 + $0x173] sm:$0xff] }
  0x77   : > { %9166 = vmatmul.mubr.msk.f32.gmra.mxu0 %vm191_vm1, %v10287_v50  ;;  %v7973_v50 = vld [vmem:[%s11475_s1 + $0x44] sm:$0x7] }
  0x78   : > { %9152 = vmatmul.mubr.msk.f32.gmra.mxu1 %vm191_vm1, %v10284_v9  ;;  %9184 = vmatprep.mubr.msk.f32.mxu0 %vm191_vm1, %v9794_v15  ;;  %v7991_v15 = vld [vmem:[%s11475_s1 + $0x48] sm:$0x7] }
  0x79   : > { %9170 = vmatprep.mubr.msk.f32.mxu1 %vm191_vm1, %v7893_v56  ;;  %v10316_v56 = vld [vmem:[%s9740_s23 + $0x193] sm:$0xff] }
  0x7b   : > { %9185 = vmatmul.mubr.msk.f32.vlgmr.msra.gmra.mxu0 %vm191_vm1, %v9800_v17  ;;  %v10323_v17 = vld [vmem:[%s9740_s23 + $0x1a3] sm:$0xff] }
  0x7c   : > { %9171 = vmatmul.mubr.msk.f32.vlgmr.msra.gmra.mxu1 %vm191_vm1, %v10298_v20  ;;  %9211 = vmatpush3.msk.msra.mxu0 %vm216_vm0, %v7955_v3  ;;  %v10353_v3 = vld [vmem:[%s9740_s23 + $0x80] sm:$0xff] }
  0x7d   : > { %9197 = vmatpush3.msk.msra.mxu1 %vm216_vm0, %v7937_v49  ;;  %9173 = vmatprep.mubr.msk.f32.mxu1 %vm191_vm1, %v10301_v31  ;;  %v10336_v49 = vld [vmem:[%s9740_s23 + $0x1b3] sm:$0xff] }
  0x7e   : > { %9187 = vmatprep.mubr.msk.f32.mxu0 %vm191_vm1, %v9818_v21  ;;  %9224 = vmatprep.subr.msk.mxu1 %vm216_vm0, %v7973_v50  ;;  %v10339_v21 = vld [vmem:[%s9740_s23 + $0x1c3] sm:$0xff] }
  0x7f   : > { %9238 = vmatprep.subr.msk.mxu0 %vm216_vm0, %v7991_v15  ;;  %9188 = vmatmul.mubr.msk.f32.gmra.mxu0 %vm191_vm1, %v9828_v23  ;;  %v10350_v23 = vld [vmem:[%s9740_s23 + $0x1d3] sm:$0xff] }
  0x80   : > { %9174 = vmatmul.mubr.msk.f32.gmra.mxu1 %vm191_vm1, %v10316_v56  ;;  %9190 = vmatprep.mubr.msk.f32.mxu0 %vm191_vm1, %v9844_v25  ;;  %v8009_v25 = vld [vmem:[%s11475_s1 + $0x4c] sm:$0x7] }
  0x81   : > { %9176 = vmatprep.mubr.msk.f32.mxu1 %vm191_vm1, %v10323_v17 }
  0x83   : > { %9191 = vmatmul.mubr.msk.f32.gmra.mxu0 %vm191_vm1, %v9850_v27  ;;  %v8027_v27 = vld [vmem:[%s11475_s1 + $0x50] sm:$0x7] }
  0x84   : > { %9177 = vmatmul.mubr.msk.f32.gmra.mxu1 %vm191_vm1, %v10336_v49  ;;  %9193 = vmatprep.mubr.msk.f32.mxu0 %vm191_vm1, %v9864_v29  ;;  %v11557_v29 = vld [vmem:[#allocation3_spill] sm:$0xff] }
  0x85   : > { %9179 = vmatprep.mubr.msk.f32.mxu1 %vm191_vm1, %v10339_v21 }
  0x87   : > { %9194 = vmatmul.mubr.msk.f32.gmra.mxu0 %vm191_vm1, %v10353_v3 }
  0x88   : > { %9180 = vmatmul.mubr.msk.f32.gmra.mxu1 %vm191_vm1, %v10350_v23  ;;  %9212 = vmatprep.mubr.msk.f32.mxu0 %vm191_vm1, %v9797_v16  ;;  %v8099_v16 = vld [vmem:[%s11475_s1 + $0x60] sm:$0x7] }
  0x89   : > { %9198 = vmatprep.mubr.msk.f32.mxu1 %vm191_vm1, %v9747_v5  ;;  %v10401_v5 = vld [vmem:[%s9740_s23 + $0x81] sm:$0xff] }
  0x8b   : > { %9213 = vmatmul.mubr.msk.f32.vlgmr.msra.gmra.mxu0 %vm191_vm1, %v9803_v18  ;;  %v10494_v18 = vld [vmem:[%s9740_s23 + $0x132] sm:$0xff] }
  0x8c   : > { %9199 = vmatmul.mubr.msk.f32.vlgmr.msra.gmra.mxu1 %vm191_vm1, %v9756_v7  ;;  %9239 = vmatpush3.msk.msra.mxu0 %vm216_vm0, %v7991_v15  ;;  %v8063_v7 = vld [vmem:[%s11475_s1 + $0x58] sm:$0x7] }
  0x8d   : > { %9225 = vmatpush3.msk.msra.mxu1 %vm216_vm0, %v7973_v50  ;;  %9201 = vmatprep.mubr.msk.f32.mxu1 %vm191_vm1, %v9774_v11  ;;  %v10449_v11 = vld [vmem:[%s9740_s23 + $0x82] sm:$0xff] }
  0x8e   : > { %9215 = vmatprep.mubr.msk.f32.mxu0 %vm191_vm1, %v9821_v22  ;;  %9252 = vmatprep.subr.msk.mxu1 %vm216_vm0, %v8009_v25  ;;  %v10497_v22 = vld [vmem:[%s9740_s23 + $0x83] sm:$0xff] }
  0x8f   : > { %9266 = vmatprep.subr.msk.mxu0 %vm216_vm0, %v8027_v27  ;;  %9216 = vmatmul.mubr.msk.f32.gmra.mxu0 %vm191_vm1, %v9831_v24  ;;  %v8117_v24 = vld [vmem:[%s11475_s1 + $0x64] sm:$0x7] }
  0x90   : > { %9202 = vmatmul.mubr.msk.f32.gmra.mxu1 %vm191_vm1, %v9744_v4  ;;  %9218 = vmatprep.mubr.msk.f32.mxu0 %vm191_vm1, %v9847_v26  ;;  %v10398_v4 = vld [vmem:[%s9740_s23 + $0x130] sm:$0xff]  ;;  %v8135_v26 = vld [vmem:[%s11475_s1 + $0x68] sm:$0x7]  ;;  %v11580_v50 = vld [vmem:[#allocation26_spill] sm:$0xff] }
  0x91   : > { %9204 = vmatprep.mubr.msk.f32.mxu1 %vm191_vm1, %v9753_v6  ;;  %v8045_v6 = vld [vmem:[%s11475_s1 + $0x54] sm:$0x7] }
  0x93   : > { %9219 = vmatmul.mubr.msk.f32.gmra.mxu0 %vm191_vm1, %v9853_v28  ;;  %v11556_v28 = vld [vmem:[#allocation2_spill] sm:$0xff] }
  0x94   : > { %9205 = vmatmul.mubr.msk.f32.gmra.mxu1 %vm191_vm1, %v9759_v8  ;;  %9221 = vmatprep.mubr.msk.f32.mxu0 %vm191_vm1, %v9867_v30  ;;  %v10446_v8 = vld [vmem:[%s9740_s23 + $0x131] sm:$0xff] }
  0x95   : > { %9207 = vmatprep.mubr.msk.f32.mxu1 %vm191_vm1, %v9777_v12  ;;  %v8081_v12 = vld [vmem:[%s11475_s1 + $0x5c] sm:$0x7]  ;;  %v11558_v30 = vld [vmem:[#allocation4_spill] sm:$0xff] }
  0x97   : > { %9222 = vmatmul.mubr.msk.f32.gmra.mxu0 %vm191_vm1, %v10401_v5 }
  0x98   : > { %9208 = vmatmul.mubr.msk.f32.gmra.mxu1 %vm191_vm1, %v10398_v4  ;;  %9240 = vmatprep.mubr.msk.f32.mxu0 %vm191_vm1, %v9881_v34  ;;  %v11560_v34 = vld [vmem:[#allocation6_spill] sm:$0xff] }
  0x99   : > { %9226 = vmatprep.mubr.msk.f32.mxu1 %vm191_vm1, %v9878_v33  ;;  %v11559_v33 = vld [vmem:[#allocation5_spill] sm:$0xff] }
  0x9b   : > { %9241 = vmatmul.mubr.msk.f32.vlgmr.msra.gmra.mxu0 %vm191_vm1, %v9887_v36  ;;  %v11562_v36 = vld [vmem:[#allocation8_spill] sm:$0xff] }
  0x9c   : > { %9227 = vmatmul.mubr.msk.f32.vlgmr.msra.gmra.mxu1 %vm191_vm1, %v9884_v35  ;;  %9267 = vmatpush3.msk.msra.mxu0 %vm216_vm0, %v8027_v27  ;;  %v11561_v35 = vld [vmem:[#allocation7_spill] sm:$0xff] }
  0x9d   : > { %9253 = vmatpush3.msk.msra.mxu1 %vm216_vm0, %v8009_v25  ;;  %9229 = vmatprep.mubr.msk.f32.mxu1 %vm191_vm1, %v9902_v39  ;;  %v11563_v39 = vld [vmem:[#allocation9_spill] sm:$0xff] }
  0x9e   : > { %9243 = vmatprep.mubr.msk.f32.mxu0 %vm191_vm1, %v9905_v40  ;;  %9280 = vmatprep.subr.msk.mxu1 %vm216_vm0, %v8045_v6  ;;  %v11564_v40 = vld [vmem:[#allocation10_spill] sm:$0xff] }
  0x9f   : > { %9294 = vmatprep.subr.msk.mxu0 %vm216_vm0, %v8063_v7  ;;  %9244 = vmatmul.mubr.msk.f32.gmra.mxu0 %vm191_vm1, %v9915_v42  ;;  %v10545_v42 = vld [vmem:[%s9740_s23 + $0x290] sm:$0xff] }
  0xa0   : > { %9230 = vmatmul.mubr.msk.f32.gmra.mxu1 %vm191_vm1, %v9912_v41  ;;  %9246 = vmatprep.mubr.msk.f32.mxu0 %vm191_vm1, %v9931_v44  ;;  %v10542_v41 = vld [vmem:[%s9740_s23 + $0x1e0] sm:$0xff]  ;;  %v11566_v44 = vld [vmem:[#allocation12_spill] sm:$0xff] }
  0xa1   : > { %9232 = vmatprep.mubr.msk.f32.mxu1 %vm191_vm1, %v9928_v43  ;;  %v11565_v43 = vld [vmem:[#allocation11_spill] sm:$0xff] }
  0xa3   : > { %9247 = vmatmul.mubr.msk.f32.gmra.mxu0 %vm191_vm1, %v9937_v46  ;;  %v11568_v46 = vld [vmem:[#allocation14_spill] sm:$0xff] }
  0xa4   : > { %9233 = vmatmul.mubr.msk.f32.gmra.mxu1 %vm191_vm1, %v9934_v45  ;;  %9249 = vmatprep.mubr.msk.f32.mxu0 %vm191_vm1, %v9951_v48  ;;  %v11567_v45 = vld [vmem:[#allocation13_spill] sm:$0xff]  ;;  %v8171_v48 = vld [vmem:[%s11475_s1 + $0x70] sm:$0x7] }
  0xa5   : > { %9235 = vmatprep.mubr.msk.f32.mxu1 %vm191_vm1, %v9948_v47  ;;  %v8153_v47 = vld [vmem:[%s11475_s1 + $0x6c] sm:$0x7] }
  0xa7   : > { %9250 = vmatmul.mubr.msk.f32.gmra.mxu0 %vm191_vm1, %v10449_v11 }
  0xa8   : > { %9236 = vmatmul.mubr.msk.f32.gmra.mxu1 %vm191_vm1, %v10446_v8  ;;  %9268 = vmatprep.mubr.msk.f32.mxu0 %vm191_vm1, %v9965_v52  ;;  %v11570_v52 = vld [vmem:[#allocation16_spill] sm:$0xff] }
  0xa9   : > { %9254 = vmatprep.mubr.msk.f32.mxu1 %vm191_vm1, %v9962_v51  ;;  %v11569_v51 = vld [vmem:[#allocation15_spill] sm:$0xff] }
  0xab   : > { %9269 = vmatmul.mubr.msk.f32.vlgmr.msra.gmra.mxu0 %vm191_vm1, %v9971_v54  ;;  %v11572_v54 = vld [vmem:[#allocation18_spill] sm:$0xff] }
  0xac   : > { %9255 = vmatmul.mubr.msk.f32.vlgmr.msra.gmra.mxu1 %vm191_vm1, %v9968_v53  ;;  %9295 = vmatpush3.msk.msra.mxu0 %vm216_vm0, %v8063_v7  ;;  %v11571_v53 = vld [vmem:[#allocation17_spill] sm:$0xff]  ;;  %v11581_v7 = vld [vmem:[#allocation27_spill] sm:$0xff] }
  0xad   : > { %9281 = vmatpush3.msk.msra.mxu1 %vm216_vm0, %v8045_v6  ;;  %9257 = vmatprep.mubr.msk.f32.mxu1 %vm191_vm1, %v9986_v57  ;;  %v11573_v57 = vld [vmem:[#allocation19_spill] sm:$0xff] }
  0xae   : > { %9271 = vmatprep.mubr.msk.f32.mxu0 %vm191_vm1, %v9989_v58  ;;  %9308 = vmatprep.subr.msk.mxu1 %vm216_vm0, %v8081_v12  ;;  %v11574_v58 = vld [vmem:[#allocation20_spill] sm:$0xff] }
  0xaf   : > { %9322 = vmatprep.subr.msk.mxu0 %vm216_vm0, %v8099_v16  ;;  %9272 = vmatmul.mubr.msk.f32.gmra.mxu0 %vm191_vm1, %v9999_v60 }
  0xb0   : > { %9258 = vmatmul.mubr.msk.f32.gmra.mxu1 %vm191_vm1, %v9996_v59  ;;  %9274 = vmatprep.mubr.msk.f32.mxu0 %vm191_vm1, %v10015_v62  ;;  %v11576_v62 = vld [vmem:[#allocation22_spill] sm:$0xff] }
  0xb1   : > { %9260 = vmatprep.mubr.msk.f32.mxu1 %vm191_vm1, %v10012_v61  ;;  %v11575_v61 = vld [vmem:[#allocation21_spill] sm:$0xff] }
  0xb3   : > { %9275 = vmatmul.mubr.msk.f32.gmra.mxu0 %vm191_vm1, %v10021_v0  ;;  %v11578_v0 = vld [vmem:[#allocation24_spill] sm:$0xff] }
  0xb4   : > { %9261 = vmatmul.mubr.msk.f32.gmra.mxu1 %vm191_vm1, %v10018_v63  ;;  %9277 = vmatprep.mubr.msk.f32.mxu0 %vm191_vm1, %v10035_v2  ;;  %v11577_v63 = vld [vmem:[#allocation23_spill] sm:$0xff]  ;;  %v10593_v2 = vld [vmem:[%s9740_s23 + $0x291] sm:$0xff] }
  0xb5   : > { %9263 = vmatprep.mubr.msk.f32.mxu1 %vm191_vm1, %v10032_v1  ;;  %v10590_v1 = vld [vmem:[%s9740_s23 + $0x1e1] sm:$0xff] }
  0xb7   : > { %9278 = vmatmul.mubr.msk.f32.gmra.mxu0 %vm191_vm1, %v10497_v22 }
  0xb8   : > { %9264 = vmatmul.mubr.msk.f32.gmra.mxu1 %vm191_vm1, %v10494_v18  ;;  %9296 = vmatprep.mubr.msk.f32.mxu0 %vm191_vm1, %v10049_v13 }
  0xb9   : > { %9282 = vmatprep.mubr.msk.f32.mxu1 %vm191_vm1, %v10046_v10 }
  0xbb   : > { %9297 = vmatmul.mubr.msk.f32.vlgmr.msra.gmra.mxu0 %vm191_vm1, %v10055_v19 }
  0xbc   : > { %9283 = vmatmul.mubr.msk.f32.vlgmr.msra.gmra.mxu1 %vm191_vm1, %v10052_v14  ;;  %9323 = vmatpush3.msk.msra.mxu0 %vm216_vm0, %v8099_v16  ;;  %v8189_v16 = vld [vmem:[%s11475_s1 + $0x74] sm:$0x7] }
  0xbd   : > { %9309 = vmatpush3.msk.msra.mxu1 %vm216_vm0, %v8081_v12  ;;  %9285 = vmatprep.mubr.msk.f32.mxu1 %vm191_vm1, %v10070_v32  ;;  %v11579_v32 = vld [vmem:[#allocation25_spill] sm:$0xff]  ;;  %v11582_v12 = vld [vmem:[#allocation28_spill] sm:$0xff] }
  0xbe   : > { %9299 = vmatprep.mubr.msk.f32.mxu0 %vm191_vm1, %v11556_v28  ;;  %9336 = vmatprep.subr.msk.mxu1 %vm216_vm0, %v8117_v24 }
  0xbf   : > { %9350 = vmatprep.subr.msk.mxu0 %vm216_vm0, %v8135_v26  ;;  %9300 = vmatmul.mubr.msk.f32.gmra.mxu0 %vm191_vm1, %v11558_v30  ;;  %v11583_v30 = vld [vmem:[#allocation29_spill] sm:$0xff] }
  0xc0   : > { %9286 = vmatmul.mubr.msk.f32.gmra.mxu1 %vm191_vm1, %v11557_v29  ;;  %9302 = vmatprep.mubr.msk.f32.mxu0 %vm191_vm1, %v11560_v34 }
  0xc1   : > { %9288 = vmatprep.mubr.msk.f32.mxu1 %vm191_vm1, %v11559_v33 }
  0xc3   : > { %9303 = vmatmul.mubr.msk.f32.gmra.mxu0 %vm191_vm1, %v11562_v36 }
  0xc4   : > { %9289 = vmatmul.mubr.msk.f32.gmra.mxu1 %vm191_vm1, %v11561_v35  ;;  %9305 = vmatprep.mubr.msk.f32.mxu0 %vm191_vm1, %v11564_v40  ;;  %v11585_v40 = vld [vmem:[#allocation31_spill] sm:$0xff] }
  0xc5   : > { %9291 = vmatprep.mubr.msk.f32.mxu1 %vm191_vm1, %v11563_v39  ;;  %v11584_v39 = vld [vmem:[#allocation30_spill] sm:$0xff] }
  0xc7   : > { %9306 = vmatmul.mubr.msk.f32.gmra.mxu0 %vm191_vm1, %v10545_v42 }
  0xc8   : > { %9292 = vmatmul.mubr.msk.f32.gmra.mxu1 %vm191_vm1, %v10542_v41  ;;  %9324 = vmatprep.mubr.msk.f32.mxu0 %vm191_vm1, %v11566_v44 }
  0xc9   : > { %9310 = vmatprep.mubr.msk.f32.mxu1 %vm191_vm1, %v11565_v43 }
  0xcb   : > { %9325 = vmatmul.mubr.msk.f32.vlgmr.msra.gmra.mxu0 %vm191_vm1, %v11568_v46 }
  0xcc   : > { %9311 = vmatmul.mubr.msk.f32.vlgmr.msra.gmra.mxu1 %vm191_vm1, %v11567_v45  ;;  %9351 = vmatpush3.msk.msra.mxu0 %vm216_vm0, %v8135_v26 }
  0xcd   : > { %9337 = vmatpush3.msk.msra.mxu1 %vm216_vm0, %v8117_v24  ;;  %9313 = vmatprep.mubr.msk.f32.mxu1 %vm191_vm1, %v11569_v51  ;;  %v8207_v24 = vld [vmem:[%s11475_s1 + $0x78] sm:$0x7] }
  0xce   : > { %9327 = vmatprep.mubr.msk.f32.mxu0 %vm191_vm1, %v11570_v52  ;;  %9364 = vmatprep.subr.msk.mxu1 %vm216_vm0, %v8153_v47  ;;  %v11586_v52 = vld [vmem:[#allocation32_spill] sm:$0xff] }
  0xcf   : > { %9378 = vmatprep.subr.msk.mxu0 %vm216_vm0, %v8171_v48  ;;  %9328 = vmatmul.mubr.msk.f32.gmra.mxu0 %vm191_vm1, %v11572_v54 }
  0xd0   : > { %9314 = vmatmul.mubr.msk.f32.gmra.mxu1 %vm191_vm1, %v11571_v53  ;;  %9330 = vmatprep.mubr.msk.f32.mxu0 %vm191_vm1, %v11574_v58  ;;  %v11587_v53 = vld [vmem:[#allocation33_spill] sm:$0xff] }
  0xd1   : > { %9316 = vmatprep.mubr.msk.f32.mxu1 %vm191_vm1, %v11573_v57  ;;  %v10641_v58 = vld [vmem:[%s9740_s23 + $0x292] sm:$0xff] }
  0xd3   : > { %v8990_v59 = vpop.f32.mrf.mxu0  ;;  %9331 = vmatmul.mubr.msk.f32.gmra.mxu0 %vm191_vm1, %v11576_v62  ;;  %v8163_v62 = vld [vmem:[%s9740_s23 + $0x20] sm:$0xff] }
  0xd4   : > { %v8996_v60 = vpop.f32.mrf.mxu1  ;;  %9317 = vmatmul.mubr.msk.f32.gmra.mxu1 %vm191_vm1, %v11575_v61  ;;  %9333 = vmatprep.mubr.msk.f32.mxu0 %vm191_vm1, %v11578_v0 }
  0xd5   : > { %9319 = vmatprep.mubr.msk.f32.mxu1 %vm191_vm1, %v11577_v63  ;;  %v286_v10 = vpop.f32.mrf.mxu0 }
  0xd6   : > { %v306_v13 = vpop.f32.mrf.mxu1 }
  0xd7   : > { %v8993_v14 = vpop.f32.mrf.mxu0  ;;  %9334 = vmatmul.mubr.msk.f32.gmra.mxu0 %vm191_vm1, %v10593_v2 }
  0xd8   : > { %v8999_v19 = vpop.f32.mrf.mxu1  ;;  %9320 = vmatmul.mubr.msk.f32.gmra.mxu1 %vm191_vm1, %v10590_v1  ;;  %9352 = vmatprep.mubr.msk.f32.mxu0 %vm191_vm1, %v11580_v50 }
  0xd9   : > { %9338 = vmatprep.mubr.msk.f32.mxu1 %vm191_vm1, %v11579_v32  ;;  %v296_v15 = vpop.f32.mrf.mxu0  ;;  %v10652_v32 = vld [vmem:[%s9740_s23 + $0x30] sm:$0xff] }
  0xda   : > { %v316_v25 = vpop.f32.mrf.mxu1 }
  0xdb   : > { %v9018_v6 = vpop.f32.mrf.mxu0  ;;  %9353 = vmatmul.mubr.msk.f32.vlgmr.msra.gmra.mxu0 %vm191_vm1, %v11582_v12 }
  0xdc   : > { %v9004_v27 = vpop.f32.mrf.mxu1  ;;  %9339 = vmatmul.mubr.msk.f32.vlgmr.msra.gmra.mxu1 %vm191_vm1, %v11581_v7  ;;  %9379 = vmatpush3.msk.msra.mxu0 %vm216_vm0, %v8171_v48 }
  0xdd   : > { %v424_v26 = vadd.f32 %v9004_v27, %v8990_v59  ;;  %9365 = vmatpush3.msk.msra.mxu1 %vm216_vm0, %v8153_v47  ;;  %v560_v29 = vpop.f32.mrf.mxu0  ;;  %9341 = vmatprep.mubr.msk.f32.mxu1 %vm191_vm1, %v10238_v55 }
  0xde   : > { %v418_v28 = vpop.f32.mrf.mxu1  ;;  %9355 = vmatprep.mubr.msk.f32.mxu0 %vm191_vm1, %v11583_v30  ;;  %9392 = vmatprep.subr.msk.mxu1 %vm216_vm0, %v8189_v16  ;;  %v10681_v30 = vld [vmem:[%s9740_s23 + $0x60] sm:$0xff] }
  0xdf   : > { %v600_v33 = vadd.f32 %v9018_v6, %v424_v26  ;;  %v419_v34 = vadd.f32 %v418_v28, %v286_v10  ;;  %9406 = vmatprep.subr.msk.mxu0 %vm216_vm0, %v8207_v24  ;;  %v9021_v36 = vpop.f32.mrf.mxu0  ;;  %9356 = vmatmul.mubr.msk.f32.gmra.mxu0 %vm191_vm1, %v11585_v40  ;;  %v10655_v6 = vld [vmem:[%s9740_s23 + $0x40] sm:$0xff] }
  0xe0   : > { %v9007_v35 = vpop.f32.mrf.mxu1  ;;  %9342 = vmatmul.mubr.msk.f32.gmra.mxu1 %vm191_vm1, %v11584_v39  ;;  %9358 = vmatprep.mubr.msk.f32.mxu0 %vm191_vm1, %v10267_v37  ;;  %v10638_v37 = vld [vmem:[%s9740_s23 + $0x1e2] sm:$0xff] }
  0xe1   : > { %v599_v43 = vadd.f32 %v560_v29, %v419_v34  ;;  %v434_v55 = vadd.f32 %v9007_v35, %v8993_v14  ;;  %9344 = vmatprep.mubr.msk.f32.mxu1 %vm191_vm1, %v10264_v38  ;;  %v570_v45 = vpop.f32.mrf.mxu0  ;;  %v11588_v38 = vld [vmem:[#allocation34_spill] sm:$0xff] }
  0xe2   : > { %v428_v44 = vpop.f32.mrf.mxu1 }
  0xe3   : > { %v602_v46 = vadd.f32 %v9021_v36, %v434_v55  ;;  %v429_v47 = vadd.f32 %v428_v44, %v296_v15  ;;  %v9024_v51 = vpop.f32.mrf.mxu0  ;;  %9359 = vmatmul.mubr.msk.f32.gmra.mxu0 %vm191_vm1, %v11587_v53  ;;  %v10696_v36 = vld [vmem:[%s9740_s23 + $0x70] sm:$0xff] }
  0xe4   : > { %v9010_v48 = vpop.f32.mrf.mxu1  ;;  %9345 = vmatmul.mubr.msk.f32.gmra.mxu1 %vm191_vm1, %v11586_v52  ;;  %9361 = vmatprep.mubr.msk.f32.mxu0 %vm191_vm1, %v11588_v38  ;;  %v8199_v52 = vld [vmem:[%s9740_s23 + $0x21] sm:$0xff] }
  0xe5   : > { %v601_v54 = vadd.f32 %v570_v45, %v429_v47  ;;  %v444_v57 = vadd.f32 %v9010_v48, %v8996_v60  ;;  %9347 = vmatprep.mubr.msk.f32.mxu1 %vm191_vm1, %v10284_v9  ;;  %v580_v61 = vpop.f32.mrf.mxu0  ;;  %v10712_v47 = vld [vmem:[%s9740_s23 + $0x90] sm:$0xff] }
  0xe6   : > { %v438_v59 = vpop.f32.mrf.mxu1 }
  0xe7   : > { %v604_v63 = vadd.f32 %v9024_v51, %v444_v57  ;;  %v439_v0 = vadd.f32 %v438_v59, %v306_v13  ;;  %v9027_v14 = vpop.f32.mrf.mxu0  ;;  %9362 = vmatmul.mubr.msk.f32.gmra.mxu0 %vm191_vm1, %v10641_v58  ;;  %v8181_v51 = vld [vmem:[%s9740_s23 + $0xd0] sm:$0xff]  ;;  %v10725_v59 = vld [vmem:[%s9740_s23 + $0xe0] sm:$0xff] }
  0xe8   : > { %v9013_v10 = vpop.f32.mrf.mxu1  ;;  %9348 = vmatmul.mubr.msk.f32.gmra.mxu1 %vm191_vm1, %v10638_v37  ;;  %9380 = vmatprep.mubr.msk.f32.mxu0 %vm191_vm1, %v8163_v62 }
  0xe9   : > { %v603_v9 = vadd.f32 %v580_v61, %v439_v0  ;;  %v454_v60 = vadd.f32 %v9013_v10, %v8999_v19  ;;  %9366 = vmatprep.mubr.msk.f32.mxu1 %vm191_vm1, %v10298_v20  ;;  %v590_v13 = vpop.f32.mrf.mxu0  ;;  %v10664_v20 = vld [vmem:[%s11475_s1 + $0x7c] sm:$0x7]  ;;  %v10669_v19 = vld [vmem:[%s11475_s1 + $0x80] sm:$0x7]  ;;  %v10728_v61 = vld [vmem:[%s9740_s23 + $0x31] sm:$0xff] }
  0xea   : > { %v448_v50 = vpop.f32.mrf.mxu1 }
  0xeb   : > { %v606_v15 = vadd.f32 %v9027_v14, %v454_v60  ;;  %v449_v27 = vadd.f32 %v448_v50, %v316_v25  ;;  %v9046_v12 = vpop.f32.mrf.mxu0  ;;  %9381 = vmatmul.mubr.msk.f32.vlgmr.msra.gmra.mxu0 %vm191_vm1, %v10652_v32  ;;  %v10731_v14 = vld [vmem:[%s9740_s23 + $0xf0] sm:$0xff] }
  0xec   : > { %v9032_v7 = vpop.f32.mrf.mxu1  ;;  %9367 = vmatmul.mubr.msk.f32.vlgmr.msra.gmra.mxu1 %vm191_vm1, %v10301_v31  ;;  %9407 = vmatpush3.msk.msra.mxu0 %vm216_vm0, %v8207_v24  ;;  %v10674_v31 = vld [vmem:[%s9740_s23 + $0x50] sm:$0xff] }
  0xed   : > { %v605_v25 = vadd.f32 %v590_v13, %v449_v27  ;;  %v750_v26 = vadd.f32 %v9032_v7, %v600_v33  ;;  %9393 = vmatpush3.msk.msra.mxu1 %vm216_vm0, %v8189_v16  ;;  %v860_v29 = vpop.f32.mrf.mxu0  ;;  %9369 = vmatprep.mubr.msk.f32.mxu1 %vm191_vm1, %v10316_v56  ;;  %v10743_v13 = vld [vmem:[%s11475_s1 + $0x84] sm:$0x7] }
  0xee   : > { %v710_v28 = vpop.f32.mrf.mxu1  ;;  %9383 = vmatprep.mubr.msk.f32.mxu0 %vm191_vm1, %v10655_v6  ;;  %9420 = vmatprep.subr.msk.mxu1 %vm216_vm0, %v10664_v20 }
  0xef   : > { %v900_v34 = vadd.f32 %v9046_v12, %v750_v26  ;;  %v749_v35 = vadd.f32 %v710_v28, %v599_v43  ;;  %9434 = vmatprep.subr.msk.mxu0 %vm216_vm0, %v10669_v19  ;;  %v9049_v24 = vpop.f32.mrf.mxu0  ;;  %9384 = vmatmul.mubr.msk.f32.gmra.mxu0 %vm191_vm1, %v10674_v31  ;;  %v10755_v12 = vld [vmem:[%s9740_s23 + $0x100] sm:$0xff] }
  0xf0   : > { %v9035_v16 = vpop.f32.mrf.mxu1  ;;  %9370 = vmatmul.mubr.msk.f32.gmra.mxu1 %vm191_vm1, %v10323_v17  ;;  %9386 = vmatprep.mubr.msk.f32.mxu0 %vm191_vm1, %v10681_v30 }
  0xf1   : > { %v899_v56 = vadd.f32 %v860_v29, %v749_v35  ;;  %v752_v33 = vadd.f32 %v9035_v16, %v602_v46  ;;  %9372 = vmatprep.mubr.msk.f32.mxu1 %vm191_vm1, %v10336_v49  ;;  %v870_v40 = vpop.f32.mrf.mxu0  ;;  %v10709_v46 = vld [vmem:[%s9740_s23 + $0x1e3] sm:$0xff]  ;;  %v10765_v29 = vld [vmem:[%s9740_s23 + $0x110] sm:$0xff] }
  0xf2   : > { %v720_v39 = vpop.f32.mrf.mxu1 }
  0xf3   : > { %v902_v17 = vadd.f32 %v9049_v24, %v752_v33  ;;  %v751_v43 = vadd.f32 %v720_v39, %v601_v54  ;;  %v9052_v44 = vpop.f32.mrf.mxu0  ;;  %9387 = vmatmul.mubr.msk.f32.gmra.mxu0 %vm191_vm1, %v10696_v36  ;;  %v10786_v39 = vld [vmem:[%s9740_s23 + $0x71] sm:$0xff] }
  0xf4   : > { %v9038_v55 = vpop.f32.mrf.mxu1  ;;  %9373 = vmatmul.mubr.msk.f32.gmra.mxu1 %vm191_vm1, %v10339_v21  ;;  %9389 = vmatprep.mubr.msk.f32.mxu0 %vm191_vm1, %v10353_v3 }
  0xf5   : > { %v10702_v49 = vadd.f32 %v870_v40, %v751_v43  ;;  %v754_v45 = vadd.f32 %v9038_v55, %v604_v63  ;;  %9375 = vmatprep.mubr.msk.f32.mxu1 %vm191_vm1, %v10350_v23  ;;  %v880_v21 = vpop.f32.mrf.mxu0 }
  0xf6   : > { %v730_v48 = vpop.f32.mrf.mxu1 }
  0xf7   : > { %v904_v53 = vadd.f32 %v9052_v44, %v754_v45  ;;  %v753_v54 = vadd.f32 %v730_v48, %v603_v9  ;;  %v9055_v38 = vpop.f32.mrf.mxu0  ;;  %9390 = vmatmul.mubr.msk.f32.gmra.mxu0 %vm191_vm1, %v10712_v47  ;;  %v10734_v9 = vld [vmem:[%s9740_s23 + $0x41] sm:$0xff] }
  0xf8   : > { %v9041_v57 = vpop.f32.mrf.mxu1  ;;  %9376 = vmatmul.mubr.msk.f32.gmra.mxu1 %vm191_vm1, %v10709_v46  ;;  %9408 = vmatprep.mubr.msk.f32.mxu0 %vm191_vm1, %v8199_v52 }
  0xf9   : > { %v10720_v23 = vadd.f32 %v880_v21, %v753_v54  ;;  %v756_v3 = vadd.f32 %v9041_v57, %v606_v15  ;;  %9394 = vmatprep.mubr.msk.f32.mxu1 %vm191_vm1, %v8181_v51  ;;  %v890_v63 = vpop.f32.mrf.mxu0  ;;  %v10748_v15 = vld [vmem:[%s11475_s1 + $0x88] sm:$0x7]  ;;  %v10800_v51 = vld [vmem:[%s9740_s23 + $0x140] sm:$0xff]  ;;  %v8217_v57 = vld [vmem:[%s9740_s23 + $0xd1] sm:$0xff] }
  0xfa   : > { %v740_v62 = vpop.f32.mrf.mxu1 }
  0xfb   : > { %v906_v0 = vadd.f32 %v9055_v38, %v756_v3  ;;  %v755_v10 = vadd.f32 %v740_v62, %v605_v25  ;;  %v9074_v50 = vpop.f32.mrf.mxu0  ;;  %9409 = vmatmul.mubr.msk.f32.vlgmr.msra.gmra.mxu0 %vm191_vm1, %v10728_v61  ;;  %v10758_v25 = vld [vmem:[%s9740_s23 + $0x51] sm:$0xff]  ;;  %v8235_v38 = vld [vmem:[%s9740_s23 + $0x22] sm:$0xff] }
  0xfc   : > { %v9060_v60 = vpop.f32.mrf.mxu1  ;;  %9395 = vmatmul.mubr.msk.f32.vlgmr.msra.gmra.mxu1 %vm191_vm1, %v10725_v59  ;;  %9435 = vmatpush3.msk.msra.mxu0 %vm216_vm0, %v10669_v19 }
  0xfd   : > { %v905_v27 = vadd.f32 %v890_v63, %v755_v10  ;;  %v1050_v7 = vadd.f32 %v9060_v60, %v900_v34  ;;  %9421 = vmatpush3.msk.msra.mxu1 %vm216_vm0, %v10664_v20  ;;  %v1160_v28 = vpop.f32.mrf.mxu0  ;;  %9397 = vmatprep.mubr.msk.f32.mxu1 %vm191_vm1, %v10731_v14  ;;  %v10768_v20 = vld [vmem:[%s9740_s23 + $0x61] sm:$0xff]  ;;  %v10820_v60 = vld [vmem:[%s9740_s23 + $0x32] sm:$0xff] }
  0xfe   : > { %v1010_v26 = vpop.f32.mrf.mxu1  ;;  %9411 = vmatprep.mubr.msk.f32.mxu0 %vm191_vm1, %v10734_v9  ;;  %9448 = vmatprep.subr.msk.mxu1 %vm216_vm0, %v10743_v13  ;;  %v10817_v10 = vld [vmem:[%s9740_s23 + $0xe1] sm:$0xff] }
  0xff   : > { %v1200_v34 = vadd.f32 %v9074_v50, %v1050_v7  ;;  %v1049_v19 = vadd.f32 %v1010_v26, %v899_v56  ;;  %9462 = vmatprep.subr.msk.mxu0 %vm216_vm0, %v10748_v15  ;;  %v9077_v16 = vpop.f32.mrf.mxu0  ;;  %9412 = vmatmul.mubr.msk.f32.gmra.mxu0 %vm191_vm1, %v10758_v25  ;;  %v10783_v56 = vld [vmem:[%s9740_s23 + $0x120] sm:$0xff] }
 0x100   : > { %v9063_v35 = vpop.f32.mrf.mxu1  ;;  %9398 = vmatmul.mubr.msk.f32.gmra.mxu1 %vm191_vm1, %v10755_v12  ;;  %9414 = vmatprep.mubr.msk.f32.mxu0 %vm191_vm1, %v10768_v20 }
 0x101   : > { %v1199_v24 = vadd.f32 %v1160_v28, %v1049_v19  ;;  %v1052_v33 = vadd.f32 %v9063_v35, %v902_v17  ;;  %9400 = vmatprep.mubr.msk.f32.mxu1 %vm191_vm1, %v10765_v29  ;;  %v1170_v43 = vpop.f32.mrf.mxu0  ;;  %v10823_v28 = vld [vmem:[%s9740_s23 + $0xf1] sm:$0xff]  ;;  %v10826_v19 = vld [vmem:[%s9740_s23 + $0x42] sm:$0xff] }
 0x102   : > { %v1020_v40 = vpop.f32.mrf.mxu1 }
 0x103   : > { %v1202_v55 = vadd.f32 %v9077_v16, %v1052_v33  ;;  %v1051_v44 = vadd.f32 %v1020_v40, %v10702_v49  ;;  %v9080_v45 = vpop.f32.mrf.mxu0  ;;  %9415 = vmatmul.mubr.msk.f32.gmra.mxu0 %vm191_vm1, %v10786_v39  ;;  %v10803_v49 = vld [vmem:[%s9740_s23 + $0x91] sm:$0xff]  ;;  %v10835_v16 = vld [vmem:[%s11475_s1 + $0x8c] sm:$0x7] }
 0x104   : > { %v9066_v17 = vpop.f32.mrf.mxu1  ;;  %9401 = vmatmul.mubr.msk.f32.gmra.mxu1 %vm191_vm1, %v10783_v56  ;;  %9417 = vmatprep.mubr.msk.f32.mxu0 %vm191_vm1, %v10401_v5 }
 0x105   : > { %v10793_v48 = vadd.f32 %v1170_v43, %v1051_v44  ;;  %v1054_v21 = vadd.f32 %v9066_v17, %v904_v53  ;;  %9403 = vmatprep.mubr.msk.f32.mxu1 %vm191_vm1, %v10398_v4  ;;  %v1180_v54 = vpop.f32.mrf.mxu0  ;;  %v10847_v43 = vld [vmem:[%s9740_s23 + $0x101] sm:$0xff]  ;;  %v10850_v44 = vld [vmem:[%s9740_s23 + $0x52] sm:$0xff] }
 0x106   : > { %v1030_v52 = vpop.f32.mrf.mxu1 }
 0x107   : > { %v1204_v3 = vadd.f32 %v9080_v45, %v1054_v21  ;;  %v1053_v53 = vadd.f32 %v1030_v52, %v10720_v23  ;;  %v9083_v4 = vpop.f32.mrf.mxu0  ;;  %9418 = vmatmul.mubr.msk.f32.gmra.mxu0 %vm191_vm1, %v10803_v49 }
 0x108   : > { %v9069_v62 = vpop.f32.mrf.mxu1  ;;  %9404 = vmatmul.mubr.msk.f32.gmra.mxu1 %vm191_vm1, %v10800_v51  ;;  %9436 = vmatprep.mubr.msk.f32.mxu0 %vm191_vm1, %v8235_v38 }
 0x109   : > { %v10812_v5 = vadd.f32 %v1180_v54, %v1053_v53  ;;  %v1056_v63 = vadd.f32 %v9069_v62, %v906_v0  ;;  %9422 = vmatprep.mubr.msk.f32.mxu1 %vm191_vm1, %v8217_v57  ;;  %v1190_v50 = vpop.f32.mrf.mxu0  ;;  %v10878_v53 = vld [vmem:[%s9740_s23 + $0x72] sm:$0xff] }
 0x10a   : > { %v1040_v23 = vpop.f32.mrf.mxu1 }
 0x10b   : > { %v1206_v7 = vadd.f32 %v9083_v4, %v1056_v63  ;;  %v1055_v26 = vadd.f32 %v1040_v23, %v905_v27  ;;  %v9102_v0 = vpop.f32.mrf.mxu0  ;;  %9437 = vmatmul.mubr.msk.f32.vlgmr.msra.gmra.mxu0 %vm191_vm1, %v10820_v60  ;;  %v10840_v27 = vld [vmem:[%s11475_s1 + $0x90] sm:$0x7] }
 0x10c   : > { %v9088_v35 = vpop.f32.mrf.mxu1  ;;  %9423 = vmatmul.mubr.msk.f32.vlgmr.msra.gmra.mxu1 %vm191_vm1, %v10817_v10  ;;  %9463 = vmatpush3.msk.msra.mxu0 %vm216_vm0, %v10748_v15 }
 0x10d   : > { %v1205_v33 = vadd.f32 %v1190_v50, %v1055_v26  ;;  %v1351_v40 = vadd.f32 %v9088_v35, %v1200_v34  ;;  %9449 = vmatpush3.msk.msra.mxu1 %vm216_vm0, %v10743_v13  ;;  %v1462_v45 = vpop.f32.mrf.mxu0  ;;  %9425 = vmatprep.mubr.msk.f32.mxu1 %vm191_vm1, %v10823_v28  ;;  %v10857_v34 = vld [vmem:[%s9740_s23 + $0x111] sm:$0xff]  ;;  %v10860_v13 = vld [vmem:[%s9740_s23 + $0x62] sm:$0xff] }
 0x10e   : > { %v1311_v17 = vpop.f32.mrf.mxu1  ;;  %9439 = vmatprep.mubr.msk.f32.mxu0 %vm191_vm1, %v10826_v19  ;;  %9476 = vmatprep.subr.msk.mxu1 %vm216_vm0, %v10835_v16 }
 0x10f   : > { %v1502_v21 = vadd.f32 %v9102_v0, %v1351_v40  ;;  %v1350_v15 = vadd.f32 %v1311_v17, %v1199_v24  ;;  %9490 = vmatprep.subr.msk.mxu0 %vm216_vm0, %v10840_v27  ;;  %v9105_v54 = vpop.f32.mrf.mxu0  ;;  %9440 = vmatmul.mubr.msk.f32.gmra.mxu0 %vm191_vm1, %v10850_v44  ;;  %v10875_v24 = vld [vmem:[%s9740_s23 + $0x121] sm:$0xff] }
 0x110   : > { %v9091_v52 = vpop.f32.mrf.mxu1  ;;  %9426 = vmatmul.mubr.msk.f32.gmra.mxu1 %vm191_vm1, %v10847_v43  ;;  %9442 = vmatprep.mubr.msk.f32.mxu0 %vm191_vm1, %v10860_v13  ;;  %v10892_v0 = vld [vmem:[%s9740_s23 + $0x141] sm:$0xff] }
 0x111   : > { %v1501_v57 = vadd.f32 %v1462_v45, %v1350_v15  ;;  %v1353_v38 = vadd.f32 %v9091_v52, %v1202_v55  ;;  %9428 = vmatprep.mubr.msk.f32.mxu1 %vm191_vm1, %v10857_v34  ;;  %v1472_v4 = vpop.f32.mrf.mxu0  ;;  %v8253_v45 = vld [vmem:[%s9740_s23 + $0xd2] sm:$0xff]  ;;  %v8271_v15 = vld [vmem:[%s9740_s23 + $0x23] sm:$0xff] }
 0x112   : > { %v1321_v62 = vpop.f32.mrf.mxu1 }
 0x113   : > { %v1504_v63 = vadd.f32 %v9105_v54, %v1353_v38  ;;  %v1352_v23 = vadd.f32 %v1321_v62, %v10793_v48  ;;  %v9108_v50 = vpop.f32.mrf.mxu0  ;;  %9443 = vmatmul.mubr.msk.f32.gmra.mxu0 %vm191_vm1, %v10878_v53  ;;  %v10895_v48 = vld [vmem:[%s9740_s23 + $0x92] sm:$0xff]  ;;  %v10909_v62 = vld [vmem:[%s9740_s23 + $0xe2] sm:$0xff] }
 0x114   : > { %v9094_v55 = vpop.f32.mrf.mxu1  ;;  %9429 = vmatmul.mubr.msk.f32.gmra.mxu1 %vm191_vm1, %v10875_v24  ;;  %9445 = vmatprep.mubr.msk.f32.mxu0 %vm191_vm1, %v10449_v11  ;;  %11589 = vst [vmem:[#allocation2_spill] sm:$0xff] %v10909_v62 }
 0x115   : > { %v10885_v26 = vadd.f32 %v1472_v4, %v1352_v23  ;;  %v1355_v35 = vadd.f32 %v9094_v55, %v1204_v3  ;;  %9431 = vmatprep.mubr.msk.f32.mxu1 %vm191_vm1, %v10446_v8  ;;  %v1482_v17 = vpop.f32.mrf.mxu0  ;;  %v10912_v4 = vld [vmem:[%s9740_s23 + $0x33] sm:$0xff] }
 0x116   : > { %v1331_v40 = vpop.f32.mrf.mxu1  ;;  %11590 = vst [vmem:[#allocation3_spill] sm:$0xff] %v10912_v4 }
 0x117   : > { %v1506_v52 = vadd.f32 %v9108_v50, %v1355_v35  ;;  %v1354_v3 = vadd.f32 %v1331_v40, %v10812_v5  ;;  %v9111_v8 = vpop.f32.mrf.mxu0  ;;  %9446 = vmatmul.mubr.msk.f32.gmra.mxu0 %vm191_vm1, %v10895_v48  ;;  %v10915_v35 = vld [vmem:[%s9740_s23 + $0xf2] sm:$0xff]  ;;  %v10918_v40 = vld [vmem:[%s9740_s23 + $0x43] sm:$0xff] }
 0x118   : > { %v9097_v54 = vpop.f32.mrf.mxu1  ;;  %9432 = vmatmul.mubr.msk.f32.gmra.mxu1 %vm191_vm1, %v10892_v0  ;;  %9464 = vmatprep.mubr.msk.f32.mxu0 %vm191_vm1, %v8271_v15  ;;  %11591 = vst [vmem:[#allocation4_spill] sm:$0xff] %v10915_v35  ;;  %11592 = vst [vmem:[#allocation5_spill] sm:$0xff] %v10918_v40 }
 0x119   : > { %v10904_v11 = vadd.f32 %v1482_v17, %v1354_v3  ;;  %v1357_v38 = vadd.f32 %v9097_v54, %v1206_v7  ;;  %9450 = vmatprep.mubr.msk.f32.mxu1 %vm191_vm1, %v8253_v45  ;;  %v1492_v23 = vpop.f32.mrf.mxu0  ;;  %v10927_v45 = vld [vmem:[%s11475_s1 + $0x94] sm:$0x7]  ;;  %v10939_v54 = vld [vmem:[%s9740_s23 + $0x102] sm:$0xff] }
 0x11a   : > { %v1341_v5 = vpop.f32.mrf.mxu1  ;;  %11593 = vst [vmem:[#allocation6_spill] sm:$0xff] %v10939_v54 }
 0x11b   : > { %v1508_v55 = vadd.f32 %v9111_v8, %v1357_v38  ;;  %v1356_v50 = vadd.f32 %v1341_v5, %v1205_v33  ;;  %v9130_v7 = vpop.f32.mrf.mxu0  ;;  %9465 = vmatmul.mubr.msk.f32.vlgmr.msra.gmra.mxu0 %vm191_vm1, %v10912_v4  ;;  %v10932_v33 = vld [vmem:[%s11475_s1 + $0x98] sm:$0x7]  ;;  %v8291_v4 = vld [vmem:[%s9740_s23 + $0x1a0] sm:$0xff] }
 0x11c   : > { %v9116_v17 = vpop.f32.mrf.mxu1  ;;  %9451 = vmatmul.mubr.msk.f32.vlgmr.msra.gmra.mxu1 %vm191_vm1, %v10909_v62  ;;  %9491 = vmatpush3.msk.msra.mxu0 %vm216_vm0, %v10840_v27  ;;  %v10942_v8 = vld [vmem:[%s9740_s23 + $0x53] sm:$0xff] }
 0x11d   : > { %v1507_v15 = vadd.f32 %v1492_v23, %v1356_v50  ;;  %v1652_v3 = vadd.f32 %v9116_v17, %v1502_v21  ;;  %9477 = vmatpush3.msk.msra.mxu1 %vm216_vm0, %v10835_v16  ;;  %11594 = vst [vmem:[#allocation7_spill] sm:$0xff] %v10942_v8  ;;  %v1762_v5 = vpop.f32.mrf.mxu0  ;;  %9453 = vmatprep.mubr.msk.f32.mxu1 %vm191_vm1, %v10915_v35  ;;  %v10949_v21 = vld [vmem:[%s9740_s23 + $0x112] sm:$0xff]  ;;  %v10952_v16 = vld [vmem:[%s9740_s23 + $0x63] sm:$0xff] }
 0x11e   : > { %v1612_v38 = vpop.f32.mrf.mxu1  ;;  %9467 = vmatprep.mubr.msk.f32.mxu0 %vm191_vm1, %v10918_v40  ;;  %11595 = vst [vmem:[#allocation8_spill] sm:$0xff] %v10949_v21  ;;  %11596 = vst [vmem:[#allocation9_spill] sm:$0xff] %v10952_v16  ;;  %9504 = vmatprep.subr.msk.mxu1 %vm216_vm0, %v10927_v45 }
 0x11f   : > { %v1802_v23 = vadd.f32 %v9130_v7, %v1652_v3  ;;  %v1651_v27 = vadd.f32 %v1612_v38, %v1501_v57  ;;  %9518 = vmatprep.subr.msk.mxu0 %vm216_vm0, %v10932_v33  ;;  %v9133_v17 = vpop.f32.mrf.mxu0  ;;  %9468 = vmatmul.mubr.msk.f32.gmra.mxu0 %vm191_vm1, %v10942_v8  ;;  %v10967_v57 = vld [vmem:[%s9740_s23 + $0x122] sm:$0xff]  ;;  %v10970_v7 = vld [vmem:[%s9740_s23 + $0x73] sm:$0xff] }
 0x120   : > { %v9119_v50 = vpop.f32.mrf.mxu1  ;;  %9454 = vmatmul.mubr.msk.f32.gmra.mxu1 %vm191_vm1, %v10939_v54  ;;  %9470 = vmatprep.mubr.msk.f32.mxu0 %vm191_vm1, %v10952_v16  ;;  %11597 = vst [vmem:[#allocation10_spill] sm:$0xff] %v10967_v57  ;;  %11598 = vst [vmem:[#allocation11_spill] sm:$0xff] %v10970_v7 }
 0x121   : > { %v1801_v40 = vadd.f32 %v1762_v5, %v1651_v27  ;;  %v1654_v35 = vadd.f32 %v9119_v50, %v1504_v63  ;;  %9456 = vmatprep.mubr.msk.f32.mxu1 %vm191_vm1, %v10949_v21  ;;  %v1772_v38 = vpop.f32.mrf.mxu0  ;;  %v8307_v21 = vld [vmem:[%s9740_s23 + $0x230] sm:$0xff] }
 0x122   : > { %v1622_v3 = vpop.f32.mrf.mxu1 }
 0x123   : > { %v1804_v54 = vadd.f32 %v9133_v17, %v1654_v35  ;;  %v1653_v5 = vadd.f32 %v1622_v3, %v10885_v26  ;;  %v9136_v27 = vpop.f32.mrf.mxu0  ;;  %9471 = vmatmul.mubr.msk.f32.gmra.mxu0 %vm191_vm1, %v10970_v7  ;;  %v10984_v35 = vld [vmem:[%s9740_s23 + $0x142] sm:$0xff]  ;;  %v10987_v26 = vld [vmem:[%s9740_s23 + $0x93] sm:$0xff] }
 0x124   : > { %v9122_v63 = vpop.f32.mrf.mxu1  ;;  %9457 = vmatmul.mubr.msk.f32.gmra.mxu1 %vm191_vm1, %v10967_v57  ;;  %9473 = vmatprep.mubr.msk.f32.mxu0 %vm191_vm1, %v10497_v22  ;;  %11599 = vst [vmem:[#allocation12_spill] sm:$0xff] %v10984_v35  ;;  %11600 = vst [vmem:[#allocation13_spill] sm:$0xff] %v10987_v26  ;;  %v8289_v57 = vld [vmem:[%s9740_s23 + $0x180] sm:$0xff] }
 0x125   : > { %v10977_v50 = vadd.f32 %v1772_v38, %v1653_v5  ;;  %v1656_v16 = vadd.f32 %v9122_v63, %v1506_v52  ;;  %9459 = vmatprep.mubr.msk.f32.mxu1 %vm191_vm1, %v10494_v18  ;;  %v1782_v3 = vpop.f32.mrf.mxu0  ;;  %v8308_v63 = vld [vmem:[%s9740_s23 + $0x240] sm:$0xff] }
 0x126   : > { %v1632_v17 = vpop.f32.mrf.mxu1 }
 0x127   : > { %v1806_v7 = vadd.f32 %v9136_v27, %v1656_v16  ;;  %v1655_v52 = vadd.f32 %v1632_v17, %v10904_v11  ;;  %v9139_v18 = vpop.f32.mrf.mxu0  ;;  %9474 = vmatmul.mubr.msk.f32.gmra.mxu0 %vm191_vm1, %v10987_v26  ;;  %v8290_v16 = vld [vmem:[%s9740_s23 + $0x190] sm:$0xff] }
 0x128   : > { %v9125_v38 = vpop.f32.mrf.mxu1  ;;  %9460 = vmatmul.mubr.msk.f32.gmra.mxu1 %vm191_vm1, %v10984_v35  ;;  %9492 = vmatprep.mubr.msk.f32.mxu0 %vm191_vm1, %v8307_v21  ;;  %v8309_v35 = vld [vmem:[%s9740_s23 + $0x250] sm:$0xff]  ;;  %v11014_v21 = vld [vmem:[%s11475_s1 + $0xa0] sm:$0x7] }
 0x129   : > { %v10996_v22 = vadd.f32 %v1782_v3, %v1655_v52  ;;  %v1658_v5 = vadd.f32 %v9125_v38, %v1508_v55  ;;  %9478 = vmatprep.mubr.msk.f32.mxu1 %vm191_vm1, %v8289_v57  ;;  %v1792_v11 = vpop.f32.mrf.mxu0  ;;  %v11009_v55 = vld [vmem:[%s11475_s1 + $0x9c] sm:$0x7]  ;;  %v8292_v3 = vld [vmem:[%s9740_s23 + $0x1b0] sm:$0xff]  ;;  %v8310_v52 = vld [vmem:[%s9740_s23 + $0x260] sm:$0xff] }
 0x12a   : > { %v1642_v27 = vpop.f32.mrf.mxu1 }
 0x12b   : > { %v1808_v17 = vadd.f32 %v9139_v18, %v1658_v5  ;;  %v1657_v8 = vadd.f32 %v1642_v27, %v1507_v15  ;;  %v9158_v26 = vpop.f32.mrf.mxu0  ;;  %9493 = vmatmul.mubr.msk.f32.vlgmr.msra.gmra.mxu0 %vm191_vm1, %v8308_v63  ;;  %v8293_v5 = vld [vmem:[%s9740_s23 + $0x1c0] sm:$0xff] }
 0x12c   : > { %v9144_v62 = vpop.f32.mrf.mxu1  ;;  %9479 = vmatmul.mubr.msk.f32.vlgmr.msra.gmra.mxu1 %vm191_vm1, %v8290_v16  ;;  %9519 = vmatpush3.msk.msra.mxu0 %vm216_vm0, %v10932_v33  ;;  %v8311_v16 = vld [vmem:[%s9740_s23 + $0x270] sm:$0xff] }
 0x12d   : > { %v1807_v15 = vadd.f32 %v1792_v11, %v1657_v8  ;;  %v1952_v57 = vadd.f32 %v9144_v62, %v1802_v23  ;;  %9505 = vmatpush3.msk.msra.mxu1 %vm216_vm0, %v10927_v45  ;;  %v2062_v18 = vpop.f32.mrf.mxu0  ;;  %9481 = vmatprep.mubr.msk.f32.mxu1 %vm191_vm1, %v8291_v4 }
 0x12e   : > { %v1912_v38 = vpop.f32.mrf.mxu1  ;;  %9495 = vmatprep.mubr.msk.f32.mxu0 %vm191_vm1, %v8309_v35  ;;  %9532 = vmatprep.subr.msk.mxu1 %vm216_vm0, %v11009_v55  ;;  %v8312_v35 = vld [vmem:[%s9740_s23 + $0x280] sm:$0xff] }
 0x12f   : > { %v2102_v8 = vadd.f32 %v9158_v26, %v1952_v57  ;;  %v1951_v62 = vadd.f32 %v1912_v38, %v1801_v40  ;;  %9546 = vmatprep.subr.msk.mxu0 %vm216_vm0, %v11014_v21  ;;  %v9161_v33 = vpop.f32.mrf.mxu0  ;;  %9496 = vmatmul.mubr.msk.f32.gmra.mxu0 %vm191_vm1, %v8310_v52  ;;  %v8294_v40 = vld [vmem:[%s9740_s23 + $0x1d0] sm:$0xff] }
 0x130   : > { %v9147_v45 = vpop.f32.mrf.mxu1  ;;  %9482 = vmatmul.mubr.msk.f32.gmra.mxu1 %vm191_vm1, %v8292_v3  ;;  %9498 = vmatprep.mubr.msk.f32.mxu0 %vm191_vm1, %v8311_v16  ;;  %v8296_v38 = vld [vmem:[%s9740_s23 + $0x1f0] sm:$0xff]  ;;  %v8325_v16 = vld [vmem:[%s9740_s23 + $0x181] sm:$0xff] }
 0x131   : > { %v2101_v4 = vadd.f32 %v2062_v18, %v1951_v62  ;;  %v1954_v23 = vadd.f32 %v9147_v45, %v1804_v54  ;;  %9484 = vmatprep.mubr.msk.f32.mxu1 %vm191_vm1, %v8293_v5  ;;  %v2072_v63 = vpop.f32.mrf.mxu0  ;;  %v8314_v18 = vld [vmem:[%s9740_s23 + $0x2a0] sm:$0xff]  ;;  %v8343_v62 = vld [vmem:[%s9740_s23 + $0x231] sm:$0xff] }
 0x132   : > { %v1922_v26 = vpop.f32.mrf.mxu1 }
 0x133   : > { %v2104_v27 = vadd.f32 %v9161_v33, %v1954_v23  ;;  %v1953_v11 = vadd.f32 %v1922_v26, %v10977_v50  ;;  %v9164_v3 = vpop.f32.mrf.mxu0  ;;  %9499 = vmatmul.mubr.msk.f32.gmra.mxu0 %vm191_vm1, %v8312_v35  ;;  %v8344_v35 = vld [vmem:[%s9740_s23 + $0x241] sm:$0xff] }
 0x134   : > { %v9150_v57 = vpop.f32.mrf.mxu1  ;;  %9485 = vmatmul.mubr.msk.f32.gmra.mxu1 %vm191_vm1, %v8294_v40  ;;  %9501 = vmatprep.mubr.msk.f32.mxu0 %vm191_vm1, %v10545_v42  ;;  %v8326_v40 = vld [vmem:[%s9740_s23 + $0x191] sm:$0xff] }
 0x135   : > { %v11039_v54 = vadd.f32 %v2072_v63, %v1953_v11  ;;  %v1956_v52 = vadd.f32 %v9150_v57, %v1806_v7  ;;  %9487 = vmatprep.mubr.msk.f32.mxu1 %vm191_vm1, %v10542_v41  ;;  %v2082_v5 = vpop.f32.mrf.mxu0  ;;  %v8327_v57 = vld [vmem:[%s9740_s23 + $0x1a1] sm:$0xff] }
 0x136   : > { %v1932_v50 = vpop.f32.mrf.mxu1 }
 0x137   : > { %v2106_v45 = vadd.f32 %v9164_v3, %v1956_v52  ;;  %v1955_v33 = vadd.f32 %v1932_v50, %v10996_v22  ;;  %v9167_v23 = vpop.f32.mrf.mxu0  ;;  %9502 = vmatmul.mubr.msk.f32.gmra.mxu0 %vm191_vm1, %v8314_v18  ;;  %v8345_v3 = vld [vmem:[%s9740_s23 + $0x251] sm:$0xff]  ;;  %v11070_v18 = vld [vmem:[%s11475_s1 + $0xa8] sm:$0x7] }
 0x138   : > { %v9153_v7 = vpop.f32.mrf.mxu1  ;;  %9488 = vmatmul.mubr.msk.f32.gmra.mxu1 %vm191_vm1, %v8296_v38  ;;  %9520 = vmatprep.mubr.msk.f32.mxu0 %vm191_vm1, %v8343_v62 }
 0x139   : > { %v11052_v41 = vadd.f32 %v2082_v5, %v1955_v33  ;;  %v1958_v42 = vadd.f32 %v9153_v7, %v1808_v17  ;;  %9506 = vmatprep.mubr.msk.f32.mxu1 %vm191_vm1, %v8325_v16  ;;  %v2092_v63 = vpop.f32.mrf.mxu0  ;;  %v11065_v17 = vld [vmem:[%s11475_s1 + $0xa4] sm:$0x7]  ;;  %v8328_v5 = vld [vmem:[%s9740_s23 + $0x1b1] sm:$0xff] }
 0x13a   : > { %v1942_v26 = vpop.f32.mrf.mxu1  ;;  %v8346_v16 = vld [vmem:[%s9740_s23 + $0x261] sm:$0xff] }
 0x13b   : > { %v2108_v22 = vadd.f32 %v9167_v23, %v1958_v42  ;;  %v1957_v11 = vadd.f32 %v1942_v26, %v1807_v15  ;;  %v9186_v38 = vpop.f32.mrf.mxu0  ;;  %9521 = vmatmul.mubr.msk.f32.vlgmr.msra.gmra.mxu0 %vm191_vm1, %v8344_v35  ;;  %v8329_v7 = vld [vmem:[%s9740_s23 + $0x1c1] sm:$0xff]  ;;  %v8347_v23 = vld [vmem:[%s9740_s23 + $0x271] sm:$0xff] }
 0x13c   : > { %v9172_v52 = vpop.f32.mrf.mxu1  ;;  %9507 = vmatmul.mubr.msk.f32.vlgmr.msra.gmra.mxu1 %vm191_vm1, %v8326_v40  ;;  %9547 = vmatpush3.msk.msra.mxu0 %vm216_vm0, %v11014_v21  ;;  %v8348_v26 = vld [vmem:[%s9740_s23 + $0x281] sm:$0xff] }
 0x13d   : > { %v2107_v15 = vadd.f32 %v2092_v63, %v1957_v11  ;;  %v2252_v50 = vadd.f32 %v9172_v52, %v2102_v8  ;;  %9533 = vmatpush3.msk.msra.mxu1 %vm216_vm0, %v11009_v55  ;;  %v2363_v33 = vpop.f32.mrf.mxu0  ;;  %9509 = vmatprep.mubr.msk.f32.mxu1 %vm191_vm1, %v8327_v57 }
 0x13e   : > { %v2212_v62 = vpop.f32.mrf.mxu1  ;;  %9523 = vmatprep.mubr.msk.f32.mxu0 %vm191_vm1, %v8345_v3  ;;  %9560 = vmatprep.subr.msk.mxu1 %vm216_vm0, %v11065_v17 }
 0x13f   : > { %v2403_v42 = vadd.f32 %v9186_v38, %v2252_v50  ;;  %v2251_v8 = vadd.f32 %v2212_v62, %v2101_v4  ;;  %9574 = vmatprep.subr.msk.mxu0 %vm216_vm0, %v11070_v18  ;;  %v9189_v21 = vpop.f32.mrf.mxu0  ;;  %9524 = vmatmul.mubr.msk.f32.gmra.mxu0 %vm191_vm1, %v8346_v16  ;;  %v8330_v4 = vld [vmem:[%s9740_s23 + $0x1d1] sm:$0xff]  ;;  %v8350_v16 = vld [vmem:[%s9740_s23 + $0x2a1] sm:$0xff] }
 0x140   : > { %v9175_v55 = vpop.f32.mrf.mxu1  ;;  %9510 = vmatmul.mubr.msk.f32.gmra.mxu1 %vm191_vm1, %v8328_v5  ;;  %9526 = vmatprep.mubr.msk.f32.mxu0 %vm191_vm1, %v8347_v23  ;;  %v8332_v5 = vld [vmem:[%s9740_s23 + $0x1f1] sm:$0xff] }
 0x141   : > { %v2402_v40 = vadd.f32 %v2363_v33, %v2251_v8  ;;  %v2254_v35 = vadd.f32 %v9175_v55, %v2104_v27  ;;  %9512 = vmatprep.mubr.msk.f32.mxu1 %vm191_vm1, %v8329_v7  ;;  %v2373_v11 = vpop.f32.mrf.mxu0  ;;  %v8361_v33 = vld [vmem:[%s9740_s23 + $0x182] sm:$0xff]  ;;  %v8379_v7 = vld [vmem:[%s9740_s23 + $0x232] sm:$0xff] }
 0x142   : > { %v2222_v63 = vpop.f32.mrf.mxu1 }
 0x143   : > { %v2405_v57 = vadd.f32 %v9189_v21, %v2254_v35  ;;  %v2253_v3 = vadd.f32 %v2222_v63, %v11039_v54  ;;  %v9192_v38 = vpop.f32.mrf.mxu0  ;;  %9527 = vmatmul.mubr.msk.f32.gmra.mxu0 %vm191_vm1, %v8348_v26  ;;  %v8362_v21 = vld [vmem:[%s9740_s23 + $0x192] sm:$0xff]  ;;  %v8380_v35 = vld [vmem:[%s9740_s23 + $0x242] sm:$0xff] }
 0x144   : > { %v9178_v52 = vpop.f32.mrf.mxu1  ;;  %9513 = vmatmul.mubr.msk.f32.gmra.mxu1 %vm191_vm1, %v8330_v4  ;;  %9529 = vmatprep.mubr.msk.f32.mxu0 %vm191_vm1, %v10593_v2 }
 0x145   : > { %v11095_v27 = vadd.f32 %v2373_v11, %v2253_v3  ;;  %v2256_v50 = vadd.f32 %v9178_v52, %v2106_v45  ;;  %9515 = vmatprep.mubr.msk.f32.mxu1 %vm191_vm1, %v10590_v1  ;;  %v2383_v62 = vpop.f32.mrf.mxu0  ;;  %v8363_v11 = vld [vmem:[%s9740_s23 + $0x1a2] sm:$0xff]  ;;  %v8381_v3 = vld [vmem:[%s9740_s23 + $0x252] sm:$0xff] }
 0x146   : > { %v2232_v54 = vpop.f32.mrf.mxu1 }
 0x147   : > { %v2407_v23 = vadd.f32 %v9192_v38, %v2256_v50  ;;  %v2255_v8 = vadd.f32 %v2232_v54, %v11052_v41  ;;  %v9195_v55 = vpop.f32.mrf.mxu0  ;;  %9530 = vmatmul.mubr.msk.f32.gmra.mxu0 %vm191_vm1, %v8350_v16  ;;  %v11124_v50 = vld [vmem:[%s11475_s1 + $0xb0] sm:$0x7]  ;;  %v8382_v54 = vld [vmem:[%s9740_s23 + $0x262] sm:$0xff] }
 0x148   : > { %v9181_v45 = vpop.f32.mrf.mxu1  ;;  %9516 = vmatmul.mubr.msk.f32.gmra.mxu1 %vm191_vm1, %v8332_v5  ;;  %9548 = vmatprep.mubr.msk.f32.mxu0 %vm191_vm1, %v8379_v7  ;;  %v8364_v16 = vld [vmem:[%s9740_s23 + $0x1b2] sm:$0xff]  ;;  %v8365_v7 = vld [vmem:[%s9740_s23 + $0x1c2] sm:$0xff] }
 0x149   : > { %v2406_v1 = vadd.f32 %v2383_v62, %v2255_v8  ;;  %v2258_v2 = vadd.f32 %v9181_v45, %v2108_v22  ;;  %9534 = vmatprep.mubr.msk.f32.mxu1 %vm191_vm1, %v8361_v33  ;;  %v2393_v26 = vpop.f32.mrf.mxu0  ;;  %v11119_v22 = vld [vmem:[%s11475_s1 + $0xac] sm:$0x7]  ;;  %v8383_v8 = vld [vmem:[%s9740_s23 + $0x272] sm:$0xff] }
 0x14a   : > { %v2242_v4 = vpop.f32.mrf.mxu1 }
 0x14b   : > { %v2409_v41 = vadd.f32 %v9195_v55, %v2258_v2  ;;  %v2257_v63 = vadd.f32 %v2242_v4, %v2107_v15  ;;  %v9214_v38 = vpop.f32.mrf.mxu0  ;;  %9549 = vmatmul.mubr.msk.f32.vlgmr.msra.gmra.mxu0 %vm191_vm1, %v8380_v35 }
 0x14c   : > { %v9200_v52 = vpop.f32.mrf.mxu1  ;;  %9535 = vmatmul.mubr.msk.f32.vlgmr.msra.gmra.mxu1 %vm191_vm1, %v8362_v21  ;;  %9575 = vmatpush3.msk.msra.mxu0 %vm216_vm0, %v11070_v18  ;;  %v8384_v21 = vld [vmem:[%s9740_s23 + $0x282] sm:$0xff] }
 0x14d   : > { %v2408_v15 = vadd.f32 %v2393_v26, %v2257_v63  ;;  %v2554_v5 = vadd.f32 %v9200_v52, %v2403_v42  ;;  %9561 = vmatpush3.msk.msra.mxu1 %vm216_vm0, %v11065_v17  ;;  %v2664_v33 = vpop.f32.mrf.mxu0  ;;  %9537 = vmatprep.mubr.msk.f32.mxu1 %vm191_vm1, %v8363_v11 }
 0x14e   : > { %v2514_v62 = vpop.f32.mrf.mxu1  ;;  %9551 = vmatprep.mubr.msk.f32.mxu0 %vm191_vm1, %v8381_v3  ;;  %9588 = vmatprep.subr.msk.mxu1 %vm216_vm0, %v11119_v22 }
 0x14f   : > { %v2704_v45 = vadd.f32 %v9214_v38, %v2554_v5  ;;  %v2553_v42 = vadd.f32 %v2514_v62, %v2402_v40  ;;  %9602 = vmatprep.subr.msk.mxu0 %vm216_vm0, %v11124_v50  ;;  %v9217_v18 = vpop.f32.mrf.mxu0  ;;  %9552 = vmatmul.mubr.msk.f32.gmra.mxu0 %vm191_vm1, %v8382_v54  ;;  %v8366_v40 = vld [vmem:[%s9740_s23 + $0x1d2] sm:$0xff]  ;;  %v8386_v5 = vld [vmem:[%s9740_s23 + $0x2a2] sm:$0xff] }
 0x150   : > { %v9203_v17 = vpop.f32.mrf.mxu1  ;;  %9538 = vmatmul.mubr.msk.f32.gmra.mxu1 %vm191_vm1, %v8364_v16  ;;  %9554 = vmatprep.mubr.msk.f32.mxu0 %vm191_vm1, %v8383_v8  ;;  %v8368_v38 = vld [vmem:[%s9740_s23 + $0x1f2] sm:$0xff] }
 0x151   : > { %v2703_v55 = vadd.f32 %v2664_v33, %v2553_v42  ;;  %v2556_v2 = vadd.f32 %v9203_v17, %v2405_v57  ;;  %9540 = vmatprep.mubr.msk.f32.mxu1 %vm191_vm1, %v8365_v7  ;;  %v2674_v4 = vpop.f32.mrf.mxu0 }
 0x152   : > { %v2524_v35 = vpop.f32.mrf.mxu1 }
 0x153   : > { %v2706_v26 = vadd.f32 %v9217_v18, %v2556_v2  ;;  %v2555_v63 = vadd.f32 %v2524_v35, %v11095_v27  ;;  %v9220_v3 = vpop.f32.mrf.mxu0  ;;  %9555 = vmatmul.mubr.msk.f32.gmra.mxu0 %vm191_vm1, %v8384_v21  ;;  %v8397_v27 = vld [vmem:[%s9740_s23 + $0x183] sm:$0xff] }
 0x154   : > { %v9206_v11 = vpop.f32.mrf.mxu1  ;;  %9541 = vmatmul.mubr.msk.f32.gmra.mxu1 %vm191_vm1, %v8366_v40  ;;  %9557 = vmatprep.mubr.msk.f32.mxu0 %vm191_vm1, %v10641_v58  ;;  %v8398_v58 = vld [vmem:[%s9740_s23 + $0x193] sm:$0xff] }
 0x155   : > { %v2705_v57 = vadd.f32 %v2674_v4, %v2555_v63  ;;  %v2558_v52 = vadd.f32 %v9206_v11, %v2407_v23  ;;  %9543 = vmatprep.mubr.msk.f32.mxu1 %vm191_vm1, %v10638_v37  ;;  %v2684_v54 = vpop.f32.mrf.mxu0  ;;  %v8400_v4 = vld [vmem:[%s9740_s23 + $0x1b3] sm:$0xff]  ;;  %v8401_v11 = vld [vmem:[%s9740_s23 + $0x1c3] sm:$0xff] }
 0x156   : > { %v2534_v16 = vpop.f32.mrf.mxu1 }
 0x157   : > { %v2708_v62 = vadd.f32 %v9220_v3, %v2558_v52  ;;  %v2557_v33 = vadd.f32 %v2534_v16, %v2406_v1  ;;  %v9223_v8 = vpop.f32.mrf.mxu0  ;;  %9558 = vmatmul.mubr.msk.f32.gmra.mxu0 %vm191_vm1, %v8386_v5  ;;  %v8399_v1 = vld [vmem:[%s9740_s23 + $0x1a3] sm:$0xff] }
 0x158   : > { %v9209_v7 = vpop.f32.mrf.mxu1  ;;  %9544 = vmatmul.mubr.msk.f32.gmra.mxu1 %vm191_vm1, %v8368_v38  ;;  %9576 = vmatprep.mubr.msk.f32.mxu0 %vm191_vm1, %v10652_v32  ;;  %v11174_v32 = vld [vmem:[%s11475_s1 + $0xb8] sm:$0x7] }
 0x159   : > { %v2707_v23 = vadd.f32 %v2684_v54, %v2557_v33  ;;  %v2560_v37 = vadd.f32 %v9209_v7, %v2409_v41  ;;  %9562 = vmatprep.mubr.msk.f32.mxu1 %vm191_vm1, %v8397_v27  ;;  %v2694_v17 = vpop.f32.mrf.mxu0  ;;  %v11169_v41 = vld [vmem:[%s11475_s1 + $0xb4] sm:$0x7] }
 0x15a   : > { %v2544_v42 = vpop.f32.mrf.mxu1 }
 0x15b   : > { %v2710_v18 = vadd.f32 %v9223_v8, %v2560_v37  ;;  %v2559_v2 = vadd.f32 %v2544_v42, %v2408_v15  ;;  %v9242_v21 = vpop.f32.mrf.mxu0  ;;  %9577 = vmatmul.mubr.msk.f32.vlgmr.msra.gmra.mxu0 %vm191_vm1, %v10655_v6  ;;  %v8422_v8 = vld [vmem:[%s9740_s23 + $0xa0] sm:$0xff] }
 0x15c   : > { %v9228_v40 = vpop.f32.mrf.mxu1  ;;  %9563 = vmatmul.mubr.msk.f32.vlgmr.msra.gmra.mxu1 %vm191_vm1, %v8398_v58  ;;  %9603 = vmatpush3.msk.msra.mxu0 %vm216_vm0, %v11124_v50 }
 0x15d   : > { %v2709_v15 = vadd.f32 %v2694_v17, %v2559_v2  ;;  %v2854_v35 = vadd.f32 %v9228_v40, %v2704_v45  ;;  %9589 = vmatpush3.msk.msra.mxu1 %vm216_vm0, %v11119_v22  ;;  %v2964_v63 = vpop.f32.mrf.mxu0  ;;  %9565 = vmatprep.mubr.msk.f32.mxu1 %vm191_vm1, %v8399_v1 }
 0x15e   : > { %v2814_v6 = vpop.f32.mrf.mxu1  ;;  %9579 = vmatprep.mubr.msk.f32.mxu0 %vm191_vm1, %v10674_v31  ;;  %9616 = vmatprep.subr.msk.mxu1 %vm216_vm0, %v11169_v41  ;;  %v8402_v31 = vld [vmem:[%s9740_s23 + $0x1d3] sm:$0xff] }
 0x15f   : > { %v3004_v3 = vadd.f32 %v9242_v21, %v2854_v35  ;;  %v2853_v52 = vadd.f32 %v2814_v6, %v2703_v55  ;;  %9630 = vmatprep.subr.msk.mxu0 %vm216_vm0, %v11174_v32  ;;  %v9245_v50 = vpop.f32.mrf.mxu0  ;;  %9580 = vmatmul.mubr.msk.f32.gmra.mxu0 %vm191_vm1, %v10681_v30  ;;  %v8420_v55 = vld [vmem:[%s9740_s23 + $0x80] sm:$0xff] }
 0x160   : > { %v9231_v22 = vpop.f32.mrf.mxu1  ;;  %9566 = vmatmul.mubr.msk.f32.gmra.mxu1 %vm191_vm1, %v8400_v4  ;;  %9582 = vmatprep.mubr.msk.f32.mxu0 %vm191_vm1, %v10696_v36  ;;  %v8404_v36 = vld [vmem:[%s9740_s23 + $0x1f3] sm:$0xff] }
 0x161   : > { %v3003_v45 = vadd.f32 %v2964_v63, %v2853_v52  ;;  %v2856_v38 = vadd.f32 %v9231_v22, %v2706_v26  ;;  %9568 = vmatprep.mubr.msk.f32.mxu1 %vm191_vm1, %v8401_v11  ;;  %v2974_v16 = vpop.f32.mrf.mxu0 }
 0x162   : > { %v2824_v5 = vpop.f32.mrf.mxu1 }
 0x163   : > { %v3006_v54 = vadd.f32 %v9245_v50, %v2856_v38  ;;  %v2855_v27 = vadd.f32 %v2824_v5, %v2705_v57  ;;  %v9248_v7 = vpop.f32.mrf.mxu0  ;;  %9583 = vmatmul.mubr.msk.f32.gmra.mxu0 %vm191_vm1, %v8420_v55 }
 0x164   : > { %v9234_v33 = vpop.f32.mrf.mxu1  ;;  %9569 = vmatmul.mubr.msk.f32.gmra.mxu1 %vm191_vm1, %v8402_v31  ;;  %9585 = vmatprep.mubr.msk.f32.mxu0 %vm191_vm1, %v10712_v47 }
 0x165   : > { %v3005_v30 = vadd.f32 %v2974_v16, %v2855_v27  ;;  %v2858_v26 = vadd.f32 %v9234_v33, %v2708_v62  ;;  %9571 = vmatprep.mubr.msk.f32.mxu1 %vm191_vm1, %v10709_v46  ;;  %v2984_v58 = vpop.f32.mrf.mxu0 }
 0x166   : > { %v2834_v37 = vpop.f32.mrf.mxu1 }
 0x167   : > { %v3008_v42 = vadd.f32 %v9248_v7, %v2858_v26  ;;  %v2857_v57 = vadd.f32 %v2834_v37, %v2707_v23  ;;  %v9251_v2 = vpop.f32.mrf.mxu0  ;;  %9586 = vmatmul.mubr.msk.f32.gmra.mxu0 %vm191_vm1, %v8422_v8 }
 0x168   : > { %v9237_v17 = vpop.f32.mrf.mxu1  ;;  %9572 = vmatmul.mubr.msk.f32.gmra.mxu1 %vm191_vm1, %v8404_v36  ;;  %9604 = vmatprep.mubr.msk.f32.mxu0 %vm191_vm1, %v10728_v61 }
 0x169   : > { %v3007_v1 = vadd.f32 %v2984_v58, %v2857_v57  ;;  %v2860_v62 = vadd.f32 %v9237_v17, %v2710_v18  ;;  %9590 = vmatprep.mubr.msk.f32.mxu1 %vm191_vm1, %v10725_v59  ;;  %v2994_v47 = vpop.f32.mrf.mxu0  ;;  %v8513_v18 = vld [vmem:[%s11475_s1 + $0xbc] sm:$0x7]  ;;  %v8531_v59 = vld [vmem:[%s11475_s1 + $0xc0] sm:$0x7] }
 0x16a   : > { %v2844_v46 = vpop.f32.mrf.mxu1 }
 0x16b   : > { %v3010_v40 = vadd.f32 %v9251_v2, %v2860_v62  ;;  %v2859_v21 = vadd.f32 %v2844_v46, %v2709_v15  ;;  %v9270_v23 = vpop.f32.mrf.mxu0  ;;  %9605 = vmatmul.mubr.msk.f32.vlgmr.msra.gmra.mxu0 %vm191_vm1, %v10734_v9 }
 0x16c   : > { %v9256_v35 = vpop.f32.mrf.mxu1  ;;  %9591 = vmatmul.mubr.msk.f32.vlgmr.msra.gmra.mxu1 %vm191_vm1, %v10731_v14  ;;  %9631 = vmatpush3.msk.msra.mxu0 %vm216_vm0, %v11174_v32 }
 0x16d   : > { %v3009_v61 = vadd.f32 %v2994_v47, %v2859_v21  ;;  %v3154_v4 = vadd.f32 %v9256_v35, %v3004_v3  ;;  %9617 = vmatpush3.msk.msra.mxu1 %vm216_vm0, %v11169_v41  ;;  %v3264_v15 = vpop.f32.mrf.mxu0  ;;  %9593 = vmatprep.mubr.msk.f32.mxu1 %vm191_vm1, %v10755_v12  ;;  %v8438_v12 = vld [vmem:[%s9740_s23 + $0x130] sm:$0xff] }
 0x16e   : > { %v3114_v14 = vpop.f32.mrf.mxu1  ;;  %9607 = vmatprep.mubr.msk.f32.mxu0 %vm191_vm1, %v10758_v25  ;;  %9644 = vmatprep.subr.msk.mxu1 %vm216_vm0, %v8513_v18  ;;  %v8456_v25 = vld [vmem:[%s9740_s23 + $0x81] sm:$0xff] }
 0x16f   : > { %v3304_v9 = vadd.f32 %v9270_v23, %v3154_v4  ;;  %v3153_v6 = vadd.f32 %v3114_v14, %v3003_v45  ;;  %9658 = vmatprep.subr.msk.mxu0 %vm216_vm0, %v8531_v59  ;;  %v9273_v63 = vpop.f32.mrf.mxu0  ;;  %9608 = vmatmul.mubr.msk.f32.gmra.mxu0 %vm191_vm1, %v10768_v20 }
 0x170   : > { %v9259_v41 = vpop.f32.mrf.mxu1  ;;  %9594 = vmatmul.mubr.msk.f32.gmra.mxu1 %vm191_vm1, %v10765_v29  ;;  %9610 = vmatprep.mubr.msk.f32.mxu0 %vm191_vm1, %v10786_v39  ;;  %v8458_v39 = vld [vmem:[%s9740_s23 + $0xa1] sm:$0xff] }
 0x171   : > { %v3303_v32 = vadd.f32 %v3264_v15, %v3153_v6  ;;  %v3156_v11 = vadd.f32 %v9259_v41, %v3006_v54  ;;  %9596 = vmatprep.mubr.msk.f32.mxu1 %vm191_vm1, %v10783_v56  ;;  %v3274_v52 = vpop.f32.mrf.mxu0  ;;  %v8440_v56 = vld [vmem:[%s9740_s23 + $0x150] sm:$0xff] }
 0x172   : > { %v3124_v3 = vpop.f32.mrf.mxu1 }
 0x173   : > { %v3306_v22 = vadd.f32 %v9273_v63, %v3156_v11  ;;  %v3155_v50 = vadd.f32 %v3124_v3, %v3005_v30  ;;  %v9276_v45 = vpop.f32.mrf.mxu0  ;;  %9611 = vmatmul.mubr.msk.f32.gmra.mxu0 %vm191_vm1, %v8456_v25  ;;  %v11604_v25 = vld [vmem:[#allocation5_spill] sm:$0xff] }
 0x174   : > { %v9262_v29 = vpop.f32.mrf.mxu1  ;;  %9597 = vmatmul.mubr.msk.f32.gmra.mxu1 %vm191_vm1, %v8438_v12  ;;  %9613 = vmatprep.mubr.msk.f32.mxu0 %vm191_vm1, %v10803_v49  ;;  %v11603_v12 = vld [vmem:[#allocation4_spill] sm:$0xff] }
 0x175   : > { %v3305_v20 = vadd.f32 %v3274_v52, %v3155_v50  ;;  %v3158_v38 = vadd.f32 %v9262_v29, %v3008_v42  ;;  %9599 = vmatprep.mubr.msk.f32.mxu1 %vm191_vm1, %v10800_v51  ;;  %v3284_v55 = vpop.f32.mrf.mxu0  ;;  %v11606_v50 = vld [vmem:[#allocation7_spill] sm:$0xff] }
 0x176   : > { %v3134_v31 = vpop.f32.mrf.mxu1 }
 0x177   : > { %v3308_v5 = vadd.f32 %v9276_v45, %v3158_v38  ;;  %v3157_v16 = vadd.f32 %v3134_v31, %v3007_v1  ;;  %v9279_v27 = vpop.f32.mrf.mxu0  ;;  %9614 = vmatmul.mubr.msk.f32.gmra.mxu0 %vm191_vm1, %v8458_v39  ;;  %v11607_v31 = vld [vmem:[#allocation8_spill] sm:$0xff] }
 0x178   : > { %v9265_v54 = vpop.f32.mrf.mxu1  ;;  %9600 = vmatmul.mubr.msk.f32.gmra.mxu1 %vm191_vm1, %v8440_v56  ;;  %9632 = vmatprep.mubr.msk.f32.mxu0 %vm191_vm1, %v10820_v60 }
 0x179   : > { %v3307_v33 = vadd.f32 %v3284_v55, %v3157_v16  ;;  %v3160_v7 = vadd.f32 %v9265_v54, %v3010_v40  ;;  %9618 = vmatprep.mubr.msk.f32.mxu1 %vm191_vm1, %v10817_v10  ;;  %v3294_v49 = vpop.f32.mrf.mxu0  ;;  %v11608_v55 = vld [vmem:[#allocation9_spill] sm:$0xff]  ;;  %v11609_v54 = vld [vmem:[#allocation10_spill] sm:$0xff] }
 0x17a   : > { %v3144_v51 = vpop.f32.mrf.mxu1 }
 0x17b   : > { %v3310_v30 = vadd.f32 %v9279_v27, %v3160_v7  ;;  %v3159_v26 = vadd.f32 %v3144_v51, %v3009_v61  ;;  %v9298_v8 = vpop.f32.mrf.mxu0  ;;  %9633 = vmatmul.mubr.msk.f32.vlgmr.msra.gmra.mxu0 %vm191_vm1, %v10826_v19  ;;  %v11610_v27 = vld [vmem:[#allocation11_spill] sm:$0xff] }
 0x17c   : > { %v9284_v36 = vpop.f32.mrf.mxu1  ;;  %9619 = vmatmul.mubr.msk.f32.vlgmr.msra.gmra.mxu1 %vm191_vm1, %v10823_v28  ;;  %9659 = vmatpush3.msk.msra.mxu0 %vm216_vm0, %v8531_v59  ;;  %v8528_v7 = vld [vmem:[%s9740_s23 + $0x83] sm:$0xff] }
 0x17d   : > { %v3309_v37 = vadd.f32 %v3294_v49, %v3159_v26  ;;  %v3455_v58 = vadd.f32 %v9284_v36, %v3304_v9  ;;  %9645 = vmatpush3.msk.msra.mxu1 %vm216_vm0, %v8513_v18  ;;  %v3566_v60 = vpop.f32.mrf.mxu0  ;;  %9621 = vmatprep.mubr.msk.f32.mxu1 %vm191_vm1, %v10847_v43  ;;  %v8474_v43 = vld [vmem:[%s9740_s23 + $0x131] sm:$0xff]  ;;  %v11601_v9 = vld [vmem:[#allocation2_spill] sm:$0xff] }
 0x17e   : > { %v3415_v10 = vpop.f32.mrf.mxu1  ;;  %9635 = vmatprep.mubr.msk.f32.mxu0 %vm191_vm1, %v10850_v44  ;;  %v8492_v44 = vld [vmem:[%s9740_s23 + $0x82] sm:$0xff] }
 0x17f   : > { %v3606_v28 = vadd.f32 %v9298_v8, %v3455_v58  ;;  %v3454_v42 = vadd.f32 %v3415_v10, %v3303_v32  ;;  %v9301_v19 = vpop.f32.mrf.mxu0  ;;  %9636 = vmatmul.mubr.msk.f32.gmra.mxu0 %vm191_vm1, %v10860_v13  ;;  %v11611_v10 = vld [vmem:[#allocation12_spill] sm:$0xff] }
 0x180   : > { %v9287_v57 = vpop.f32.mrf.mxu1  ;;  %9622 = vmatmul.mubr.msk.f32.gmra.mxu1 %vm191_vm1, %v10857_v34  ;;  %9638 = vmatprep.mubr.msk.f32.mxu0 %vm191_vm1, %v10878_v53  ;;  %v8494_v53 = vld [vmem:[%s9740_s23 + $0xa2] sm:$0xff] }
 0x181   : > { %v3605_v17 = vadd.f32 %v3566_v60, %v3454_v42  ;;  %v3457_v2 = vadd.f32 %v9287_v57, %v3306_v22  ;;  %9624 = vmatprep.mubr.msk.f32.mxu1 %vm191_vm1, %v10875_v24  ;;  %v3576_v62 = vpop.f32.mrf.mxu0  ;;  %v8476_v24 = vld [vmem:[%s9740_s23 + $0x151] sm:$0xff]  ;;  %v11605_v22 = vld [vmem:[#allocation6_spill] sm:$0xff] }
 0x182   : > { %v3425_v1 = vpop.f32.mrf.mxu1  ;;  %v11612_v60 = vld [vmem:[#allocation13_spill] sm:$0xff]  ;;  %v8530_v42 = vld [vmem:[%s9740_s23 + $0xa3] sm:$0xff] }
 0x183   : > { %v3608_v46 = vadd.f32 %v9301_v19, %v3457_v2  ;;  %v3456_v47 = vadd.f32 %v3425_v1, %v3305_v20  ;;  %v9304_v40 = vpop.f32.mrf.mxu0  ;;  %9639 = vmatmul.mubr.msk.f32.gmra.mxu0 %vm191_vm1, %v8492_v44 }
 0x184   : > { %v9290_v34 = vpop.f32.mrf.mxu1  ;;  %9625 = vmatmul.mubr.msk.f32.gmra.mxu1 %vm191_vm1, %v8474_v43  ;;  %9641 = vmatprep.mubr.msk.f32.mxu0 %vm191_vm1, %v10895_v48 }
 0x185   : > { %v3607_v13 = vadd.f32 %v3576_v62, %v3456_v47  ;;  %v3459_v21 = vadd.f32 %v9290_v34, %v3308_v5  ;;  %9627 = vmatprep.mubr.msk.f32.mxu1 %vm191_vm1, %v10892_v0  ;;  %v3586_v23 = vpop.f32.mrf.mxu0  ;;  %v11602_v0 = vld [vmem:[#allocation3_spill] sm:$0xff] }
 0x186   : > { %v3435_v35 = vpop.f32.mrf.mxu1 }
 0x187   : > { %v3610_v18 = vadd.f32 %v9304_v40, %v3459_v21  ;;  %v3458_v59 = vadd.f32 %v3435_v35, %v3307_v33  ;;  %v9307_v4 = vpop.f32.mrf.mxu0  ;;  %9642 = vmatmul.mubr.msk.f32.gmra.mxu0 %vm191_vm1, %v8494_v53  ;;  %v8510_v33 = vld [vmem:[%s9740_s23 + $0x132] sm:$0xff] }
 0x188   : > { %v9293_v61 = vpop.f32.mrf.mxu1  ;;  %9628 = vmatmul.mubr.msk.f32.gmra.mxu1 %vm191_vm1, %v8476_v24  ;;  %9660 = vmatprep.mubr.msk.f32.mxu0 %vm191_vm1, %v11602_v0 }
 0x189   : > { %v3609_v14 = vadd.f32 %v3586_v23, %v3458_v59  ;;  %v3461_v15 = vadd.f32 %v9293_v61, %v3310_v30  ;;  %9646 = vmatprep.mubr.msk.f32.mxu1 %vm191_vm1, %v11601_v9  ;;  %v3596_v6 = vpop.f32.mrf.mxu0 }
 0x18a   : > { %v3445_v48 = vpop.f32.mrf.mxu1 }
 0x18b   : > { %v3612_v41 = vadd.f32 %v9307_v4, %v3461_v15  ;;  %v3460_v63 = vadd.f32 %v3445_v48, %v3309_v37  ;;  %v9326_v11 = vpop.f32.mrf.mxu0  ;;  %9661 = vmatmul.mubr.msk.f32.vlgmr.msra.gmra.mxu0 %vm191_vm1, %v11604_v25 }
 0x18c   : > { %v9312_v32 = vpop.f32.mrf.mxu1  ;;  %9647 = vmatmul.mubr.msk.f32.vlgmr.msra.gmra.mxu1 %vm191_vm1, %v11603_v12  ;;  %9663 = vmatprep.mubr.msk.f32.mxu0 %vm191_vm1, %v11606_v50 }
 0x18d   : > { %v3611_v3 = vadd.f32 %v3596_v6, %v3460_v63  ;;  %v3756_v52 = vadd.f32 %v9312_v32, %v3606_v28  ;;  %9649 = vmatprep.mubr.msk.f32.mxu1 %vm191_vm1, %v11605_v22  ;;  %v3866_v45 = vpop.f32.mrf.mxu0  ;;  %v8512_v28 = vld [vmem:[%s9740_s23 + $0x152] sm:$0xff] }
 0x18e   : > { %v3716_v29 = vpop.f32.mrf.mxu1 }
 0x18f   : > { %v3906_v20 = vadd.f32 %v9326_v11, %v3756_v52  ;;  %v3755_v38 = vadd.f32 %v3716_v29, %v3605_v17  ;;  %v9329_v39 = vpop.f32.mrf.mxu0  ;;  %9664 = vmatmul.mubr.msk.f32.gmra.mxu0 %vm191_vm1, %v11608_v55 }
 0x190   : > { %v9315_v56 = vpop.f32.mrf.mxu1  ;;  %9650 = vmatmul.mubr.msk.f32.gmra.mxu1 %vm191_vm1, %v11607_v31  ;;  %9666 = vmatprep.mubr.msk.f32.mxu0 %vm191_vm1, %v11610_v27 }
 0x191   : > { %v3905_v5 = vadd.f32 %v3866_v45, %v3755_v38  ;;  %v3758_v16 = vadd.f32 %v9315_v56, %v3608_v46  ;;  %9652 = vmatprep.mubr.msk.f32.mxu1 %vm191_vm1, %v11609_v54  ;;  %v3876_v49 = vpop.f32.mrf.mxu0 }
 0x192   : > { %v3726_v51 = vpop.f32.mrf.mxu1 }
 0x193   : > { %v3908_v30 = vadd.f32 %v9329_v39, %v3758_v16  ;;  %v3757_v26 = vadd.f32 %v3726_v51, %v3607_v13  ;;  %v9332_v8 = vpop.f32.mrf.mxu0  ;;  %9667 = vmatmul.mubr.msk.f32.gmra.mxu0 %vm191_vm1, %v8528_v7 }
 0x194   : > { %v9318_v36 = vpop.f32.mrf.mxu1  ;;  %9653 = vmatmul.mubr.msk.f32.gmra.mxu1 %vm191_vm1, %v8510_v33  ;;  %9669 = vmatprep.mubr.msk.f32.mxu0 %vm191_vm1, %v11612_v60 }
 0x195   : > { %v3907_v37 = vadd.f32 %v3876_v49, %v3757_v26  ;;  %v3760_v58 = vadd.f32 %v9318_v36, %v3610_v18  ;;  %9655 = vmatprep.mubr.msk.f32.mxu1 %vm191_vm1, %v11611_v10  ;;  %v3886_v19 = vpop.f32.mrf.mxu0 }
 0x196   : > { %v3736_v57 = vpop.f32.mrf.mxu1 }
 0x197   : > { %v3910_v17 = vadd.f32 %v9332_v8, %v3760_v58  ;;  %v3759_v2 = vadd.f32 %v3736_v57, %v3609_v14  ;;  %v9335_v44 = vpop.f32.mrf.mxu0  ;;  %9670 = vmatmul.mubr.msk.f32.gmra.mxu0 %vm191_vm1, %v8530_v42 }
 0x198   : > { %v9321_v43 = vpop.f32.mrf.mxu1  ;;  %9656 = vmatmul.mubr.msk.f32.gmra.mxu1 %vm191_vm1, %v8512_v28 }
 0x199   : > { %v3909_v1 = vadd.f32 %v3886_v19, %v3759_v2  ;;  %v3762_v62 = vadd.f32 %v9321_v43, %v3612_v41  ;;  %v3896_v47 = vpop.f32.mrf.mxu0 }
 0x19a   : > { %v3746_v46 = vpop.f32.mrf.mxu1 }
 0x19b   : > { %v3912_v34 = vadd.f32 %v9335_v44, %v3762_v62  ;;  %v3761_v40 = vadd.f32 %v3746_v46, %v3611_v3  ;;  %v9354_v21 = vpop.f32.mrf.mxu0 }
 0x19c   : > { %v9340_v13 = vpop.f32.mrf.mxu1 }
 0x19d   : > { %v3911_v24 = vadd.f32 %v3896_v47, %v3761_v40  ;;  %v4056_v53 = vadd.f32 %v9340_v13, %v3906_v20  ;;  %v4166_v23 = vpop.f32.mrf.mxu0 }
 0x19e   : > { %v4016_v35 = vpop.f32.mrf.mxu1 }
 0x19f   : > { %v4206_v18 = vadd.f32 %v9354_v21, %v4056_v53  ;;  %v4055_v59 = vadd.f32 %v4016_v35, %v3905_v5  ;;  %v9357_v4 = vpop.f32.mrf.mxu0 }
 0x1a0   : > { %v9343_v61 = vpop.f32.mrf.mxu1 }
 0x1a1   : > { %v4205_v14 = vadd.f32 %v4166_v23, %v4055_v59  ;;  %v4058_v15 = vadd.f32 %v9343_v61, %v3908_v30  ;;  %v4176_v0 = vpop.f32.mrf.mxu0 }
 0x1a2   : > { %v4026_v9 = vpop.f32.mrf.mxu1 }
 0x1a3   : > { %v4208_v48 = vadd.f32 %v9357_v4, %v4058_v15  ;;  %v4057_v6 = vadd.f32 %v4026_v9, %v3907_v37  ;;  %v9360_v63 = vpop.f32.mrf.mxu0 }
 0x1a4   : > { %v9346_v41 = vpop.f32.mrf.mxu1 }
 0x1a5   : > { %v4207_v32 = vadd.f32 %v4176_v0, %v4057_v6  ;;  %v4060_v11 = vadd.f32 %v9346_v41, %v3910_v17  ;;  %v4186_v25 = vpop.f32.mrf.mxu0 }
 0x1a6   : > { %v4036_v12 = vpop.f32.mrf.mxu1 }
 0x1a7   : > { %v4210_v3 = vadd.f32 %v9360_v63, %v4060_v11  ;;  %v4059_v52 = vadd.f32 %v4036_v12, %v3909_v1  ;;  %v9363_v50 = vpop.f32.mrf.mxu0 }
 0x1a8   : > { %v9349_v22 = vpop.f32.mrf.mxu1 }
 0x1a9   : > { %v4209_v29 = vadd.f32 %v4186_v25, %v4059_v52  ;;  %v4062_v45 = vadd.f32 %v9349_v22, %v3912_v34  ;;  %v4196_v38 = vpop.f32.mrf.mxu0 }
 0x1aa   : > { %v4046_v20 = vpop.f32.mrf.mxu1 }
 0x1ab   : > { %v4212_v56 = vadd.f32 %v9363_v50, %v4062_v45  ;;  %v4061_v39 = vadd.f32 %v4046_v20, %v3911_v24  ;;  %v9382_v55 = vpop.f32.mrf.mxu0 }
 0x1ac   : > { %v9368_v31 = vpop.f32.mrf.mxu1 }
 0x1ad   : > { %v4211_v5 = vadd.f32 %v4196_v38, %v4061_v39  ;;  %v4356_v16 = vadd.f32 %v9368_v31, %v4206_v18  ;;  %v4467_v27 = vpop.f32.mrf.mxu0 }
 0x1ae   : > { %v4316_v54 = vpop.f32.mrf.mxu1 }
 0x1af   : > { %v4507_v33 = vadd.f32 %v9382_v55, %v4356_v16  ;;  %v4355_v7 = vadd.f32 %v4316_v54, %v4205_v14  ;;  %v9385_v49 = vpop.f32.mrf.mxu0 }
 0x1b0   : > { %v9371_v51 = vpop.f32.mrf.mxu1 }
 0x1b1   : > { %v4506_v30 = vadd.f32 %v4467_v27, %v4355_v7  ;;  %v4358_v26 = vadd.f32 %v9371_v51, %v4208_v48  ;;  %v4477_v8 = vpop.f32.mrf.mxu0 }
 0x1b2   : > { %v4326_v36 = vpop.f32.mrf.mxu1 }
 0x1b3   : > { %v4509_v37 = vadd.f32 %v9385_v49, %v4358_v26  ;;  %v4357_v58 = vadd.f32 %v4326_v36, %v4207_v32  ;;  %v9388_v60 = vpop.f32.mrf.mxu0 }
 0x1b4   : > { %v9374_v10 = vpop.f32.mrf.mxu1 }
 0x1b5   : > { %v4508_v28 = vadd.f32 %v4477_v8, %v4357_v58  ;;  %v4360_v42 = vadd.f32 %v9374_v10, %v4210_v3  ;;  %v4487_v19 = vpop.f32.mrf.mxu0 }
 0x1b6   : > { %v4336_v57 = vpop.f32.mrf.mxu1 }
 0x1b7   : > { %v4511_v17 = vadd.f32 %v9388_v60, %v4360_v42  ;;  %v4359_v2 = vadd.f32 %v4336_v57, %v4209_v29  ;;  %v9391_v44 = vpop.f32.mrf.mxu0 }
 0x1b8   : > { %v9377_v43 = vpop.f32.mrf.mxu1 }
 0x1b9   : > { %v4510_v1 = vadd.f32 %v4487_v19, %v4359_v2  ;;  %v4362_v62 = vadd.f32 %v9377_v43, %v4212_v56  ;;  %v4497_v47 = vpop.f32.mrf.mxu0 }
 0x1ba   : > { %v4346_v46 = vpop.f32.mrf.mxu1 }
 0x1bb   : > { %v4513_v34 = vadd.f32 %v9391_v44, %v4362_v62  ;;  %v4361_v40 = vadd.f32 %v4346_v46, %v4211_v5  ;;  %v9410_v21 = vpop.f32.mrf.mxu0 }
 0x1bc   : > { %v9396_v13 = vpop.f32.mrf.mxu1 }
 0x1bd   : > { %v4512_v24 = vadd.f32 %v4497_v47, %v4361_v40  ;;  %v4658_v53 = vadd.f32 %v9396_v13, %v4507_v33  ;;  %v4768_v23 = vpop.f32.mrf.mxu0 }
 0x1be   : > { %v4618_v35 = vpop.f32.mrf.mxu1 }
 0x1bf   : > { %v4808_v18 = vadd.f32 %v9410_v21, %v4658_v53  ;;  %v4657_v59 = vadd.f32 %v4618_v35, %v4506_v30  ;;  %v9413_v4 = vpop.f32.mrf.mxu0 }
 0x1c0   : > { %v9399_v61 = vpop.f32.mrf.mxu1 }
 0x1c1   : > { %v4807_v14 = vadd.f32 %v4768_v23, %v4657_v59  ;;  %v4660_v15 = vadd.f32 %v9399_v61, %v4509_v37  ;;  %v4778_v0 = vpop.f32.mrf.mxu0 }
 0x1c2   : > { %v4628_v9 = vpop.f32.mrf.mxu1 }
 0x1c3   : > { %v4810_v48 = vadd.f32 %v9413_v4, %v4660_v15  ;;  %v4659_v6 = vadd.f32 %v4628_v9, %v4508_v28  ;;  %v9416_v63 = vpop.f32.mrf.mxu0 }
 0x1c4   : > { %v9402_v41 = vpop.f32.mrf.mxu1 }
 0x1c5   : > { %v4809_v32 = vadd.f32 %v4778_v0, %v4659_v6  ;;  %v4662_v11 = vadd.f32 %v9402_v41, %v4511_v17  ;;  %v4788_v25 = vpop.f32.mrf.mxu0 }
 0x1c6   : > { %v4638_v12 = vpop.f32.mrf.mxu1 }
 0x1c7   : > { %v4812_v3 = vadd.f32 %v9416_v63, %v4662_v11  ;;  %v4661_v52 = vadd.f32 %v4638_v12, %v4510_v1  ;;  %v9419_v50 = vpop.f32.mrf.mxu0 }
 0x1c8   : > { %v9405_v22 = vpop.f32.mrf.mxu1 }
 0x1c9   : > { %v4811_v29 = vadd.f32 %v4788_v25, %v4661_v52  ;;  %v4664_v45 = vadd.f32 %v9405_v22, %v4513_v34  ;;  %v4798_v38 = vpop.f32.mrf.mxu0 }
 0x1ca   : > { %v4648_v20 = vpop.f32.mrf.mxu1 }
 0x1cb   : > { %v4814_v56 = vadd.f32 %v9419_v50, %v4664_v45  ;;  %v4663_v39 = vadd.f32 %v4648_v20, %v4512_v24  ;;  %v9438_v55 = vpop.f32.mrf.mxu0 }
 0x1cc   : > { %v9424_v31 = vpop.f32.mrf.mxu1 }
 0x1cd   : > { %v4813_v5 = vadd.f32 %v4798_v38, %v4663_v39  ;;  %v4958_v16 = vadd.f32 %v9424_v31, %v4808_v18  ;;  %v5068_v27 = vpop.f32.mrf.mxu0 }
 0x1ce   : > { %v4918_v54 = vpop.f32.mrf.mxu1 }
 0x1cf   : > { %v5108_v33 = vadd.f32 %v9438_v55, %v4958_v16  ;;  %v4957_v7 = vadd.f32 %v4918_v54, %v4807_v14  ;;  %v9441_v49 = vpop.f32.mrf.mxu0 }
 0x1d0   : > { %v9427_v51 = vpop.f32.mrf.mxu1 }
 0x1d1   : > { %v5107_v30 = vadd.f32 %v5068_v27, %v4957_v7  ;;  %v4960_v26 = vadd.f32 %v9427_v51, %v4810_v48  ;;  %v5078_v8 = vpop.f32.mrf.mxu0 }
 0x1d2   : > { %v4928_v36 = vpop.f32.mrf.mxu1 }
 0x1d3   : > { %v5110_v37 = vadd.f32 %v9441_v49, %v4960_v26  ;;  %v4959_v58 = vadd.f32 %v4928_v36, %v4809_v32  ;;  %v9444_v60 = vpop.f32.mrf.mxu0 }
 0x1d4   : > { %v9430_v10 = vpop.f32.mrf.mxu1 }
 0x1d5   : > { %v5109_v28 = vadd.f32 %v5078_v8, %v4959_v58  ;;  %v4962_v42 = vadd.f32 %v9430_v10, %v4812_v3  ;;  %v5088_v19 = vpop.f32.mrf.mxu0 }
 0x1d6   : > { %v4938_v57 = vpop.f32.mrf.mxu1 }
 0x1d7   : > { %v5112_v17 = vadd.f32 %v9444_v60, %v4962_v42  ;;  %v4961_v2 = vadd.f32 %v4938_v57, %v4811_v29  ;;  %v9447_v44 = vpop.f32.mrf.mxu0 }
 0x1d8   : > { %v9433_v43 = vpop.f32.mrf.mxu1 }
 0x1d9   : > { %v5111_v1 = vadd.f32 %v5088_v19, %v4961_v2  ;;  %v4964_v62 = vadd.f32 %v9433_v43, %v4814_v56  ;;  %v5098_v47 = vpop.f32.mrf.mxu0 }
 0x1da   : > { %v4948_v46 = vpop.f32.mrf.mxu1 }
 0x1db   : > { %v5114_v34 = vadd.f32 %v9447_v44, %v4964_v62  ;;  %v4963_v40 = vadd.f32 %v4948_v46, %v4813_v5  ;;  %v9466_v21 = vpop.f32.mrf.mxu0 }
 0x1dc   : > { %v9452_v13 = vpop.f32.mrf.mxu1 }
 0x1dd   : > { %v5113_v24 = vadd.f32 %v5098_v47, %v4963_v40  ;;  %v5258_v53 = vadd.f32 %v9452_v13, %v5108_v33  ;;  %v5368_v23 = vpop.f32.mrf.mxu0 }
 0x1de   : > { %v5218_v35 = vpop.f32.mrf.mxu1 }
 0x1df   : > { %v5408_v18 = vadd.f32 %v9466_v21, %v5258_v53  ;;  %v5257_v59 = vadd.f32 %v5218_v35, %v5107_v30  ;;  %v9469_v4 = vpop.f32.mrf.mxu0 }
 0x1e0   : > { %v9455_v61 = vpop.f32.mrf.mxu1 }
 0x1e1   : > { %v5407_v14 = vadd.f32 %v5368_v23, %v5257_v59  ;;  %v5260_v15 = vadd.f32 %v9455_v61, %v5110_v37  ;;  %v5378_v0 = vpop.f32.mrf.mxu0 }
 0x1e2   : > { %v5228_v9 = vpop.f32.mrf.mxu1 }
 0x1e3   : > { %v5410_v48 = vadd.f32 %v9469_v4, %v5260_v15  ;;  %v5259_v6 = vadd.f32 %v5228_v9, %v5109_v28  ;;  %v9472_v63 = vpop.f32.mrf.mxu0 }
 0x1e4   : > { %v9458_v41 = vpop.f32.mrf.mxu1 }
 0x1e5   : > { %v5409_v32 = vadd.f32 %v5378_v0, %v5259_v6  ;;  %v5262_v11 = vadd.f32 %v9458_v41, %v5112_v17  ;;  %v5388_v25 = vpop.f32.mrf.mxu0 }
 0x1e6   : > { %v5238_v12 = vpop.f32.mrf.mxu1 }
 0x1e7   : > { %v5412_v3 = vadd.f32 %v9472_v63, %v5262_v11  ;;  %v5261_v52 = vadd.f32 %v5238_v12, %v5111_v1  ;;  %v9475_v50 = vpop.f32.mrf.mxu0 }
 0x1e8   : > { %v9461_v22 = vpop.f32.mrf.mxu1 }
 0x1e9   : > { %v5411_v29 = vadd.f32 %v5388_v25, %v5261_v52  ;;  %v5264_v45 = vadd.f32 %v9461_v22, %v5114_v34  ;;  %v5398_v38 = vpop.f32.mrf.mxu0 }
 0x1ea   : > { %v5248_v20 = vpop.f32.mrf.mxu1 }
 0x1eb   : > { %v5414_v56 = vadd.f32 %v9475_v50, %v5264_v45  ;;  %v5263_v39 = vadd.f32 %v5248_v20, %v5113_v24  ;;  %v9494_v55 = vpop.f32.mrf.mxu0 }
 0x1ec   : > { %v9480_v31 = vpop.f32.mrf.mxu1 }
 0x1ed   : > { %v5413_v5 = vadd.f32 %v5398_v38, %v5263_v39  ;;  %v5559_v16 = vadd.f32 %v9480_v31, %v5408_v18  ;;  %v5670_v27 = vpop.f32.mrf.mxu0 }
 0x1ee   : > { %v5519_v54 = vpop.f32.mrf.mxu1 }
 0x1ef   : > { %v5710_v33 = vadd.f32 %v9494_v55, %v5559_v16  ;;  %v5558_v7 = vadd.f32 %v5519_v54, %v5407_v14  ;;  %v9497_v49 = vpop.f32.mrf.mxu0 }
 0x1f0   : > { %v9483_v51 = vpop.f32.mrf.mxu1 }
 0x1f1   : > { %v11317_v30 = vadd.f32 %v5670_v27, %v5558_v7  ;;  %v5561_v26 = vadd.f32 %v9483_v51, %v5410_v48  ;;  %v5680_v8 = vpop.f32.mrf.mxu0 }
 0x1f2   : > { %v5529_v36 = vpop.f32.mrf.mxu1 }
 0x1f3   : > { %v5712_v37 = vadd.f32 %v9497_v49, %v5561_v26  ;;  %v5560_v58 = vadd.f32 %v5529_v36, %v5409_v32  ;;  %v9500_v60 = vpop.f32.mrf.mxu0 }
 0x1f4   : > { %v9486_v10 = vpop.f32.mrf.mxu1 }
 0x1f5   : > { %v11319_v28 = vadd.f32 %v5680_v8, %v5560_v58  ;;  %v5563_v42 = vadd.f32 %v9486_v10, %v5412_v3  ;;  %v5690_v19 = vpop.f32.mrf.mxu0 }
 0x1f6   : > { %v5539_v57 = vpop.f32.mrf.mxu1 }
 0x1f7   : > { %v5714_v17 = vadd.f32 %v9500_v60, %v5563_v42  ;;  %v5562_v2 = vadd.f32 %v5539_v57, %v5411_v29  ;;  %v9503_v44 = vpop.f32.mrf.mxu0 }
 0x1f8   : > { %v9489_v43 = vpop.f32.mrf.mxu1 }
 0x1f9   : > { %v11321_v1 = vadd.f32 %v5690_v19, %v5562_v2  ;;  %v5565_v62 = vadd.f32 %v9489_v43, %v5414_v56  ;;  %v5700_v47 = vpop.f32.mrf.mxu0 }
 0x1fa   : > { %v5549_v46 = vpop.f32.mrf.mxu1 }
 0x1fb   : > { %v5716_v34 = vadd.f32 %v9503_v44, %v5565_v62  ;;  %v5564_v40 = vadd.f32 %v5549_v46, %v5413_v5  ;;  %v9522_v21 = vpop.f32.mrf.mxu0 }
 0x1fc   : > { %v9508_v13 = vpop.f32.mrf.mxu1 }
 0x1fd   : > { %v11323_v24 = vadd.f32 %v5700_v47, %v5564_v40  ;;  %v5860_v53 = vadd.f32 %v9508_v13, %v5710_v33  ;;  %v11325_v23 = vpop.f32.mrf.mxu0 }
 0x1fe   : > { %v5820_v35 = vpop.f32.mrf.mxu1 }
 0x1ff   : > { %v11327_v18 = vadd.f32 %v9522_v21, %v5860_v53  ;;  %v9525_v61 = vpop.f32.mrf.mxu0  ;;  %v5859_v53 = vadd.f32 %v5820_v35, %v11317_v30 }
 0x200   : > { %v9511_v59 = vpop.f32.mrf.mxu1 }
 0x201   : > { %v5862_v4 = vadd.f32 %v9511_v59, %v5712_v37  ;;  %v11329_v15 = vpop.f32.mrf.mxu0 }
 0x202   : > { %v5830_v14 = vpop.f32.mrf.mxu1 }
 0x203   : > { %v11331_v9 = vadd.f32 %v9525_v61, %v5862_v4  ;;  %v9528_v48 = vpop.f32.mrf.mxu0 }
 0x204   : > { %v9514_v0 = vpop.f32.mrf.mxu1 }
 0x205   : > { %v5864_v6 = vadd.f32 %v9514_v0, %v5714_v17  ;;  %v11335_v63 = vpop.f32.mrf.mxu0 }
 0x206   : > { %v11333_v41 = vpop.f32.mrf.mxu1 }
 0x207   : > { %v11337_v32 = vadd.f32 %v9528_v48, %v5864_v6  ;;  %v9531_v12 = vpop.f32.mrf.mxu0  ;;  %v6009_v48 = vadd.f32 %v11325_v23, %v5859_v53  ;;  %v5861_v6 = vadd.f32 %v5830_v14, %v11319_v28  ;;  %v5863_v23 = vadd.f32 %v11333_v41, %v11321_v1 }
 0x208   : > { %v9517_v11 = vpop.f32.mrf.mxu1 }
 0x209   : > { %v5866_v25 = vadd.f32 %v9517_v11, %v5716_v34  ;;  %v11341_v52 = vpop.f32.mrf.mxu0  ;;  %v6011_v35 = vadd.f32 %v11329_v15, %v5861_v6 }
 0x20a   : > { %v11339_v3 = vpop.f32.mrf.mxu1 }
 0x20b   : > { %v11343_v22 = vadd.f32 %v9531_v12, %v5866_v25  ;;  %v9550_v29 = vpop.f32.mrf.mxu0 }
 0x20c   : > { %v9536_v50 = vpop.f32.mrf.mxu1 }
 0x20d   : > { %v6270_v20 = vpop.f32.mrf.mxu0  ;;  %v6160_v11 = vadd.f32 %v9536_v50, %v11327_v18 }
 0x20e   : > { %v6120_v45 = vpop.f32.mrf.mxu1 }
 0x20f   : > { %v9553_v56 = vpop.f32.mrf.mxu0 }
 0x210   : > { %v9539_v38 = vpop.f32.mrf.mxu1 }
 0x211   : > { %v6280_v31 = vpop.f32.mrf.mxu0 }
 0x212   : > { %v6130_v39 = vpop.f32.mrf.mxu1 }
 0x213   : > { %v11345_v5 = vpop.f32.mrf.mxu0  ;;  %v6161_v50 = vadd.f32 %v6130_v39, %v6011_v35 }
 0x214   : > { %v9542_v55 = vpop.f32.mrf.mxu1 }
 0x215   : > { %v11349_v54 = vpop.f32.mrf.mxu0  ;;  %v6164_v15 = vadd.f32 %v9542_v55, %v11337_v32  ;;  %v6311_v41 = vadd.f32 %v6280_v31, %v6161_v50 }
 0x216   : > { %v11347_v16 = vpop.f32.mrf.mxu1 }
 0x217   : > { %v11353_v33 = vpop.f32.mrf.mxu0 }
 0x218   : > { %v11351_v27 = vpop.f32.mrf.mxu1 }
 0x219   : > { %v11357_v51 = vpop.f32.mrf.mxu0  ;;  %v6166_v32 = vadd.f32 %v11351_v27, %v11343_v22 }
 0x21a   : > { %v11355_v7 = vpop.f32.mrf.mxu1 }
 0x21b   : > { %v9578_v26 = vpop.f32.mrf.mxu0 }
 0x21c   : > { %v9564_v49 = vpop.f32.mrf.mxu1 }
 0x21d   : > { %v6571_v8 = vpop.f32.mrf.mxu0 }
 0x21e   : > { %v6420_v36 = vpop.f32.mrf.mxu1 }
 0x21f   : > { %v11359_v58 = vpop.f32.mrf.mxu0 }
 0x220   : > { %v9567_v37 = vpop.f32.mrf.mxu1 }
 0x221   : > { %v11361_v60 = vpop.f32.mrf.mxu0 }
 0x222   : > { %v6430_v10 = vpop.f32.mrf.mxu1 }
 0x223   : > { %v11363_v57 = vpop.f32.mrf.mxu0 }
 0x224   : > { %v9570_v42 = vpop.f32.mrf.mxu1 }
 0x225   : > { %v11367_v17 = vpop.f32.mrf.mxu0 }
 0x226   : > { %v11365_v19 = vpop.f32.mrf.mxu1 }
 0x227   : > { %v11371_v43 = vpop.f32.mrf.mxu0 }
 0x228   : > { %v11369_v2 = vpop.f32.mrf.mxu1  ;;  %11613 = vst [vmem:[#allocation14_spill] sm:$0xff] %v11371_v43 }
 0x229   : > { %v11375_v62 = vpop.f32.mrf.mxu0 }
 0x22a   : > { %v11373_v44 = vpop.f32.mrf.mxu1  ;;  %11614 = vst [vmem:[#allocation15_spill] sm:$0xff] %v11375_v62  ;;  %v6159_v62 = vadd.f32 %v6120_v45, %v6009_v48  ;;  %v5865_v45 = vadd.f32 %v11339_v3, %v11323_v24  ;;  %v6314_v24 = vadd.f32 %v11345_v5, %v6164_v15 }
 0x22b   : > { %v9606_v47 = vpop.f32.mrf.mxu0 }
 0x22c   : > { %v9592_v46 = vpop.f32.mrf.mxu1  ;;  %v6309_v14 = vadd.f32 %v6270_v20, %v6159_v62  ;;  %v6015_v20 = vadd.f32 %v11341_v52, %v5865_v45 }
 0x22d   : > { %v11377_v40 = vpop.f32.mrf.mxu0 }
 0x22e   : > { %v6722_v34 = vpop.f32.mrf.mxu1 }
 0x22f   : > { %v11379_v21 = vpop.f32.mrf.mxu0  ;;  %v11620_v45 = vld [vmem:[#allocation14_spill] sm:$0xff] }
 0x230   : > { %v9595_v13 = vpop.f32.mrf.mxu1 }
 0x231   : > { %v11382_v61 = vpop.f32.mrf.mxu0 }
 0x232   : > { %v6732_v59 = vpop.f32.mrf.mxu1  ;;  %11615 = vst [vmem:[#allocation16_spill] sm:$0xff] %v11382_v61  ;;  %v6310_v61 = vadd.f32 %v9550_v29, %v6160_v11  ;;  %v6459_v29 = vadd.f32 %v6420_v36, %v6309_v14  ;;  %v6464_v36 = vadd.f32 %v9570_v42, %v6314_v24 }
 0x233   : > { %v11386_v0 = vpop.f32.mrf.mxu0 }
 0x234   : > { %v11384_v4 = vpop.f32.mrf.mxu1  ;;  %11616 = vst [vmem:[#allocation17_spill] sm:$0xff] %v11386_v0  ;;  %v6162_v0 = vadd.f32 %v9539_v38, %v11331_v9  ;;  %v6460_v53 = vadd.f32 %v9564_v49, %v6310_v61  ;;  %v6013_v9 = vadd.f32 %v11335_v63, %v5863_v23  ;;  %v6610_v3 = vadd.f32 %v6571_v8, %v6459_v29 }
 0x235   : > { %v11393_v25 = vpop.f32.mrf.mxu0  ;;  %v6165_v63 = vadd.f32 %v11355_v7, %v6015_v20 }
 0x236   : > { %v11391_v12 = vpop.f32.mrf.mxu1  ;;  %11617 = vst [vmem:[#allocation18_spill] sm:$0xff] %v11393_v25  ;;  %v6312_v25 = vadd.f32 %v9553_v56, %v6162_v0  ;;  %v6611_v6 = vadd.f32 %v9578_v26, %v6460_v53  ;;  %v6163_v39 = vadd.f32 %v11347_v16, %v6013_v9  ;;  %v6461_v56 = vadd.f32 %v6430_v10, %v6311_v41 }
 0x237   : > { %v11397_v30 = vpop.f32.mrf.mxu0  ;;  %v6761_v52 = vadd.f32 %v6722_v34, %v6610_v3  ;;  %v6315_v22 = vadd.f32 %v11357_v51, %v6165_v63 }
 0x238   : > { %v11395_v43 = vpop.f32.mrf.mxu1  ;;  %11618 = vst [vmem:[#allocation19_spill] sm:$0xff] %v11397_v30  ;;  %v6462_v11 = vadd.f32 %v9567_v37, %v6312_v25  ;;  %v6762_v61 = vadd.f32 %v9592_v46, %v6611_v6  ;;  %v6313_v16 = vadd.f32 %v11349_v54, %v6163_v39  ;;  %v6612_v5 = vadd.f32 %v11361_v60, %v6461_v56 }
 0x239   : > { %v11405_v18 = vpop.f32.mrf.mxu0  ;;  %v6316_v46 = vadd.f32 %v11353_v33, %v6166_v32  ;;  %v6911_v42 = vadd.f32 %v11377_v40, %v6761_v52  ;;  %v6465_v60 = vadd.f32 %v11373_v44, %v6315_v22 }
 0x23a   : > { %v11403_v28 = vpop.f32.mrf.mxu1  ;;  %v6613_v26 = vadd.f32 %v11359_v58, %v6462_v11  ;;  %v6912_v8 = vadd.f32 %v9606_v47, %v6762_v61  ;;  %v6463_v27 = vadd.f32 %v11365_v19, %v6313_v16  ;;  %v6615_v58 = vadd.f32 %v11363_v57, %v6464_v36  ;;  %v11619_v57 = vld [vmem:[#allocation16_spill] sm:$0xff] }
 0x23b   : > { %v9634_v30 = vpop.f32.mrf.mxu0  ;;  %v6763_v34 = vadd.f32 %v6732_v59, %v6612_v5  ;;  %v6466_v35 = vadd.f32 %v11369_v2, %v6316_v46  ;;  %v11621_v2 = vld [vmem:[#allocation15_spill] sm:$0xff] }
 0x23c   : > { %v9620_v48 = vpop.f32.mrf.mxu1  ;;  %v6764_v10 = vadd.f32 %v9595_v13, %v6613_v26  ;;  %v6766_v51 = vadd.f32 %v11384_v4, %v6615_v58  ;;  %v6614_v19 = vadd.f32 %v11367_v17, %v6463_v27  ;;  %v6616_v15 = vadd.f32 %v11621_v2, %v6465_v60 }
 0x23d   : > { %v7172_v1 = vpop.f32.mrf.mxu0  ;;  %v7062_v54 = vadd.f32 %v9620_v48, %v6912_v8  ;;  %v6913_v53 = vadd.f32 %v11619_v57, %v6763_v34  ;;  %v6617_v48 = vadd.f32 %v11620_v45, %v6466_v35  ;;  %v11623_v56 = vld [vmem:[#allocation18_spill] sm:$0xff] }
 0x23e   : > { %v7022_v38 = vpop.f32.mrf.mxu1  ;;  %v6914_v33 = vadd.f32 %v11379_v21, %v6764_v10  ;;  %v6765_v44 = vadd.f32 %v11391_v12, %v6614_v19  ;;  %v11622_v21 = vld [vmem:[#allocation17_spill] sm:$0xff]  ;;  %v6767_v11 = vadd.f32 %v11403_v28, %v6616_v15 }
 0x23f   : > { %v9637_v62 = vpop.f32.mrf.mxu0  ;;  %v7061_v23 = vadd.f32 %v7022_v38, %v6911_v42  ;;  %v7212_v40 = vadd.f32 %v9634_v30, %v7062_v54  ;;  %v6916_v41 = vadd.f32 %v11622_v21, %v6766_v51  ;;  %v6768_v17 = vadd.f32 %v11395_v43, %v6617_v48  ;;  %v11440_v30 = vld [vmem:[%s11476_s2] ss:$0 sm:$0xff]  ;;  %v11624_v26 = vld [vmem:[#allocation19_spill] sm:$0xff] }
 0x240   : > { %v9623_v49 = vpop.f32.mrf.mxu1  ;;  %v6915_v61 = vadd.f32 %v11623_v56, %v6765_v44  ;;  %v6917_v52 = vadd.f32 %v11405_v18, %v6767_v11 }
 0x241   : > { %v7182_v31 = vpop.f32.mrf.mxu0  ;;  %v7064_v59 = vadd.f32 %v9623_v49, %v6914_v33  ;;  %v7211_v4 = vadd.f32 %v7172_v1, %v7061_v23  ;;  %v6918_v36 = vadd.f32 %v11624_v26, %v6768_v17 }
 0x242   : > { %v7032_v55 = vpop.f32.mrf.mxu1 }
 0x243   : > { %v9640_v0 = vpop.f32.mrf.mxu0  ;;  %v7063_v38 = vadd.f32 %v7032_v55, %v6913_v53  ;;  %v7214_v49 = vadd.f32 %v9637_v62, %v7064_v59 }
 0x244   : > { %v9626_v37 = vpop.f32.mrf.mxu1 }
 0x245   : > { %v7192_v25 = vpop.f32.mrf.mxu0  ;;  %v7066_v12 = vadd.f32 %v9626_v37, %v6916_v41  ;;  %v7213_v63 = vadd.f32 %v7182_v31, %v7063_v38 }
 0x246   : > { %v7042_v7 = vpop.f32.mrf.mxu1 }
 0x247   : > { %v9643_v13 = vpop.f32.mrf.mxu0  ;;  %v7065_v16 = vadd.f32 %v7042_v7, %v6915_v61  ;;  %v7216_v62 = vadd.f32 %v9640_v0, %v7066_v12 }
 0x248   : > { %v9629_v47 = vpop.f32.mrf.mxu1 }
 0x249   : > { %v7202_v50 = vpop.f32.mrf.mxu0  ;;  %v7068_v22 = vadd.f32 %v9629_v47, %v6918_v36  ;;  %v7215_v60 = vadd.f32 %v7192_v25, %v7065_v16 }
 0x24a   : > { %v7052_v14 = vpop.f32.mrf.mxu1 }
 0x24b   : > { %v9662_v9 = vpop.f32.mrf.mxu0  ;;  %v7067_v27 = vadd.f32 %v7052_v14, %v6917_v52  ;;  %v7218_v19 = vadd.f32 %v9643_v13, %v7068_v22 }
 0x24c   : > { %v9648_v29 = vpop.f32.mrf.mxu1 }
 0x24d   : > { %v7362_v6 = vadd.f32 %v9648_v29, %v7212_v40  ;;  %v7472_v39 = vpop.f32.mrf.mxu0  ;;  %v7217_v14 = vadd.f32 %v7202_v50, %v7067_v27 }
 0x24e   : > { %v7322_v20 = vpop.f32.mrf.mxu1 }
 0x24f   : > { %v7512_v24 = vadd.f32 %v9662_v9, %v7362_v6  ;;  %v7361_v3 = vadd.f32 %v7322_v20, %v7211_v4  ;;  %v9665_v32 = vpop.f32.mrf.mxu0 }
 0x250   : > { %v9651_v1 = vpop.f32.mrf.mxu1 }
 0x251   : > { %v7527_v43 = vadd.f32 %v11440_v30, %v7512_v24  ;;  %v7511_v55 = vadd.f32 %v7472_v39, %v7361_v3  ;;  %v7364_v28 = vadd.f32 %v9651_v1, %v7214_v49  ;;  %v7482_v8 = vpop.f32.mrf.mxu0 }
 0x252   : > { %v7332_v5 = vpop.f32.mrf.mxu1 }
 0x253   : > { %v7526_v37 = vadd.f32 %v11440_v30, %v7511_v55  ;;  %v7514_v10 = vadd.f32 %v9665_v32, %v7364_v28  ;;  %v7363_v46 = vadd.f32 %v7332_v5, %v7213_v63  ;;  %v9668_v31 = vpop.f32.mrf.mxu0  ;;  %v7535_v42 = vmax.f32 %v7527_v43, 0.0 }
 0x254   : > { %v9654_v58 = vpop.f32.mrf.mxu1 }
 0x255   : > { %v7534_v34 = vmax.f32 %v7526_v37, 0.0  ;;  %v7513_v54 = vadd.f32 %v7482_v8, %v7363_v46  ;;  %v7366_v35 = vadd.f32 %v9654_v58, %v7216_v62  ;;  %v7529_v33 = vadd.f32 %v11440_v30, %v7514_v10  ;;  %v7492_v7 = vpop.f32.mrf.mxu0 }
 0x256   : > { %v7342_v18 = vpop.f32.mrf.mxu1 }
 0x257   : > { %v7542_v51 = vmax.f32 %v7534_v34, %v7535_v42  ;;  %v7528_v0 = vadd.f32 %v11440_v30, %v7513_v54  ;;  %v7516_v23 = vadd.f32 %v9668_v31, %v7366_v35  ;;  %v7365_v57 = vadd.f32 %v7342_v18, %v7215_v60  ;;  %v9671_v47 = vpop.f32.mrf.mxu0 }
 0x258   : > { %v9657_v53 = vpop.f32.mrf.mxu1  ;;  %v7537_v48 = vmax.f32 %v7529_v33, 0.0 }
 0x259   : > { %v7544_v40 = vrot.slane %v7542_v51, 1  ;;  %v7536_v59 = vmax.f32 %v7528_v0, 0.0  ;;  %v7547_v45 = vrot.slane %v7542_v51, 2  ;;  %v7515_v2 = vadd.f32 %v7492_v7, %v7365_v57  ;;  %v7502_v4 = vpop.f32.mrf.mxu0 }
 0x25a   : > { %v7368_v15 = vadd.f32 %v9657_v53, %v7218_v19  ;;  %v7352_v25 = vpop.f32.mrf.mxu1  ;;  %v7531_v9 = vadd.f32 %v11440_v30, %v7516_v23 }
 0x25b   : > { %v7546_v44 = vmax.f32 %v7542_v51, %v7544_v40  ;;  %v7550_v29 = vmax.f32 %v7535_v42, %v7536_v59  ;;  %v7367_v21 = vadd.f32 %v7352_v25, %v7217_v14  ;;  %v7530_v41 = vadd.f32 %v11440_v30, %v7515_v2 }
 0x25c   : > { %v7518_v13 = vadd.f32 %v9671_v47, %v7368_v15  ;;  %v7539_v49 = vmax.f32 %v7531_v9, 0.0 }
 0x25d   : > { %v7549_v38 = vmax.f32 %v7546_v44, %v7547_v45  ;;  %v7551_v6 = vmax.f32 %v7550_v29, %v7537_v48  ;;  %v7517_v50 = vadd.f32 %v7502_v4, %v7367_v21  ;;  %v7538_v17 = vmax.f32 %v7530_v41, 0.0 }
 0x25e   : > { %v7533_v3 = vadd.f32 %v11440_v30, %v7518_v13 }
 0x25f   : > { %v7578_v11 = vrot.slane %v7549_v38, 1  ;;  %v7608_v20 = vsel %vm7607_vm2, %v7546_v44, %v7549_v38  ;;  %v7553_v39 = vrot.slane %v7551_v6, 1  ;;  %v7580_v12 = vrot.slane %v7549_v38, 2 }
 0x260   : > { %v7559_v24 = vmax.f32 %v7537_v48, %v7538_v17  ;;  %v7532_v56 = vadd.f32 %v11440_v30, %v7517_v50  ;;  %v7556_v32 = vrot.slane %v7551_v6, 2  ;;  %v7541_v52 = vmax.f32 %v7533_v3, 0.0 }
 0x261   : > { %v7610_v61 = vsel %vm7609_vm3, %v7608_v20, %v7578_v11  ;;  %v7555_v1 = vmax.f32 %v7551_v6, %v7553_v39 }
 0x262   : > { %v7560_v63 = vmax.f32 %v7559_v24, %v7539_v49  ;;  %v7540_v43 = vmax.f32 %v7532_v56, 0.0  ;;  %v7611_v26 = vsel %vm216_vm0, %v7610_v61, %v7580_v12 }
 0x263   : > { %v7558_v55 = vmax.f32 %v7555_v1, %v7556_v32  ;;  %v7583_v28 = vrot.slane %v7555_v1, 4 }
 0x264   : > { %v7562_v36 = vrot.slane %v7560_v63, 1  ;;  %v7568_v16 = vmax.f32 %v7539_v49, %v7540_v43  ;;  %v7565_v37 = vrot.slane %v7560_v63, 2 }
 0x265   : > { %v7586_v5 = vrot.slane %v7558_v55, 4  ;;  %v7588_v8 = vrot.slane %v7558_v55, 5  ;;  %v7613_v30 = vsel %vm7612_vm4, %v7611_v26, %v7583_v28  ;;  %v7590_v46 = vrot.slane %v7558_v55, 6 }
 0x266   : > { %v7564_v62 = vmax.f32 %v7560_v63, %v7562_v36  ;;  %v7569_v10 = vmax.f32 %v7568_v16, %v7541_v52 }
 0x267   : > { %v7615_v22 = vsel %vm7614_vm5, %v7613_v30, %v7586_v5 }
 0x268   : > { %v7617_v27 = vsel %vm7616_vm6, %v7615_v22, %v7588_v8  ;;  %v7567_v58 = vmax.f32 %v7564_v62, %v7565_v37  ;;  %v7571_v31 = vrot.slane %v7569_v10, 1  ;;  %v7574_v34 = vrot.slane %v7569_v10, 2 }
 0x269   : > { %v7619_v42 = vsel %vm7618_vm7, %v7617_v27, %v7590_v46 }
 0x26a   : > { %7627 = vst [vmem:[%s170_s24] sm:$0xff] %v7619_v42  ;;  %v7593_v54 = vrot.slane %v7567_v58, 1  ;;  %v7595_v35 = vrot.slane %v7567_v58, 2  ;;  %v7620_v60 = vsel %vm7607_vm2, %v7564_v62, %v7567_v58  ;;  %v7573_v33 = vmax.f32 %v7569_v10, %v7571_v31 }
 0x26c   : > { %v7621_v18 = vsel %vm7609_vm3, %v7620_v60, %v7593_v54  ;;  %v7576_v7 = vmax.f32 %v7573_v33, %v7574_v34  ;;  %v7598_v51 = vrot.slane %v7573_v33, 4 }
 0x26d   : > { %v7622_v0 = vsel %vm216_vm0, %v7621_v18, %v7595_v35 }
 0x26e   : > { %v7601_v23 = vrot.slane %v7576_v7, 4  ;;  %v7603_v19 = vrot.slane %v7576_v7, 5  ;;  %v7623_v57 = vsel %vm7612_vm4, %v7622_v0, %v7598_v51  ;;  %v7605_v53 = vrot.slane %v7576_v7, 6 }
 0x270   : > { %v7624_v47 = vsel %vm7614_vm5, %v7623_v57, %v7601_v23 }
 0x271   : > { %v7625_v14 = vsel %vm7616_vm6, %v7624_v47, %v7603_v19 }
 0x272   : > { %v7626_v40 = vsel %vm7618_vm7, %v7625_v14, %v7605_v53 }
 0x273   : > { %7628 = vst [vmem:[%s170_s24 + $0x8] sm:$0xff] %v7626_v40 }
 0x274 PF: > { %s13_s12 = sadd.s32 1, %s9689_s12  }
 0x275   : > { %p10_p4 = scmp.ge.s32.totalorder %s13_s12, 4  }
 0x277   :  { %12 = sbr.rel (!%p10_p4) target bundleno = 1 (0x1), region = 123 }

</bundles_post_ra>
